<compile_context>
chip_gen: v7x
topology: tpu7x:2x2x1
jax: 0.10.0
libtpu: 0.0.40
codegen_flags: <defaults>
</compile_context>

<pallas_src>
import numpy as np

import jax
import jax.numpy as jnp
from jax.experimental import pallas as pl
from jax.experimental.pallas import tpu as pltpu


_KH = _KW = 4           # every conv uses a 4x4 kernel
_KK = _KH * _KW         # 16 kernel taps
_C_IN_PAD = 8           # conv1 input channels padded 3 -> 8  (K0 = 4*4*8 = 128)
_N0_PAD = 128           # conv1 output channels padded 64 -> 128 (zero weights)
_SLOPE = 0.2            # LeakyReLU negative slope

_CONV_SPECS = [         # (C_out, C_in, kh, kw, stride, pad) of the nn.Sequential
    (64, 3, 4, 4, 2, 1),
    (128, 64, 4, 4, 2, 1),
    (256, 128, 4, 4, 2, 1),
    (1, 256, 4, 4, 1, 0),
]


# ---------------------------------------------------------------------------
# The fused Pallas kernel (one grid step == one batch element)
# ---------------------------------------------------------------------------
def _disc_kernel(p0_ref, w0_ref, b0_ref, w1_ref, b1_ref, w2_ref, b2_ref,
                 w3e_ref, b3_ref, s2_ref, s3_ref, o_ref):
    f32 = jnp.float32
    bf16 = jnp.bfloat16

    def lrelu(v):
        return jnp.where(v >= 0.0, v, _SLOPE * v)

    # ---- conv1: host im2col patches (M1, 128) @ flattened weights (128, 128)
    h1 = jnp.dot(p0_ref[0], w0_ref[...], preferred_element_type=f32)
    h1 = lrelu(h1 + b0_ref[...]).astype(bf16)          # (H1*W1, 128)

    # ---- conv2: MXU gather-im2col (16 taps) -> one K=2048 matmul ------------
    cols = [jnp.dot(s2_ref[k], h1, preferred_element_type=f32).astype(bf16)
            for k in range(_KK)]
    patches2 = jnp.concatenate(cols, axis=1)           # (H2*W2, 16*128)
    h2 = jnp.dot(patches2, w1_ref[...], preferred_element_type=f32)
    h2 = lrelu(h2 + b1_ref[...]).astype(bf16)          # (H2*W2, 128)

    # ---- conv3: same pattern -------------------------------------------------
    cols = [jnp.dot(s3_ref[k], h2, preferred_element_type=f32).astype(bf16)
            for k in range(_KK)]
    patches3 = jnp.concatenate(cols, axis=1)           # (H3*W3, 16*128)
    h3 = jnp.dot(patches3, w2_ref[...], preferred_element_type=f32)
    h3 = lrelu(h3 + b2_ref[...])                       # (H3*W3, 256) f32

    # ---- conv4 head (C_out=1) + AdaptiveAvgPool2d((1,1)) + Sigmoid ----------
    # The head conv + average pool are linear, so they are pre-folded into the
    # per-row weight map w3_eff: logit = sum(h3 * w3_eff) + b3.
    prod = h3 * w3e_ref[...]                           # (H3*W3, 256) f32, VPU
    s = jnp.sum(prod, axis=1, keepdims=True)           # (H3*W3, 1)     XLU
    logit = jnp.sum(s, axis=0, keepdims=True) + b3_ref[...]
    o_ref[0] = 1.0 / (1.0 + jnp.exp(-logit))           # sigmoid -> (1, 1)


# ---------------------------------------------------------------------------
# Host-side helpers (tiny, trace-time constants / one-time weight prep)
# ---------------------------------------------------------------------------
def _make_gather_mats(Hi, Wi, Ho, Wo):
    """0/1 gather matrices S[k] (Ho*Wo, Hi*Wi) implementing the 4x4 / stride-2 /
    pad-1 im2col row gather (zero rows for out-of-bounds taps)."""
    S = np.zeros((_KK, Ho * Wo, Hi * Wi), np.float32)
    for ki in range(_KH):
        for kj in range(_KW):
            k = ki * _KW + kj
            for oh in range(Ho):
                ih = 2 * oh - 1 + ki
                if not 0 <= ih < Hi:
                    continue
                for ow in range(Wo):
                    iw = 2 * ow - 1 + kj
                    if not 0 <= iw < Wi:
                        continue
                    S[k, oh * Wo + ow, ih * Wi + iw] = 1.0
    return jnp.asarray(S, jnp.bfloat16)


def _make_head_combine(H3, W3):
    """(H3*W3, 16) matrix folding the stride-1 / pad-0 head conv positions and
    the AdaptiveAvgPool2d((1,1)) mean into per-input-row tap weights."""
    sh_n, sw_n = H3 - _KH + 1, W3 - _KW + 1
    A = np.zeros((H3 * W3, _KK), np.float32)
    for sh in range(sh_n):
        for sw in range(sw_n):
            for ki in range(_KH):
                for kj in range(_KW):
                    A[(sh + ki) * W3 + (sw + kj), ki * _KW + kj] += 1.0
    return jnp.asarray(A / float(sh_n * sw_n), jnp.float32)


def _im2col_input(x, H1, W1):
    """(B,3,H,W) NCHW -> (B, H1*W1, 128) bf16 conv1 im2col patches.
    K ordering (kh, kw, c) with input channels zero-padded 3 -> 8."""
    B, C = x.shape[0], x.shape[1]
    xh = jnp.transpose(x, (0, 2, 3, 1)).astype(jnp.float32)
    xh = jnp.pad(xh, ((0, 0), (1, 1), (1, 1), (0, _C_IN_PAD - C)))
    cols = []
    for ki in range(_KH):
        for kj in range(_KW):
            cols.append(xh[:, ki:ki + 2 * H1:2, kj:kj + 2 * W1:2, :])
    p0 = jnp.concatenate(cols, axis=-1)                 # (B, H1, W1, 128)
    return p0.reshape(B, H1 * W1, _KK * _C_IN_PAD).astype(jnp.bfloat16)


def prepare_params(params):
    """Flatten / zero-pad / transpose / cast the PyTorch-layout conv params once
    (hoisted out of the forward path)."""
    (W0, b0), (W1, b1), (W2, b2), (W3, b3) = params
    # conv1: (64,3,4,4) -> (4*4*8, 128), padded input & output channels
    w0 = jnp.pad(W0, ((0, _N0_PAD - W0.shape[0]), (0, _C_IN_PAD - W0.shape[1]),
                      (0, 0), (0, 0)))
    w0f = jnp.transpose(w0, (2, 3, 1, 0)).reshape(_KK * _C_IN_PAD, _N0_PAD)
    b0r = jnp.pad(b0, (0, _N0_PAD - b0.shape[0])).reshape(1, _N0_PAD)
    # conv2: (128,64,4,4) -> (16*128, 128) im2col weights, padded input channels
    w1 = jnp.pad(W1, ((0, 0), (0, _N0_PAD - W1.shape[1]), (0, 0), (0, 0)))
    w1f = jnp.transpose(w1, (2, 3, 1, 0)).reshape(_KK * _N0_PAD, 128)
    b1r = b1.reshape(1, 128)
    # conv3: (256,128,4,4) -> (16*128, 256) im2col weights
    w2f = jnp.transpose(W2, (2, 3, 1, 0)).reshape(_KK * 128, 256)
    b2r = b2.reshape(1, 256)
    # conv4 head: (1,256,4,4) -> (16, 256), consumed on the VPU (kept f32)
    w3f = jnp.transpose(W3, (2, 3, 1, 0)).reshape(_KK, 256)
    b3r = b3.reshape(1, 1)
    return (w0f.astype(jnp.bfloat16), b0r.astype(jnp.float32),
            w1f.astype(jnp.bfloat16), b1r.astype(jnp.float32),
            w2f.astype(jnp.bfloat16), b2r.astype(jnp.float32),
            w3f.astype(jnp.float32), b3r.astype(jnp.float32))


def discriminator_forward(x, prepared):
    """x: (B, 3, H, W) float32 NCHW -> (B, 1) float32 (matches Discriminator)."""
    (w0f, b0r, w1f, b1r, w2f, b2r, w3f, b3r) = prepared
    B, _, H, W = x.shape
    assert H % 8 == 0 and W % 8 == 0 and H >= 32 and W >= 32, (H, W)
    H1, W1 = H // 2, W // 2          # conv1 output (k4, s2, p1)
    H2, W2 = H1 // 2, W1 // 2        # conv2 output
    H3, W3 = H2 // 2, W2 // 2        # conv3 output

    p0 = _im2col_input(x, H1, W1)                         # (B, H1*W1, 128) bf16
    s2 = _make_gather_mats(H1, W1, H2, W2)                # (16, H2*W2, H1*W1)
    s3 = _make_gather_mats(H2, W2, H3, W3)                # (16, H3*W3, H2*W2)
    # fold head conv + adaptive average pool into per-row weights (once per call)
    w3e = jnp.dot(_make_head_combine(H3, W3), w3f)        # (H3*W3, 256) f32

    def full(shape):   # whole-array (constant) block, kept VMEM-resident
        return pl.BlockSpec(shape, lambda b: (0,) * len(shape))

    out = pl.pallas_call(
        _disc_kernel,
        out_shape=jax.ShapeDtypeStruct((B, 1, 1), jnp.float32),
        grid=(B,),
        in_specs=[
            pl.BlockSpec((1, H1 * W1, _KK * _C_IN_PAD), lambda b: (b, 0, 0)),
            full((_KK * _C_IN_PAD, _N0_PAD)),             # w0
            full((1, _N0_PAD)),                           # b0
            full((_KK * _N0_PAD, 128)),                   # w1 (im2col layout)
            full((1, 128)),                               # b1
            full((_KK * 128, 256)),                       # w2 (im2col layout)
            full((1, 256)),                               # b2
            full((H3 * W3, 256)),                         # w3_eff (head+pool folded)
            full((1, 1)),                                 # b3
            full((_KK, H2 * W2, H1 * W1)),                # S gather mats, conv2
            full((_KK, H3 * W3, H2 * W2)),                # S gather mats, conv3
        ],
        out_specs=pl.BlockSpec((1, 1, 1), lambda b: (b, 0, 0)),
        compiler_params=pltpu.CompilerParams(
            dimension_semantics=("parallel",),   # batch splits across TCs on v7x
            vmem_limit_bytes=32 * 1024 * 1024,
        ),
    )(p0, w0f, b0r, w1f, b1r, w2f, b2r, w3e, b3r, s2, s3)
    return out.reshape(B, 1)


# ---------------------------------------------------------------------------
# Parameter init (PyTorch Conv2d default) and a pure-JAX reference
# ---------------------------------------------------------------------------
def init_params(key):
    params = []
    for i, (co, ci, kh, kw, _, _) in enumerate(_CONV_SPECS):
        k_w, k_b = jax.random.split(jax.random.fold_in(key, i))
        bound = 1.0 / jnp.sqrt(jnp.float32(ci * kh * kw))
        Wt = jax.random.uniform(k_w, (co, ci, kh, kw), jnp.float32, -bound, bound)
        bt = jax.random.uniform(k_b, (co,), jnp.float32, -bound, bound)
        params.append((Wt, bt))
    return params


def discriminator_reference(x, params):
    h = x.astype(jnp.float32)
    dn = ("NCHW", "OIHW", "NCHW")
    for layer in range(4):
        Wt, bt = params[layer]
        _, _, _, _, stride, pad = _CONV_SPECS[layer]
        h = jax.lax.conv_general_dilated(
            h, Wt, window_strides=(stride, stride),
            padding=[(pad, pad), (pad, pad)], dimension_numbers=dn)
        h = h + bt.reshape(1, -1, 1, 1)
        if layer < 3:
            h = jnp.where(h >= 0.0, h, _SLOPE * h)
    h = jnp.mean(h, axis=(2, 3), keepdims=True)           # AdaptiveAvgPool2d((1,1))
    return jax.nn.sigmoid(h).reshape(x.shape[0], -1)


# ---------------------------------------------------------------------------
if __name__ == "__main__":
    key = jax.random.PRNGKey(0)
    k_x, k_p = jax.random.split(key)

    # small DCGAN-style input: batch=2, RGB 32x32 (NCHW, like PyTorch)
    x = jax.random.normal(k_x, (2, 3, 32, 32), dtype=jnp.float32)
    params = init_params(k_p)
    prepared = prepare_params(params)          # one-time weight prep (hoisted)

    fwd = jax.jit(discriminator_forward)
    out = jax.block_until_ready(fwd(x, prepared))
    ref = jax.block_until_ready(discriminator_reference(x, params))

    assert out.shape == (2, 1), out.shape
    assert out.dtype == jnp.float32
    assert bool(jnp.all(jnp.isfinite(out)))
    # bf16 MXU inputs (f32 accumulation) -> compare at bf16-level tolerance
    assert bool(jnp.allclose(out, ref, rtol=2e-2, atol=2e-2)), (out, ref)

    print("KERNEL_OK")
</pallas_src>

<mosaic_0001>
module attributes {stable_mosaic.version = 11 : i64} {
  func.func @_disc_kernel(%arg0: i32, %arg1: memref<1x256x128xbf16, #tpu.memory_space<vmem>>, %arg2: memref<128x128xbf16, #tpu.memory_space<vmem>>, %arg3: memref<1x128xf32, #tpu.memory_space<vmem>>, %arg4: memref<2048x128xbf16, #tpu.memory_space<vmem>>, %arg5: memref<1x128xf32, #tpu.memory_space<vmem>>, %arg6: memref<2048x256xbf16, #tpu.memory_space<vmem>>, %arg7: memref<1x256xf32, #tpu.memory_space<vmem>>, %arg8: memref<16x256xf32, #tpu.memory_space<vmem>>, %arg9: memref<1x1xf32, #tpu.memory_space<vmem>>, %arg10: memref<16x64x256xbf16, #tpu.memory_space<vmem>>, %arg11: memref<16x16x64xbf16, #tpu.memory_space<vmem>>, %arg12: memref<1x1x1xf32, #tpu.memory_space<vmem>>) attributes {dimension_semantics = [#tpu.dimension_semantics<parallel>], iteration_bounds = array<i64: 2>, scalar_prefetch = 0 : i64, scratch_operands = 0 : i64, tpu.core_type = #tpu.core_type<tc>, window_params = [{transform_indices = @transform_0, window_bounds = array<i64: 1, 256, 128>}, {pipeline_mode = #tpu.pipeline_mode<synchronous>, transform_indices = @transform_1, window_bounds = array<i64: 128, 128>}, {pipeline_mode = #tpu.pipeline_mode<synchronous>, transform_indices = @transform_2, window_bounds = array<i64: 1, 128>}, {pipeline_mode = #tpu.pipeline_mode<synchronous>, transform_indices = @transform_3, window_bounds = array<i64: 2048, 128>}, {pipeline_mode = #tpu.pipeline_mode<synchronous>, transform_indices = @transform_4, window_bounds = array<i64: 1, 128>}, {pipeline_mode = #tpu.pipeline_mode<synchronous>, transform_indices = @transform_5, window_bounds = array<i64: 2048, 256>}, {pipeline_mode = #tpu.pipeline_mode<synchronous>, transform_indices = @transform_6, window_bounds = array<i64: 1, 256>}, {pipeline_mode = #tpu.pipeline_mode<synchronous>, transform_indices = @transform_7, window_bounds = array<i64: 16, 256>}, {pipeline_mode = #tpu.pipeline_mode<synchronous>, transform_indices = @transform_8, window_bounds = array<i64: 1, 1>}, {pipeline_mode = #tpu.pipeline_mode<synchronous>, transform_indices = @transform_9, window_bounds = array<i64: 16, 64, 256>}, {pipeline_mode = #tpu.pipeline_mode<synchronous>, transform_indices = @transform_10, window_bounds = array<i64: 16, 16, 64>}, {transform_indices = @transform_11, window_bounds = array<i64: 1, 1, 1>}]} {
    %c0 = arith.constant 0 : index
    %c0_0 = arith.constant 0 : index
    %c0_1 = arith.constant 0 : index
    %0 = vector.load %arg1[%c0, %c0_0, %c0_1] : memref<1x256x128xbf16, #tpu.memory_space<vmem>>, vector<1x256x128xbf16>
    %1 = vector.shape_cast %0 : vector<1x256x128xbf16> to vector<256x128xbf16>
    %c0_2 = arith.constant 0 : index
    %c0_3 = arith.constant 0 : index
    %2 = vector.load %arg2[%c0_2, %c0_3] : memref<128x128xbf16, #tpu.memory_space<vmem>>, vector<128x128xbf16>
    %cst = arith.constant dense<0.000000e+00> : vector<256x128xf32>
    %3 = tpu.matmul %1, %2, %cst {dimension_numbers = #tpu.dot_dimension_numbers<[1], [0], [0], [1], [0, 0, 1, 1], [], []>} : vector<256x128xbf16>, vector<128x128xbf16>, vector<256x128xf32> -> vector<256x128xf32>
    %c0_4 = arith.constant 0 : index
    %c0_5 = arith.constant 0 : index
    %4 = vector.load %arg3[%c0_4, %c0_5] : memref<1x128xf32, #tpu.memory_space<vmem>>, vector<1x128xf32>
    %5 = vector.broadcast %4 : vector<1x128xf32> to vector<256x128xf32>
    %6 = arith.addf %3, %5 : vector<256x128xf32>
    %cst_6 = arith.constant 0.000000e+00 : f32
    %7 = vector.broadcast %cst_6 : f32 to vector<256x128xf32>
    %8 = arith.cmpf oge, %6, %7 : vector<256x128xf32>
    %cst_7 = arith.constant 2.000000e-01 : f32
    %9 = vector.broadcast %cst_7 : f32 to vector<256x128xf32>
    %10 = arith.mulf %9, %6 : vector<256x128xf32>
    %11 = arith.select %8, %6, %10 : vector<256x128xi1>, vector<256x128xf32>
    %12 = arith.truncf %11 : vector<256x128xf32> to vector<256x128xbf16>
    %c0_8 = arith.constant 0 : index
    %c0_9 = arith.constant 0 : index
    %c0_10 = arith.constant 0 : index
    %13 = vector.load %arg10[%c0_8, %c0_9, %c0_10] : memref<16x64x256xbf16, #tpu.memory_space<vmem>>, vector<1x64x256xbf16>
    %14 = vector.shape_cast %13 : vector<1x64x256xbf16> to vector<64x256xbf16>
    %cst_11 = arith.constant dense<0.000000e+00> : vector<64x128xf32>
    %15 = tpu.matmul %14, %12, %cst_11 {dimension_numbers = #tpu.dot_dimension_numbers<[1], [0], [0], [1], [0, 0, 1, 1], [], []>} : vector<64x256xbf16>, vector<256x128xbf16>, vector<64x128xf32> -> vector<64x128xf32>
    %16 = arith.truncf %15 : vector<64x128xf32> to vector<64x128xbf16>
    %c1 = arith.constant 1 : index
    %c0_12 = arith.constant 0 : index
    %c0_13 = arith.constant 0 : index
    %17 = vector.load %arg10[%c1, %c0_12, %c0_13] : memref<16x64x256xbf16, #tpu.memory_space<vmem>>, vector<1x64x256xbf16>
    %18 = vector.shape_cast %17 : vector<1x64x256xbf16> to vector<64x256xbf16>
    %cst_14 = arith.constant dense<0.000000e+00> : vector<64x128xf32>
    %19 = tpu.matmul %18, %12, %cst_14 {dimension_numbers = #tpu.dot_dimension_numbers<[1], [0], [0], [1], [0, 0, 1, 1], [], []>} : vector<64x256xbf16>, vector<256x128xbf16>, vector<64x128xf32> -> vector<64x128xf32>
    %20 = arith.truncf %19 : vector<64x128xf32> to vector<64x128xbf16>
    %c2 = arith.constant 2 : index
    %c0_15 = arith.constant 0 : index
    %c0_16 = arith.constant 0 : index
    %21 = vector.load %arg10[%c2, %c0_15, %c0_16] : memref<16x64x256xbf16, #tpu.memory_space<vmem>>, vector<1x64x256xbf16>
    %22 = vector.shape_cast %21 : vector<1x64x256xbf16> to vector<64x256xbf16>
    %cst_17 = arith.constant dense<0.000000e+00> : vector<64x128xf32>
    %23 = tpu.matmul %22, %12, %cst_17 {dimension_numbers = #tpu.dot_dimension_numbers<[1], [0], [0], [1], [0, 0, 1, 1], [], []>} : vector<64x256xbf16>, vector<256x128xbf16>, vector<64x128xf32> -> vector<64x128xf32>
    %24 = arith.truncf %23 : vector<64x128xf32> to vector<64x128xbf16>
    %c3 = arith.constant 3 : index
    %c0_18 = arith.constant 0 : index
    %c0_19 = arith.constant 0 : index
    %25 = vector.load %arg10[%c3, %c0_18, %c0_19] : memref<16x64x256xbf16, #tpu.memory_space<vmem>>, vector<1x64x256xbf16>
    %26 = vector.shape_cast %25 : vector<1x64x256xbf16> to vector<64x256xbf16>
    %cst_20 = arith.constant dense<0.000000e+00> : vector<64x128xf32>
    %27 = tpu.matmul %26, %12, %cst_20 {dimension_numbers = #tpu.dot_dimension_numbers<[1], [0], [0], [1], [0, 0, 1, 1], [], []>} : vector<64x256xbf16>, vector<256x128xbf16>, vector<64x128xf32> -> vector<64x128xf32>
    %28 = arith.truncf %27 : vector<64x128xf32> to vector<64x128xbf16>
    %c4 = arith.constant 4 : index
    %c0_21 = arith.constant 0 : index
    %c0_22 = arith.constant 0 : index
    %29 = vector.load %arg10[%c4, %c0_21, %c0_22] : memref<16x64x256xbf16, #tpu.memory_space<vmem>>, vector<1x64x256xbf16>
    %30 = vector.shape_cast %29 : vector<1x64x256xbf16> to vector<64x256xbf16>
    %cst_23 = arith.constant dense<0.000000e+00> : vector<64x128xf32>
    %31 = tpu.matmul %30, %12, %cst_23 {dimension_numbers = #tpu.dot_dimension_numbers<[1], [0], [0], [1], [0, 0, 1, 1], [], []>} : vector<64x256xbf16>, vector<256x128xbf16>, vector<64x128xf32> -> vector<64x128xf32>
    %32 = arith.truncf %31 : vector<64x128xf32> to vector<64x128xbf16>
    %c5 = arith.constant 5 : index
    %c0_24 = arith.constant 0 : index
    %c0_25 = arith.constant 0 : index
    %33 = vector.load %arg10[%c5, %c0_24, %c0_25] : memref<16x64x256xbf16, #tpu.memory_space<vmem>>, vector<1x64x256xbf16>
    %34 = vector.shape_cast %33 : vector<1x64x256xbf16> to vector<64x256xbf16>
    %cst_26 = arith.constant dense<0.000000e+00> : vector<64x128xf32>
    %35 = tpu.matmul %34, %12, %cst_26 {dimension_numbers = #tpu.dot_dimension_numbers<[1], [0], [0], [1], [0, 0, 1, 1], [], []>} : vector<64x256xbf16>, vector<256x128xbf16>, vector<64x128xf32> -> vector<64x128xf32>
    %36 = arith.truncf %35 : vector<64x128xf32> to vector<64x128xbf16>
    %c6 = arith.constant 6 : index
    %c0_27 = arith.constant 0 : index
    %c0_28 = arith.constant 0 : index
    %37 = vector.load %arg10[%c6, %c0_27, %c0_28] : memref<16x64x256xbf16, #tpu.memory_space<vmem>>, vector<1x64x256xbf16>
    %38 = vector.shape_cast %37 : vector<1x64x256xbf16> to vector<64x256xbf16>
    %cst_29 = arith.constant dense<0.000000e+00> : vector<64x128xf32>
    %39 = tpu.matmul %38, %12, %cst_29 {dimension_numbers = #tpu.dot_dimension_numbers<[1], [0], [0], [1], [0, 0, 1, 1], [], []>} : vector<64x256xbf16>, vector<256x128xbf16>, vector<64x128xf32> -> vector<64x128xf32>
    %40 = arith.truncf %39 : vector<64x128xf32> to vector<64x128xbf16>
    %c7 = arith.constant 7 : index
    %c0_30 = arith.constant 0 : index
    %c0_31 = arith.constant 0 : index
    %41 = vector.load %arg10[%c7, %c0_30, %c0_31] : memref<16x64x256xbf16, #tpu.memory_space<vmem>>, vector<1x64x256xbf16>
    %42 = vector.shape_cast %41 : vector<1x64x256xbf16> to vector<64x256xbf16>
    %cst_32 = arith.constant dense<0.000000e+00> : vector<64x128xf32>
    %43 = tpu.matmul %42, %12, %cst_32 {dimension_numbers = #tpu.dot_dimension_numbers<[1], [0], [0], [1], [0, 0, 1, 1], [], []>} : vector<64x256xbf16>, vector<256x128xbf16>, vector<64x128xf32> -> vector<64x128xf32>
    %44 = arith.truncf %43 : vector<64x128xf32> to vector<64x128xbf16>
    %c8 = arith.constant 8 : index
    %c0_33 = arith.constant 0 : index
    %c0_34 = arith.constant 0 : index
    %45 = vector.load %arg10[%c8, %c0_33, %c0_34] : memref<16x64x256xbf16, #tpu.memory_space<vmem>>, vector<1x64x256xbf16>
    %46 = vector.shape_cast %45 : vector<1x64x256xbf16> to vector<64x256xbf16>
    %cst_35 = arith.constant dense<0.000000e+00> : vector<64x128xf32>
    %47 = tpu.matmul %46, %12, %cst_35 {dimension_numbers = #tpu.dot_dimension_numbers<[1], [0], [0], [1], [0, 0, 1, 1], [], []>} : vector<64x256xbf16>, vector<256x128xbf16>, vector<64x128xf32> -> vector<64x128xf32>
    %48 = arith.truncf %47 : vector<64x128xf32> to vector<64x128xbf16>
    %c9 = arith.constant 9 : index
    %c0_36 = arith.constant 0 : index
    %c0_37 = arith.constant 0 : index
    %49 = vector.load %arg10[%c9, %c0_36, %c0_37] : memref<16x64x256xbf16, #tpu.memory_space<vmem>>, vector<1x64x256xbf16>
    %50 = vector.shape_cast %49 : vector<1x64x256xbf16> to vector<64x256xbf16>
    %cst_38 = arith.constant dense<0.000000e+00> : vector<64x128xf32>
    %51 = tpu.matmul %50, %12, %cst_38 {dimension_numbers = #tpu.dot_dimension_numbers<[1], [0], [0], [1], [0, 0, 1, 1], [], []>} : vector<64x256xbf16>, vector<256x128xbf16>, vector<64x128xf32> -> vector<64x128xf32>
    %52 = arith.truncf %51 : vector<64x128xf32> to vector<64x128xbf16>
    %c10 = arith.constant 10 : index
    %c0_39 = arith.constant 0 : index
    %c0_40 = arith.constant 0 : index
    %53 = vector.load %arg10[%c10, %c0_39, %c0_40] : memref<16x64x256xbf16, #tpu.memory_space<vmem>>, vector<1x64x256xbf16>
    %54 = vector.shape_cast %53 : vector<1x64x256xbf16> to vector<64x256xbf16>
    %cst_41 = arith.constant dense<0.000000e+00> : vector<64x128xf32>
    %55 = tpu.matmul %54, %12, %cst_41 {dimension_numbers = #tpu.dot_dimension_numbers<[1], [0], [0], [1], [0, 0, 1, 1], [], []>} : vector<64x256xbf16>, vector<256x128xbf16>, vector<64x128xf32> -> vector<64x128xf32>
    %56 = arith.truncf %55 : vector<64x128xf32> to vector<64x128xbf16>
    %c11 = arith.constant 11 : index
    %c0_42 = arith.constant 0 : index
    %c0_43 = arith.constant 0 : index
    %57 = vector.load %arg10[%c11, %c0_42, %c0_43] : memref<16x64x256xbf16, #tpu.memory_space<vmem>>, vector<1x64x256xbf16>
    %58 = vector.shape_cast %57 : vector<1x64x256xbf16> to vector<64x256xbf16>
    %cst_44 = arith.constant dense<0.000000e+00> : vector<64x128xf32>
    %59 = tpu.matmul %58, %12, %cst_44 {dimension_numbers = #tpu.dot_dimension_numbers<[1], [0], [0], [1], [0, 0, 1, 1], [], []>} : vector<64x256xbf16>, vector<256x128xbf16>, vector<64x128xf32> -> vector<64x128xf32>
    %60 = arith.truncf %59 : vector<64x128xf32> to vector<64x128xbf16>
    %c12 = arith.constant 12 : index
    %c0_45 = arith.constant 0 : index
    %c0_46 = arith.constant 0 : index
    %61 = vector.load %arg10[%c12, %c0_45, %c0_46] : memref<16x64x256xbf16, #tpu.memory_space<vmem>>, vector<1x64x256xbf16>
    %62 = vector.shape_cast %61 : vector<1x64x256xbf16> to vector<64x256xbf16>
    %cst_47 = arith.constant dense<0.000000e+00> : vector<64x128xf32>
    %63 = tpu.matmul %62, %12, %cst_47 {dimension_numbers = #tpu.dot_dimension_numbers<[1], [0], [0], [1], [0, 0, 1, 1], [], []>} : vector<64x256xbf16>, vector<256x128xbf16>, vector<64x128xf32> -> vector<64x128xf32>
    %64 = arith.truncf %63 : vector<64x128xf32> to vector<64x128xbf16>
    %c13 = arith.constant 13 : index
    %c0_48 = arith.constant 0 : index
    %c0_49 = arith.constant 0 : index
    %65 = vector.load %arg10[%c13, %c0_48, %c0_49] : memref<16x64x256xbf16, #tpu.memory_space<vmem>>, vector<1x64x256xbf16>
    %66 = vector.shape_cast %65 : vector<1x64x256xbf16> to vector<64x256xbf16>
    %cst_50 = arith.constant dense<0.000000e+00> : vector<64x128xf32>
    %67 = tpu.matmul %66, %12, %cst_50 {dimension_numbers = #tpu.dot_dimension_numbers<[1], [0], [0], [1], [0, 0, 1, 1], [], []>} : vector<64x256xbf16>, vector<256x128xbf16>, vector<64x128xf32> -> vector<64x128xf32>
    %68 = arith.truncf %67 : vector<64x128xf32> to vector<64x128xbf16>
    %c14 = arith.constant 14 : index
    %c0_51 = arith.constant 0 : index
    %c0_52 = arith.constant 0 : index
    %69 = vector.load %arg10[%c14, %c0_51, %c0_52] : memref<16x64x256xbf16, #tpu.memory_space<vmem>>, vector<1x64x256xbf16>
    %70 = vector.shape_cast %69 : vector<1x64x256xbf16> to vector<64x256xbf16>
    %cst_53 = arith.constant dense<0.000000e+00> : vector<64x128xf32>
    %71 = tpu.matmul %70, %12, %cst_53 {dimension_numbers = #tpu.dot_dimension_numbers<[1], [0], [0], [1], [0, 0, 1, 1], [], []>} : vector<64x256xbf16>, vector<256x128xbf16>, vector<64x128xf32> -> vector<64x128xf32>
    %72 = arith.truncf %71 : vector<64x128xf32> to vector<64x128xbf16>
    %c15 = arith.constant 15 : index
    %c0_54 = arith.constant 0 : index
    %c0_55 = arith.constant 0 : index
    %73 = vector.load %arg10[%c15, %c0_54, %c0_55] : memref<16x64x256xbf16, #tpu.memory_space<vmem>>, vector<1x64x256xbf16>
    %74 = vector.shape_cast %73 : vector<1x64x256xbf16> to vector<64x256xbf16>
    %cst_56 = arith.constant dense<0.000000e+00> : vector<64x128xf32>
    %75 = tpu.matmul %74, %12, %cst_56 {dimension_numbers = #tpu.dot_dimension_numbers<[1], [0], [0], [1], [0, 0, 1, 1], [], []>} : vector<64x256xbf16>, vector<256x128xbf16>, vector<64x128xf32> -> vector<64x128xf32>
    %76 = arith.truncf %75 : vector<64x128xf32> to vector<64x128xbf16>
    %77 = tpu.concatenate %16, %20, %24, %28, %32, %36, %40, %44, %48, %52, %56, %60, %64, %68, %72, %76 in 1 : vector<64x128xbf16>, vector<64x128xbf16>, vector<64x128xbf16>, vector<64x128xbf16>, vector<64x128xbf16>, vector<64x128xbf16>, vector<64x128xbf16>, vector<64x128xbf16>, vector<64x128xbf16>, vector<64x128xbf16>, vector<64x128xbf16>, vector<64x128xbf16>, vector<64x128xbf16>, vector<64x128xbf16>, vector<64x128xbf16>, vector<64x128xbf16> -> vector<64x2048xbf16>
    %c0_57 = arith.constant 0 : index
    %c0_58 = arith.constant 0 : index
    %78 = vector.load %arg4[%c0_57, %c0_58] : memref<2048x128xbf16, #tpu.memory_space<vmem>>, vector<2048x128xbf16>
    %cst_59 = arith.constant dense<0.000000e+00> : vector<64x128xf32>
    %79 = tpu.matmul %77, %78, %cst_59 {dimension_numbers = #tpu.dot_dimension_numbers<[1], [0], [0], [1], [0, 0, 1, 1], [], []>} : vector<64x2048xbf16>, vector<2048x128xbf16>, vector<64x128xf32> -> vector<64x128xf32>
    %c0_60 = arith.constant 0 : index
    %c0_61 = arith.constant 0 : index
    %80 = vector.load %arg5[%c0_60, %c0_61] : memref<1x128xf32, #tpu.memory_space<vmem>>, vector<1x128xf32>
    %81 = vector.broadcast %80 : vector<1x128xf32> to vector<64x128xf32>
    %82 = arith.addf %79, %81 : vector<64x128xf32>
    %cst_62 = arith.constant 0.000000e+00 : f32
    %83 = vector.broadcast %cst_62 : f32 to vector<64x128xf32>
    %84 = arith.cmpf oge, %82, %83 : vector<64x128xf32>
    %cst_63 = arith.constant 2.000000e-01 : f32
    %85 = vector.broadcast %cst_63 : f32 to vector<64x128xf32>
    %86 = arith.mulf %85, %82 : vector<64x128xf32>
    %87 = arith.select %84, %82, %86 : vector<64x128xi1>, vector<64x128xf32>
    %88 = arith.truncf %87 : vector<64x128xf32> to vector<64x128xbf16>
    %c0_64 = arith.constant 0 : index
    %c0_65 = arith.constant 0 : index
    %c0_66 = arith.constant 0 : index
    %89 = vector.load %arg11[%c0_64, %c0_65, %c0_66] : memref<16x16x64xbf16, #tpu.memory_space<vmem>>, vector<1x16x64xbf16>
    %90 = vector.shape_cast %89 : vector<1x16x64xbf16> to vector<16x64xbf16>
    %cst_67 = arith.constant dense<0.000000e+00> : vector<16x128xf32>
    %91 = tpu.matmul %90, %88, %cst_67 {dimension_numbers = #tpu.dot_dimension_numbers<[1], [0], [0], [1], [0, 0, 1, 1], [], []>} : vector<16x64xbf16>, vector<64x128xbf16>, vector<16x128xf32> -> vector<16x128xf32>
    %92 = arith.truncf %91 : vector<16x128xf32> to vector<16x128xbf16>
    %c1_68 = arith.constant 1 : index
    %c0_69 = arith.constant 0 : index
    %c0_70 = arith.constant 0 : index
    %93 = vector.load %arg11[%c1_68, %c0_69, %c0_70] : memref<16x16x64xbf16, #tpu.memory_space<vmem>>, vector<1x16x64xbf16>
    %94 = vector.shape_cast %93 : vector<1x16x64xbf16> to vector<16x64xbf16>
    %cst_71 = arith.constant dense<0.000000e+00> : vector<16x128xf32>
    %95 = tpu.matmul %94, %88, %cst_71 {dimension_numbers = #tpu.dot_dimension_numbers<[1], [0], [0], [1], [0, 0, 1, 1], [], []>} : vector<16x64xbf16>, vector<64x128xbf16>, vector<16x128xf32> -> vector<16x128xf32>
    %96 = arith.truncf %95 : vector<16x128xf32> to vector<16x128xbf16>
    %c2_72 = arith.constant 2 : index
    %c0_73 = arith.constant 0 : index
    %c0_74 = arith.constant 0 : index
    %97 = vector.load %arg11[%c2_72, %c0_73, %c0_74] : memref<16x16x64xbf16, #tpu.memory_space<vmem>>, vector<1x16x64xbf16>
    %98 = vector.shape_cast %97 : vector<1x16x64xbf16> to vector<16x64xbf16>
    %cst_75 = arith.constant dense<0.000000e+00> : vector<16x128xf32>
    %99 = tpu.matmul %98, %88, %cst_75 {dimension_numbers = #tpu.dot_dimension_numbers<[1], [0], [0], [1], [0, 0, 1, 1], [], []>} : vector<16x64xbf16>, vector<64x128xbf16>, vector<16x128xf32> -> vector<16x128xf32>
    %100 = arith.truncf %99 : vector<16x128xf32> to vector<16x128xbf16>
    %c3_76 = arith.constant 3 : index
    %c0_77 = arith.constant 0 : index
    %c0_78 = arith.constant 0 : index
    %101 = vector.load %arg11[%c3_76, %c0_77, %c0_78] : memref<16x16x64xbf16, #tpu.memory_space<vmem>>, vector<1x16x64xbf16>
    %102 = vector.shape_cast %101 : vector<1x16x64xbf16> to vector<16x64xbf16>
    %cst_79 = arith.constant dense<0.000000e+00> : vector<16x128xf32>
    %103 = tpu.matmul %102, %88, %cst_79 {dimension_numbers = #tpu.dot_dimension_numbers<[1], [0], [0], [1], [0, 0, 1, 1], [], []>} : vector<16x64xbf16>, vector<64x128xbf16>, vector<16x128xf32> -> vector<16x128xf32>
    %104 = arith.truncf %103 : vector<16x128xf32> to vector<16x128xbf16>
    %c4_80 = arith.constant 4 : index
    %c0_81 = arith.constant 0 : index
    %c0_82 = arith.constant 0 : index
    %105 = vector.load %arg11[%c4_80, %c0_81, %c0_82] : memref<16x16x64xbf16, #tpu.memory_space<vmem>>, vector<1x16x64xbf16>
    %106 = vector.shape_cast %105 : vector<1x16x64xbf16> to vector<16x64xbf16>
    %cst_83 = arith.constant dense<0.000000e+00> : vector<16x128xf32>
    %107 = tpu.matmul %106, %88, %cst_83 {dimension_numbers = #tpu.dot_dimension_numbers<[1], [0], [0], [1], [0, 0, 1, 1], [], []>} : vector<16x64xbf16>, vector<64x128xbf16>, vector<16x128xf32> -> vector<16x128xf32>
    %108 = arith.truncf %107 : vector<16x128xf32> to vector<16x128xbf16>
    %c5_84 = arith.constant 5 : index
    %c0_85 = arith.constant 0 : index
    %c0_86 = arith.constant 0 : index
    %109 = vector.load %arg11[%c5_84, %c0_85, %c0_86] : memref<16x16x64xbf16, #tpu.memory_space<vmem>>, vector<1x16x64xbf16>
    %110 = vector.shape_cast %109 : vector<1x16x64xbf16> to vector<16x64xbf16>
    %cst_87 = arith.constant dense<0.000000e+00> : vector<16x128xf32>
    %111 = tpu.matmul %110, %88, %cst_87 {dimension_numbers = #tpu.dot_dimension_numbers<[1], [0], [0], [1], [0, 0, 1, 1], [], []>} : vector<16x64xbf16>, vector<64x128xbf16>, vector<16x128xf32> -> vector<16x128xf32>
    %112 = arith.truncf %111 : vector<16x128xf32> to vector<16x128xbf16>
    %c6_88 = arith.constant 6 : index
    %c0_89 = arith.constant 0 : index
    %c0_90 = arith.constant 0 : index
    %113 = vector.load %arg11[%c6_88, %c0_89, %c0_90] : memref<16x16x64xbf16, #tpu.memory_space<vmem>>, vector<1x16x64xbf16>
    %114 = vector.shape_cast %113 : vector<1x16x64xbf16> to vector<16x64xbf16>
    %cst_91 = arith.constant dense<0.000000e+00> : vector<16x128xf32>
    %115 = tpu.matmul %114, %88, %cst_91 {dimension_numbers = #tpu.dot_dimension_numbers<[1], [0], [0], [1], [0, 0, 1, 1], [], []>} : vector<16x64xbf16>, vector<64x128xbf16>, vector<16x128xf32> -> vector<16x128xf32>
    %116 = arith.truncf %115 : vector<16x128xf32> to vector<16x128xbf16>
    %c7_92 = arith.constant 7 : index
    %c0_93 = arith.constant 0 : index
    %c0_94 = arith.constant 0 : index
    %117 = vector.load %arg11[%c7_92, %c0_93, %c0_94] : memref<16x16x64xbf16, #tpu.memory_space<vmem>>, vector<1x16x64xbf16>
    %118 = vector.shape_cast %117 : vector<1x16x64xbf16> to vector<16x64xbf16>
    %cst_95 = arith.constant dense<0.000000e+00> : vector<16x128xf32>
    %119 = tpu.matmul %118, %88, %cst_95 {dimension_numbers = #tpu.dot_dimension_numbers<[1], [0], [0], [1], [0, 0, 1, 1], [], []>} : vector<16x64xbf16>, vector<64x128xbf16>, vector<16x128xf32> -> vector<16x128xf32>
    %120 = arith.truncf %119 : vector<16x128xf32> to vector<16x128xbf16>
    %c8_96 = arith.constant 8 : index
    %c0_97 = arith.constant 0 : index
    %c0_98 = arith.constant 0 : index
    %121 = vector.load %arg11[%c8_96, %c0_97, %c0_98] : memref<16x16x64xbf16, #tpu.memory_space<vmem>>, vector<1x16x64xbf16>
    %122 = vector.shape_cast %121 : vector<1x16x64xbf16> to vector<16x64xbf16>
    %cst_99 = arith.constant dense<0.000000e+00> : vector<16x128xf32>
    %123 = tpu.matmul %122, %88, %cst_99 {dimension_numbers = #tpu.dot_dimension_numbers<[1], [0], [0], [1], [0, 0, 1, 1], [], []>} : vector<16x64xbf16>, vector<64x128xbf16>, vector<16x128xf32> -> vector<16x128xf32>
    %124 = arith.truncf %123 : vector<16x128xf32> to vector<16x128xbf16>
    %c9_100 = arith.constant 9 : index
    %c0_101 = arith.constant 0 : index
    %c0_102 = arith.constant 0 : index
    %125 = vector.load %arg11[%c9_100, %c0_101, %c0_102] : memref<16x16x64xbf16, #tpu.memory_space<vmem>>, vector<1x16x64xbf16>
    %126 = vector.shape_cast %125 : vector<1x16x64xbf16> to vector<16x64xbf16>
    %cst_103 = arith.constant dense<0.000000e+00> : vector<16x128xf32>
    %127 = tpu.matmul %126, %88, %cst_103 {dimension_numbers = #tpu.dot_dimension_numbers<[1], [0], [0], [1], [0, 0, 1, 1], [], []>} : vector<16x64xbf16>, vector<64x128xbf16>, vector<16x128xf32> -> vector<16x128xf32>
    %128 = arith.truncf %127 : vector<16x128xf32> to vector<16x128xbf16>
    %c10_104 = arith.constant 10 : index
    %c0_105 = arith.constant 0 : index
    %c0_106 = arith.constant 0 : index
    %129 = vector.load %arg11[%c10_104, %c0_105, %c0_106] : memref<16x16x64xbf16, #tpu.memory_space<vmem>>, vector<1x16x64xbf16>
    %130 = vector.shape_cast %129 : vector<1x16x64xbf16> to vector<16x64xbf16>
    %cst_107 = arith.constant dense<0.000000e+00> : vector<16x128xf32>
    %131 = tpu.matmul %130, %88, %cst_107 {dimension_numbers = #tpu.dot_dimension_numbers<[1], [0], [0], [1], [0, 0, 1, 1], [], []>} : vector<16x64xbf16>, vector<64x128xbf16>, vector<16x128xf32> -> vector<16x128xf32>
    %132 = arith.truncf %131 : vector<16x128xf32> to vector<16x128xbf16>
    %c11_108 = arith.constant 11 : index
    %c0_109 = arith.constant 0 : index
    %c0_110 = arith.constant 0 : index
    %133 = vector.load %arg11[%c11_108, %c0_109, %c0_110] : memref<16x16x64xbf16, #tpu.memory_space<vmem>>, vector<1x16x64xbf16>
    %134 = vector.shape_cast %133 : vector<1x16x64xbf16> to vector<16x64xbf16>
    %cst_111 = arith.constant dense<0.000000e+00> : vector<16x128xf32>
    %135 = tpu.matmul %134, %88, %cst_111 {dimension_numbers = #tpu.dot_dimension_numbers<[1], [0], [0], [1], [0, 0, 1, 1], [], []>} : vector<16x64xbf16>, vector<64x128xbf16>, vector<16x128xf32> -> vector<16x128xf32>
    %136 = arith.truncf %135 : vector<16x128xf32> to vector<16x128xbf16>
    %c12_112 = arith.constant 12 : index
    %c0_113 = arith.constant 0 : index
    %c0_114 = arith.constant 0 : index
    %137 = vector.load %arg11[%c12_112, %c0_113, %c0_114] : memref<16x16x64xbf16, #tpu.memory_space<vmem>>, vector<1x16x64xbf16>
    %138 = vector.shape_cast %137 : vector<1x16x64xbf16> to vector<16x64xbf16>
    %cst_115 = arith.constant dense<0.000000e+00> : vector<16x128xf32>
    %139 = tpu.matmul %138, %88, %cst_115 {dimension_numbers = #tpu.dot_dimension_numbers<[1], [0], [0], [1], [0, 0, 1, 1], [], []>} : vector<16x64xbf16>, vector<64x128xbf16>, vector<16x128xf32> -> vector<16x128xf32>
    %140 = arith.truncf %139 : vector<16x128xf32> to vector<16x128xbf16>
    %c13_116 = arith.constant 13 : index
    %c0_117 = arith.constant 0 : index
    %c0_118 = arith.constant 0 : index
    %141 = vector.load %arg11[%c13_116, %c0_117, %c0_118] : memref<16x16x64xbf16, #tpu.memory_space<vmem>>, vector<1x16x64xbf16>
    %142 = vector.shape_cast %141 : vector<1x16x64xbf16> to vector<16x64xbf16>
    %cst_119 = arith.constant dense<0.000000e+00> : vector<16x128xf32>
    %143 = tpu.matmul %142, %88, %cst_119 {dimension_numbers = #tpu.dot_dimension_numbers<[1], [0], [0], [1], [0, 0, 1, 1], [], []>} : vector<16x64xbf16>, vector<64x128xbf16>, vector<16x128xf32> -> vector<16x128xf32>
    %144 = arith.truncf %143 : vector<16x128xf32> to vector<16x128xbf16>
    %c14_120 = arith.constant 14 : index
    %c0_121 = arith.constant 0 : index
    %c0_122 = arith.constant 0 : index
    %145 = vector.load %arg11[%c14_120, %c0_121, %c0_122] : memref<16x16x64xbf16, #tpu.memory_space<vmem>>, vector<1x16x64xbf16>
    %146 = vector.shape_cast %145 : vector<1x16x64xbf16> to vector<16x64xbf16>
    %cst_123 = arith.constant dense<0.000000e+00> : vector<16x128xf32>
    %147 = tpu.matmul %146, %88, %cst_123 {dimension_numbers = #tpu.dot_dimension_numbers<[1], [0], [0], [1], [0, 0, 1, 1], [], []>} : vector<16x64xbf16>, vector<64x128xbf16>, vector<16x128xf32> -> vector<16x128xf32>
    %148 = arith.truncf %147 : vector<16x128xf32> to vector<16x128xbf16>
    %c15_124 = arith.constant 15 : index
    %c0_125 = arith.constant 0 : index
    %c0_126 = arith.constant 0 : index
    %149 = vector.load %arg11[%c15_124, %c0_125, %c0_126] : memref<16x16x64xbf16, #tpu.memory_space<vmem>>, vector<1x16x64xbf16>
    %150 = vector.shape_cast %149 : vector<1x16x64xbf16> to vector<16x64xbf16>
    %cst_127 = arith.constant dense<0.000000e+00> : vector<16x128xf32>
    %151 = tpu.matmul %150, %88, %cst_127 {dimension_numbers = #tpu.dot_dimension_numbers<[1], [0], [0], [1], [0, 0, 1, 1], [], []>} : vector<16x64xbf16>, vector<64x128xbf16>, vector<16x128xf32> -> vector<16x128xf32>
    %152 = arith.truncf %151 : vector<16x128xf32> to vector<16x128xbf16>
    %153 = tpu.concatenate %92, %96, %100, %104, %108, %112, %116, %120, %124, %128, %132, %136, %140, %144, %148, %152 in 1 : vector<16x128xbf16>, vector<16x128xbf16>, vector<16x128xbf16>, vector<16x128xbf16>, vector<16x128xbf16>, vector<16x128xbf16>, vector<16x128xbf16>, vector<16x128xbf16>, vector<16x128xbf16>, vector<16x128xbf16>, vector<16x128xbf16>, vector<16x128xbf16>, vector<16x128xbf16>, vector<16x128xbf16>, vector<16x128xbf16>, vector<16x128xbf16> -> vector<16x2048xbf16>
    %c0_128 = arith.constant 0 : index
    %c0_129 = arith.constant 0 : index
    %154 = vector.load %arg6[%c0_128, %c0_129] : memref<2048x256xbf16, #tpu.memory_space<vmem>>, vector<2048x256xbf16>
    %cst_130 = arith.constant dense<0.000000e+00> : vector<16x256xf32>
    %155 = tpu.matmul %153, %154, %cst_130 {dimension_numbers = #tpu.dot_dimension_numbers<[1], [0], [0], [1], [0, 0, 1, 1], [], []>} : vector<16x2048xbf16>, vector<2048x256xbf16>, vector<16x256xf32> -> vector<16x256xf32>
    %c0_131 = arith.constant 0 : index
    %c0_132 = arith.constant 0 : index
    %156 = vector.load %arg7[%c0_131, %c0_132] : memref<1x256xf32, #tpu.memory_space<vmem>>, vector<1x256xf32>
    %157 = vector.broadcast %156 : vector<1x256xf32> to vector<16x256xf32>
    %158 = arith.addf %155, %157 : vector<16x256xf32>
    %cst_133 = arith.constant 0.000000e+00 : f32
    %159 = vector.broadcast %cst_133 : f32 to vector<16x256xf32>
    %160 = arith.cmpf oge, %158, %159 : vector<16x256xf32>
    %cst_134 = arith.constant 2.000000e-01 : f32
    %161 = vector.broadcast %cst_134 : f32 to vector<16x256xf32>
    %162 = arith.mulf %161, %158 : vector<16x256xf32>
    %163 = arith.select %160, %158, %162 : vector<16x256xi1>, vector<16x256xf32>
    %c0_135 = arith.constant 0 : index
    %c0_136 = arith.constant 0 : index
    %164 = vector.load %arg8[%c0_135, %c0_136] : memref<16x256xf32, #tpu.memory_space<vmem>>, vector<16x256xf32>
    %165 = arith.mulf %163, %164 : vector<16x256xf32>
    %cst_137 = arith.constant dense<0.000000e+00> : vector<16xf32>
    %166 = vector.multi_reduction <add>, %165, %cst_137 [1] : vector<16x256xf32> to vector<16xf32>
    %167 = vector.shape_cast %166 : vector<16xf32> to vector<16x1xf32>
    %cst_138 = arith.constant dense<0.000000e+00> : vector<1xf32>
    %168 = vector.multi_reduction <add>, %167, %cst_138 [0] : vector<16x1xf32> to vector<1xf32>
    %169 = vector.shape_cast %168 : vector<1xf32> to vector<1x1xf32>
    %c0_139 = arith.constant 0 : index
    %c0_140 = arith.constant 0 : index
    %170 = vector.load %arg9[%c0_139, %c0_140] : memref<1x1xf32, #tpu.memory_space<vmem>>, vector<1x1xf32>
    %171 = arith.addf %169, %170 : vector<1x1xf32>
    %cst_141 = arith.constant 0.000000e+00 : f32
    %172 = vector.broadcast %cst_141 : f32 to vector<1x1xf32>
    %173 = arith.subf %172, %171 : vector<1x1xf32>
    %174 = math.exp %173 : vector<1x1xf32>
    %cst_142 = arith.constant 1.000000e+00 : f32
    %175 = vector.broadcast %cst_142 : f32 to vector<1x1xf32>
    %176 = arith.addf %175, %174 : vector<1x1xf32>
    %cst_143 = arith.constant 1.000000e+00 : f32
    %177 = vector.broadcast %cst_143 : f32 to vector<1x1xf32>
    %178 = arith.divf %177, %176 : vector<1x1xf32>
    %c0_144 = arith.constant 0 : index
    %c0_145 = arith.constant 0 : index
    %c0_146 = arith.constant 0 : index
    %179 = vector.load %arg12[%c0_144, %c0_145, %c0_146] : memref<1x1x1xf32, #tpu.memory_space<vmem>>, vector<1x1x1xf32>
    %180 = vector.shape_cast %179 : vector<1x1x1xf32> to vector<1x1xf32>
    %181 = vector.shape_cast %178 : vector<1x1xf32> to vector<1x1x1xf32>
    tpu.vector_store %arg12[%c0_144, %c0_145, %c0_146], %181 {strides = array<i32>} : memref<1x1x1xf32, #tpu.memory_space<vmem>>, vector<1x1x1xf32>,
    return
  }
  func.func @transform_0(%arg0: i32) -> (i32, i32, i32) {
    %c0_i32 = arith.constant 0 : i32
    %c0_i32_0 = arith.constant 0 : i32
    %c0_i32_1 = arith.constant 0 : i32
    return %arg0, %c0_i32, %c0_i32_0 : i32, i32, i32
  }
  func.func @transform_1(%arg0: i32) -> (i32, i32) {
    %c0_i32 = arith.constant 0 : i32
    %c0_i32_0 = arith.constant 0 : i32
    %c0_i32_1 = arith.constant 0 : i32
    return %c0_i32, %c0_i32_0 : i32, i32
  }
  func.func @transform_2(%arg0: i32) -> (i32, i32) {
    %c0_i32 = arith.constant 0 : i32
    %c0_i32_0 = arith.constant 0 : i32
    %c0_i32_1 = arith.constant 0 : i32
    return %c0_i32, %c0_i32_0 : i32, i32
  }
  func.func @transform_3(%arg0: i32) -> (i32, i32) {
    %c0_i32 = arith.constant 0 : i32
    %c0_i32_0 = arith.constant 0 : i32
    %c0_i32_1 = arith.constant 0 : i32
    return %c0_i32, %c0_i32_0 : i32, i32
  }
  func.func @transform_4(%arg0: i32) -> (i32, i32) {
    %c0_i32 = arith.constant 0 : i32
    %c0_i32_0 = arith.constant 0 : i32
    %c0_i32_1 = arith.constant 0 : i32
    return %c0_i32, %c0_i32_0 : i32, i32
  }
  func.func @transform_5(%arg0: i32) -> (i32, i32) {
    %c0_i32 = arith.constant 0 : i32
    %c0_i32_0 = arith.constant 0 : i32
    %c0_i32_1 = arith.constant 0 : i32
    return %c0_i32, %c0_i32_0 : i32, i32
  }
  func.func @transform_6(%arg0: i32) -> (i32, i32) {
    %c0_i32 = arith.constant 0 : i32
    %c0_i32_0 = arith.constant 0 : i32
    %c0_i32_1 = arith.constant 0 : i32
    return %c0_i32, %c0_i32_0 : i32, i32
  }
  func.func @transform_7(%arg0: i32) -> (i32, i32) {
    %c0_i32 = arith.constant 0 : i32
    %c0_i32_0 = arith.constant 0 : i32
    %c0_i32_1 = arith.constant 0 : i32
    return %c0_i32, %c0_i32_0 : i32, i32
  }
  func.func @transform_8(%arg0: i32) -> (i32, i32) {
    %c0_i32 = arith.constant 0 : i32
    %c0_i32_0 = arith.constant 0 : i32
    %c0_i32_1 = arith.constant 0 : i32
    return %c0_i32, %c0_i32_0 : i32, i32
  }
  func.func @transform_9(%arg0: i32) -> (i32, i32, i32) {
    %c0_i32 = arith.constant 0 : i32
    %c0_i32_0 = arith.constant 0 : i32
    %c0_i32_1 = arith.constant 0 : i32
    %c0_i32_2 = arith.constant 0 : i32
    return %c0_i32, %c0_i32_0, %c0_i32_1 : i32, i32, i32
  }
  func.func @transform_10(%arg0: i32) -> (i32, i32, i32) {
    %c0_i32 = arith.constant 0 : i32
    %c0_i32_0 = arith.constant 0 : i32
    %c0_i32_1 = arith.constant 0 : i32
    %c0_i32_2 = arith.constant 0 : i32
    return %c0_i32, %c0_i32_0, %c0_i32_1 : i32, i32, i32
  }
  func.func @transform_11(%arg0: i32) -> (i32, i32, i32) {
    %c0_i32 = arith.constant 0 : i32
    %c0_i32_0 = arith.constant 0 : i32
    %c0_i32_1 = arith.constant 0 : i32
    return %arg0, %c0_i32, %c0_i32_0 : i32, i32, i32
  }
}

</mosaic_0001>

<bundles_post_ra>
// kernel: discriminator_forward.1
= control target key start
LH: loop header
LB: loop body
LE: loop exit
PB: predicated region body
PF: predicated region fallthrough
CT: control target
= control target key end

     0   :  { %s10051_s19 = smov 0   ;;  %s12612_s0 = inlined_call_operand.vmem [shape: bf16[2,256,128], index: 0, kind: input, shape index: {}]   ;;  %s12613_s1 = inlined_call_operand.vmem [shape: bf16[128,128], index: 1, kind: input, shape index: {}]   ;;  %s12614_s2 = inlined_call_operand.vmem [shape: f32[1,128], index: 2, kind: input, shape index: {}]   ;;  %s12615_s3 = inlined_call_operand.vmem [shape: bf16[2048,128], index: 3, kind: input, shape index: {}]   ;;  %s12616_s4 = inlined_call_operand.vmem [shape: f32[1,128], index: 4, kind: input, shape index: {}]   ;;  %s12617_s5 = inlined_call_operand.vmem [shape: bf16[2048,256], index: 5, kind: input, shape index: {}]   ;;  %s12618_s6 = inlined_call_operand.vmem [shape: f32[1,256], index: 6, kind: input, shape index: {}]   ;;  %s12619_s7 = inlined_call_operand.vmem [shape: f32[16,256], index: 7, kind: input, shape index: {}]   ;;  %s12620_s8 = inlined_call_operand.<no memory space> [shape: f32[1,1], index: 8, kind: input, shape index: {}]   ;;  %s12621_s9 = inlined_call_operand.vmem [shape: bf16[16,64,256], index: 9, kind: input, shape index: {}]   ;;  %s12622_s10 = inlined_call_operand.vmem [shape: bf16[16,16,64], index: 10, kind: input, shape index: {}]   ;;  %s12623_s11 = inlined_call_operand.vmem [shape: f32[2,1,1], index: 11, kind: output, shape index: {}]  }
   0x1   :  { %v16_v0 = vstv %s12620_s8 }
   0x2   :  { %17 = vst [vmem:[#allocation2] sm:$0x1] %v16_v0 }
   0x3 LB: > { %s7154_s20 = sadd.s32 4294967295, %s9984_s19   ;;  %p7158_p0 = scmp.ge.s32.totalorder %s9984_s19, 1  ;;  %s9984_s19 = sphi %s10051_s19, %s23_s19  }
   0x4   : > { %p339_p1 = scmp.lt.s32.totalorder %s9984_s19, 3 }
   0x6   : > { %p340_p2 = pnand %p7158_p0, %p339_p1 }
   0x7   : > { %v9230_v1 = vld [vmem:[%s12613_s1] sm:$0xff] (!%p340_p2)   ;;  %p377_p3 = scmp.lt.s32.totalorder (!%p340_p2), %s7154_s20, 1  ;;  %v9231_v2 = vld [vmem:[%s12613_s1 + $0x8] sm:$0xff] (!%p340_p2)   ;;  %v9232_v3 = vld [vmem:[%s12613_s1 + $0x10] sm:$0xff] (!%p340_p2)  }
   0x8   : > { %343 = sbr.rel (%p340_p2) target bundleno = 1988 (0x7c4), region = 64  ;;  %8948 = vmatprep.subr.bf16.mxu1 (!%p340_p2), %v9230_v1  ;;  %v9233_v4 = vld [vmem:[%s12613_s1 + $0x18] sm:$0xff] (!%p340_p2)   ;;  %v9234_v6 = vld [vmem:[%s12613_s1 + $0x20] sm:$0xff] (!%p340_p2)   ;;  %v9235_v7 = vld [vmem:[%s12613_s1 + $0x28] sm:$0xff] (!%p340_p2)  }
   0x9   : > { %8949 = vmatpush3.bf16.msra.mxu1 (!%p340_p2), %v9230_v1  ;;  %v9236_v8 = vld [vmem:[%s12613_s1 + $0x30] sm:$0xff] (!%p340_p2)   ;;  %v9237_v9 = vld [vmem:[%s12613_s1 + $0x38] sm:$0xff] (!%p340_p2)   ;;  %v9256_v25 = vld [vmem:[%s12621_s9 + $0x4] ss:$8 sps:$4 sm:$0xff] (!%p340_p2)  }
   0xa   : > { %8950 = vmatprep.subr.bf16.mxu1 (!%p340_p2), %v9231_v2  ;;  %v9259_v26 = vld [vmem:[%s12621_s9 + $0x84] ss:$8 sps:$4 sm:$0xff] (!%p340_p2)   ;;  %v10116_v27 = vld [vmem:[%s12614_s2] ss:$0 sm:$0xff] (!%p340_p2) }
   0xb   : > { %1174 = vmatprep.mubr.bf16.mxu0 (!%p340_p2), %v9259_v26 }
   0xd   : > { %8951 = vmatpush3.bf16.msra.mxu1 (!%p340_p2), %v9231_v2 }
   0xe   : > { %8952 = vmatprep.subr.bf16.mxu1 (!%p340_p2), %v9232_v3 }
   0xf   : > { %s12625_s20 = smov (!%p377_p3, %s7154_s20), 1 }
  0x10   : > { %s7883_s26 = sshll.u32 %s12625_s20, 7  ;;  %s384_s13 = scalar_lea.vmem %s12623_s11, %s12625_s20 }
  0x11   : > { %s10074_s29 = scalar_lea.vmem %s12612_s0, %s7883_s26  ;;  %8953 = vmatpush3.bf16.msra.mxu1 %v9232_v3 }
  0x12   : > { %v9238_v5 = vld [vmem:[%s10074_s29] sm:$0xff]   ;;  %8954 = vmatprep.subr.bf16.mxu1 %v9233_v4  ;;  %v9239_v10 = vld [vmem:[%s10074_s29 + $0x8] sm:$0xff]   ;;  %v9240_v11 = vld [vmem:[%s10074_s29 + $0x10] sm:$0xff]  }
  0x13   : > { %8964 = vmatprep.mubr.bf16.mxu1 %v9238_v5  ;;  %v9241_v12 = vld [vmem:[%s10074_s29 + $0x18] sm:$0xff]   ;;  %v9242_v13 = vld [vmem:[%s10074_s29 + $0x20] sm:$0xff]   ;;  %v9243_v14 = vld [vmem:[%s10074_s29 + $0x28] sm:$0xff]  }
  0x14   : > { %v9244_v15 = vld [vmem:[%s10074_s29 + $0x30] sm:$0xff]   ;;  %v9245_v16 = vld [vmem:[%s10074_s29 + $0x38] sm:$0xff]   ;;  %v9246_v17 = vld [vmem:[%s10074_s29 + $0x40] sm:$0xff]  }
  0x15   : > { %8955 = vmatpush3.bf16.msra.mxu1 %v9233_v4  ;;  %v9247_v18 = vld [vmem:[%s10074_s29 + $0x48] sm:$0xff]   ;;  %v9248_v19 = vld [vmem:[%s10074_s29 + $0x50] sm:$0xff]   ;;  %v9249_v20 = vld [vmem:[%s10074_s29 + $0x58] sm:$0xff]  }
  0x16   : > { %8956 = vmatprep.subr.bf16.mxu1 %v9234_v6  ;;  %v9250_v21 = vld [vmem:[%s10074_s29 + $0x60] sm:$0xff]   ;;  %v9251_v22 = vld [vmem:[%s10074_s29 + $0x68] sm:$0xff]   ;;  %v9252_v23 = vld [vmem:[%s10074_s29 + $0x70] sm:$0xff]  }
  0x17   : > { %v9253_v24 = vld [vmem:[%s10074_s29 + $0x78] sm:$0xff]  }
  0x19   : > { %8957 = vmatpush3.bf16.msra.mxu1 %v9234_v6 }
  0x1a   : > { %8958 = vmatprep.subr.bf16.mxu1 %v9235_v7 }
  0x1d   : > { %8959 = vmatpush3.bf16.msra.mxu1 %v9235_v7 }
  0x1e   : > { %8960 = vmatprep.subr.bf16.mxu1 %v9236_v8 }
  0x21   : > { %8961 = vmatpush3.bf16.msra.mxu1 %v9236_v8 }
  0x22   : > { %8962 = vmatprep.subr.bf16.mxu1 %v9237_v9 }
  0x25   : > { %8963 = vmatpush3.bf16.msra.mxu1 %v9237_v9 }
  0x28   : > { %8965 = vmatmul.mubr.bf16.vlgmr.msra.gmra.mrb[0].mxu1 %v9239_v10 }
  0x29   : > { %8968 = vmatprep.mubr.bf16.mxu1 %v9240_v11 }
  0x30   : > { %8969 = vmatmul.mubr.bf16.gmra.mrb[4].mxu1 %v9241_v12 }
  0x31   : > { %8972 = vmatprep.mubr.bf16.mxu1 %v9242_v13 }
  0x38   : > { %8973 = vmatmul.mubr.bf16.gmra.mrb[8].mxu1 %v9243_v14 }
  0x39   : > { %8976 = vmatprep.mubr.bf16.mxu1 %v9244_v15 }
  0x40   : > { %8977 = vmatmul.mubr.bf16.gmra.mrb[12].mxu1 %v9245_v16 }
  0x41   : > { %8980 = vmatprep.mubr.bf16.mxu1 %v9246_v17 }
  0x48   : > { %8981 = vmatmul.mubr.bf16.gmra.mrb[16].mxu1 %v9247_v18 }
  0x49   : > { %8984 = vmatprep.mubr.bf16.mxu1 %v9248_v19 }
  0x50   : > { %8985 = vmatmul.mubr.bf16.gmra.mrb[20].mxu1 %v9249_v20 }
  0x51   : > { %8988 = vmatprep.mubr.bf16.mxu1 %v9250_v21 }
  0x58   : > { %8989 = vmatmul.mubr.bf16.gmra.mrb[24].mxu1 %v9251_v22 }
  0x59   : > { %8992 = vmatprep.mubr.bf16.mxu1 %v9252_v23 }
  0x60   : > { %8993 = vmatmul.mubr.bf16.gmra.mrb[28].mxu1 %v9253_v24 }
  0x61   : > { %938 = vmatprep.mubr.bf16.mxu1 %v9256_v25 }
  0xfb   : > { %v8966_v28 = vpop.f32.mrb[0].mxu1 }
  0xfc   : > { %v628_v29 = vadd.f32 %v8966_v28, %v10116_v27  ;;  %v619_v30 = vpop.f32.mrb[1].mxu1 }
  0xfd   : > { %v620_v31 = vadd.f32 %v10116_v27, %v619_v30  ;;  %v8967_v32 = vpop.f32.mrb[2].mxu1 }
  0xfe   : > { %vm748_vm0 = vcmp.ge.f32.partialorder %v628_v29, 0.0  ;;  %v780_v33 = vmul.f32 0.2, %v628_v29  ;;  %v631_v34 = vadd.f32 %v8967_v32, %v10116_v27  ;;  %v622_v35 = vpop.f32.mrb[3].mxu1 }
  0xff   : > { %vm746_vm1 = vcmp.ge.f32.partialorder %v620_v31, 0.0  ;;  %v778_v36 = vmul.f32 0.2, %v620_v31  ;;  %v623_v37 = vadd.f32 %v10116_v27, %v622_v35 }
 0x100   : > { %vm749_vm2 = vcmp.ge.f32.partialorder %v631_v34, 0.0  ;;  %v781_v38 = vmul.f32 0.2, %v631_v34  ;;  %v812_v40 = vsel %vm748_vm0, %v628_v29, %v780_v33 }
 0x101   : > { %vm747_vm3 = vcmp.ge.f32.partialorder %v623_v37, 0.0  ;;  %v779_v39 = vmul.f32 0.2, %v623_v37  ;;  %v810_v42 = vsel %vm746_vm1, %v620_v31, %v778_v36 }
 0x102   : > { %v813_v41 = vsel %vm749_vm2, %v631_v34, %v781_v38 }
 0x103   : > { %v10122_v43 = vpack.c.bf16 %v813_v41, %v812_v40  ;;  %v811_v44 = vsel %vm747_vm3, %v623_v37, %v779_v39  ;;  %v8970_v45 = vpop.f32.mrb[4].mxu1 }
 0x104   : > { %v10124_v46 = vpack.c.bf16 %v811_v44, %v810_v42  ;;  %v644_v47 = vadd.f32 %v8970_v45, %v10116_v27  ;;  %v635_v48 = vpop.f32.mrb[5].mxu1 }
 0x105   : > { %v636_v49 = vadd.f32 %v10116_v27, %v635_v48  ;;  %v8971_v50 = vpop.f32.mrb[6].mxu1 }
 0x106   : > { %vm752_vm4 = vcmp.ge.f32.partialorder %v644_v47, 0.0  ;;  %v784_v51 = vmul.f32 0.2, %v644_v47  ;;  %v647_v52 = vadd.f32 %v8971_v50, %v10116_v27  ;;  %v638_v53 = vpop.f32.mrb[7].mxu1 }
 0x107   : > { %vm750_vm5 = vcmp.ge.f32.partialorder %v636_v49, 0.0  ;;  %v782_v54 = vmul.f32 0.2, %v636_v49  ;;  %v639_v55 = vadd.f32 %v10116_v27, %v638_v53 }
 0x108   : > { %vm753_vm6 = vcmp.ge.f32.partialorder %v647_v52, 0.0  ;;  %v785_v56 = vmul.f32 0.2, %v647_v52  ;;  %v816_v58 = vsel %vm752_vm4, %v644_v47, %v784_v51 }
 0x109   : > { %vm751_vm7 = vcmp.ge.f32.partialorder %v639_v55, 0.0  ;;  %v783_v57 = vmul.f32 0.2, %v639_v55  ;;  %v814_v60 = vsel %vm750_vm5, %v636_v49, %v782_v54 }
 0x10a   : > { %v817_v59 = vsel %vm753_vm6, %v647_v52, %v785_v56 }
 0x10b   : > { %v10130_v61 = vpack.c.bf16 %v817_v59, %v816_v58  ;;  %v815_v62 = vsel %vm751_vm7, %v639_v55, %v783_v57  ;;  %v8974_v63 = vpop.f32.mrb[8].mxu1 }
 0x10c   : > { %v10132_v0 = vpack.c.bf16 %v815_v62, %v814_v60  ;;  %v660_v1 = vadd.f32 %v8974_v63, %v10116_v27  ;;  %v651_v2 = vpop.f32.mrb[9].mxu1 }
 0x10d   : > { %v652_v3 = vadd.f32 %v10116_v27, %v651_v2  ;;  %v8975_v4 = vpop.f32.mrb[10].mxu1 }
 0x10e   : > { %v788_v5 = vmul.f32 0.2, %v660_v1  ;;  %v663_v6 = vadd.f32 %v8975_v4, %v10116_v27  ;;  %v654_v7 = vpop.f32.mrb[11].mxu1  ;;  %vm756_vm8 = vcmp.ge.f32.partialorder %v660_v1, 0.0 }
 0x10f   : > { %v786_v8 = vmul.f32 0.2, %v652_v3  ;;  %v655_v9 = vadd.f32 %v10116_v27, %v654_v7  ;;  %vm754_vm9 = vcmp.ge.f32.partialorder %v652_v3, 0.0 }
 0x110   : > { %vm757_vm10 = vcmp.ge.f32.partialorder %v663_v6, 0.0  ;;  %v789_v10 = vmul.f32 0.2, %v663_v6  ;;  %v820_v12 = vsel %vm756_vm8, %v660_v1, %v788_v5 }
 0x111   : > { %vm755_vm11 = vcmp.ge.f32.partialorder %v655_v9, 0.0  ;;  %v787_v11 = vmul.f32 0.2, %v655_v9  ;;  %v818_v14 = vsel %vm754_vm9, %v652_v3, %v786_v8 }
 0x112   : > { %v821_v13 = vsel %vm757_vm10, %v663_v6, %v789_v10 }
 0x113   : > { %v10138_v15 = vpack.c.bf16 %v821_v13, %v820_v12  ;;  %v819_v16 = vsel %vm755_vm11, %v655_v9, %v787_v11  ;;  %v8978_v17 = vpop.f32.mrb[12].mxu1 }
 0x114   : > { %v10140_v18 = vpack.c.bf16 %v819_v16, %v818_v14  ;;  %v676_v19 = vadd.f32 %v8978_v17, %v10116_v27  ;;  %v667_v20 = vpop.f32.mrb[13].mxu1 }
 0x115   : > { %v668_v21 = vadd.f32 %v10116_v27, %v667_v20  ;;  %v8979_v22 = vpop.f32.mrb[14].mxu1 }
 0x116   : > { %v792_v23 = vmul.f32 0.2, %v676_v19  ;;  %v679_v24 = vadd.f32 %v8979_v22, %v10116_v27  ;;  %v670_v25 = vpop.f32.mrb[15].mxu1  ;;  %vm760_vm12 = vcmp.ge.f32.partialorder %v676_v19, 0.0 }
 0x117   : > { %v790_v26 = vmul.f32 0.2, %v668_v21  ;;  %v671_v28 = vadd.f32 %v10116_v27, %v670_v25  ;;  %vm758_vm13 = vcmp.ge.f32.partialorder %v668_v21, 0.0 }
 0x118   : > { %vm761_vm14 = vcmp.ge.f32.partialorder %v679_v24, 0.0  ;;  %v793_v29 = vmul.f32 0.2, %v679_v24  ;;  %v824_v31 = vsel %vm760_vm12, %v676_v19, %v792_v23 }
 0x119   : > { %vm759_vm15 = vcmp.ge.f32.partialorder %v671_v28, 0.0  ;;  %v791_v30 = vmul.f32 0.2, %v671_v28  ;;  %v822_v33 = vsel %vm758_vm13, %v668_v21, %v790_v26 }
 0x11a   : > { %v825_v32 = vsel %vm761_vm14, %v679_v24, %v793_v29 }
 0x11b   : > { %v10146_v34 = vpack.c.bf16 %v825_v32, %v824_v31  ;;  %v823_v35 = vsel %vm759_vm15, %v671_v28, %v791_v30  ;;  %v8982_v36 = vpop.f32.mrb[16].mxu1 }
 0x11c   : > { %v10148_v37 = vpack.c.bf16 %v823_v35, %v822_v33  ;;  %v692_v38 = vadd.f32 %v8982_v36, %v10116_v27  ;;  %v683_v39 = vpop.f32.mrb[17].mxu1 }
 0x11d   : > { %v684_v40 = vadd.f32 %v10116_v27, %v683_v39  ;;  %v8983_v41 = vpop.f32.mrb[18].mxu1 }
 0x11e   : > { %v796_v42 = vmul.f32 0.2, %v692_v38  ;;  %v695_v44 = vadd.f32 %v8983_v41, %v10116_v27  ;;  %v686_v45 = vpop.f32.mrb[19].mxu1  ;;  %vm764_vm0 = vcmp.ge.f32.partialorder %v692_v38, 0.0 }
 0x11f   : > { %v794_v47 = vmul.f32 0.2, %v684_v40  ;;  %v687_v48 = vadd.f32 %v10116_v27, %v686_v45  ;;  %vm762_vm1 = vcmp.ge.f32.partialorder %v684_v40, 0.0 }
 0x120   : > { %vm765_vm2 = vcmp.ge.f32.partialorder %v695_v44, 0.0  ;;  %v797_v49 = vmul.f32 0.2, %v695_v44  ;;  %v828_v51 = vsel %vm764_vm0, %v692_v38, %v796_v42  ;;  %vm9987_vm0 = vmmov 0  }
 0x121   : > { %vm763_vm3 = vcmp.ge.f32.partialorder %v687_v48, 0.0  ;;  %v795_v50 = vmul.f32 0.2, %v687_v48  ;;  %v826_v53 = vsel %vm762_vm1, %v684_v40, %v794_v47 }
 0x122   : > { %v829_v52 = vsel %vm765_vm2, %v695_v44, %v797_v49 }
 0x123   : > { %v10154_v54 = vpack.c.bf16 %v829_v52, %v828_v51  ;;  %v827_v55 = vsel %vm763_vm3, %v687_v48, %v795_v50  ;;  %v8986_v56 = vpop.f32.mrb[20].mxu1 }
 0x124   : > { %v10156_v57 = vpack.c.bf16 %v827_v55, %v826_v53  ;;  %v708_v58 = vadd.f32 %v8986_v56, %v10116_v27  ;;  %v699_v59 = vpop.f32.mrb[21].mxu1  ;;  %v9254_v56 = vld [vmem:[%s12621_s9] ss:$8 sps:$4 sm:$0xff]  }
 0x125   : > { %v700_v60 = vadd.f32 %v10116_v27, %v699_v59  ;;  %v8987_v62 = vpop.f32.mrb[22].mxu1  ;;  %v9260_v59 = vld [vmem:[%s12621_s9 + $0x14] ss:$8 sps:$4 sm:$0xff]  }
 0x126   : > { %v800_v63 = vmul.f32 0.2, %v708_v58  ;;  %v711_v1 = vadd.f32 %v8987_v62, %v10116_v27  ;;  %v702_v2 = vpop.f32.mrb[23].mxu1  ;;  %7908 = vmatprep.subr.bf16.mxu1 %v10156_v57  ;;  %7988 = vmatprep.subr.bf16.mxu0 %v10156_v57  ;;  %vm768_vm4 = vcmp.ge.f32.partialorder %v708_v58, 0.0  ;;  %v9262_v62 = vld [vmem:[%s12621_s9 + $0x10] ss:$8 sps:$4 sm:$0xff]  }
 0x127   : > { %v798_v3 = vmul.f32 0.2, %v700_v60  ;;  %v703_v4 = vadd.f32 %v10116_v27, %v702_v2  ;;  %7909 = vmatpush3.bf16.msra.mxu1 %v10124_v46  ;;  %7989 = vmatpush3.bf16.msra.mxu0 %v10124_v46  ;;  %vm766_vm5 = vcmp.ge.f32.partialorder %v700_v60, 0.0  ;;  %v9269_v2 = vld [vmem:[%s12621_s9 + $0xa4] ss:$8 sps:$4 sm:$0xff]  }
 0x128   : > { %vm769_vm6 = vcmp.ge.f32.partialorder %v711_v1, 0.0  ;;  %v801_v5 = vmul.f32 0.2, %v711_v1  ;;  %7910 = vmatprep.subr.bf16.mxu1 %v10154_v54  ;;  %7990 = vmatprep.subr.bf16.mxu0 %v10154_v54  ;;  %v832_v7 = vsel %vm768_vm4, %v708_v58, %v800_v63  ;;  %v9257_v58 = vld [vmem:[%s12621_s9 + $0x80] ss:$8 sps:$4 sm:$0xff]  }
 0x129   : > { %vm767_vm7 = vcmp.ge.f32.partialorder %v703_v4, 0.0  ;;  %v799_v6 = vmul.f32 0.2, %v703_v4  ;;  %v830_v9 = vsel %vm766_vm5, %v700_v60, %v798_v3  ;;  %v9263_v60 = vld [vmem:[%s12621_s9 + $0x94] ss:$8 sps:$4 sm:$0xff]  }
 0x12a   : > { %v833_v8 = vsel %vm769_vm6, %v711_v1, %v801_v5  ;;  %v9265_v63 = vld [vmem:[%s12621_s9 + $0x90] ss:$8 sps:$4 sm:$0xff]   ;;  %v9266_v1 = vld [vmem:[%s12621_s9 + $0x24] ss:$8 sps:$4 sm:$0xff]   ;;  %v9268_v3 = vld [vmem:[%s12621_s9 + $0x20] ss:$8 sps:$4 sm:$0xff]  }
 0x12b   : > { %v10168_v10 = vpack.c.bf16 %v833_v8, %v832_v7  ;;  %v831_v11 = vsel %vm767_vm7, %v703_v4, %v799_v6  ;;  %v8990_v12 = vpop.f32.mrb[24].mxu1  ;;  %7911 = vmatpush3.bf16.msra.mxu1 %v10122_v43  ;;  %7991 = vmatpush3.bf16.msra.mxu0 %v10122_v43  ;;  %v9271_v4 = vld [vmem:[%s12621_s9 + $0xa0] ss:$8 sps:$4 sm:$0xff]   ;;  %v9272_v5 = vld [vmem:[%s12621_s9 + $0x34] ss:$8 sps:$4 sm:$0xff]  }
 0x12c   : > { %v10172_v13 = vpack.c.bf16 %v831_v11, %v830_v9  ;;  %v724_v14 = vadd.f32 %v8990_v12, %v10116_v27  ;;  %v715_v16 = vpop.f32.mrb[25].mxu1  ;;  %v9275_v6 = vld [vmem:[%s12621_s9 + $0xb4] ss:$8 sps:$4 sm:$0xff]   ;;  %v9274_v7 = vld [vmem:[%s12621_s9 + $0x30] ss:$8 sps:$4 sm:$0xff]  }
 0x12d   : > { %v716_v17 = vadd.f32 %v10116_v27, %v715_v16  ;;  %v8991_v19 = vpop.f32.mrb[26].mxu1  ;;  %v9277_v8 = vld [vmem:[%s12621_s9 + $0xb0] ss:$8 sps:$4 sm:$0xff]   ;;  %v9280_v9 = vld [vmem:[%s12621_s9 + $0x44] ss:$8 sps:$4 sm:$0xff]  }
 0x12e   : > { %v804_v20 = vmul.f32 0.2, %v724_v14  ;;  %v727_v21 = vadd.f32 %v8991_v19, %v10116_v27  ;;  %v718_v22 = vpop.f32.mrb[27].mxu1  ;;  %7912 = vmatprep.subr.bf16.mxu1 %v10172_v13  ;;  %7992 = vmatprep.subr.bf16.mxu0 %v10172_v13  ;;  %vm772_vm8 = vcmp.ge.f32.partialorder %v724_v14, 0.0  ;;  %v9283_v11 = vld [vmem:[%s12621_s9 + $0x104] ss:$8 sps:$4 sm:$0xff]  }
 0x12f   : > { %v802_v23 = vmul.f32 0.2, %v716_v17  ;;  %v719_v24 = vadd.f32 %v10116_v27, %v718_v22  ;;  %7913 = vmatpush3.bf16.msra.mxu1 %v10132_v0  ;;  %7993 = vmatpush3.bf16.msra.mxu0 %v10132_v0  ;;  %vm770_vm9 = vcmp.ge.f32.partialorder %v716_v17, 0.0  ;;  %v9278_v12 = vld [vmem:[%s12621_s9 + $0x40] ss:$8 sps:$4 sm:$0xff]  }
 0x130   : > { %vm773_vm10 = vcmp.ge.f32.partialorder %v727_v21, 0.0  ;;  %v805_v25 = vmul.f32 0.2, %v727_v21  ;;  %7914 = vmatprep.subr.bf16.mxu1 %v10168_v10  ;;  %7994 = vmatprep.subr.bf16.mxu0 %v10168_v10  ;;  %v836_v28 = vsel %vm772_vm8, %v724_v14, %v804_v20  ;;  %v9281_v14 = vld [vmem:[%s12621_s9 + $0x100] ss:$8 sps:$4 sm:$0xff]  }
 0x131   : > { %vm771_vm11 = vcmp.ge.f32.partialorder %v719_v24, 0.0  ;;  %v803_v26 = vmul.f32 0.2, %v719_v24  ;;  %v834_v30 = vsel %vm770_vm9, %v716_v17, %v802_v23  ;;  %v9284_v16 = vld [vmem:[%s12621_s9 + $0x54] ss:$8 sps:$4 sm:$0xff]   ;;  %vm4331_vm9 = vcmask 523264  }
 0x132   : > { %v837_v29 = vsel %vm773_vm10, %v727_v21, %v805_v25  ;;  %v9287_v17 = vld [vmem:[%s12621_s9 + $0x114] ss:$8 sps:$4 sm:$0xff]   ;;  %v9286_v19 = vld [vmem:[%s12621_s9 + $0x50] ss:$8 sps:$4 sm:$0xff]   ;;  %v9290_v21 = vld [vmem:[%s12621_s9 + $0x64] ss:$8 sps:$4 sm:$0xff]  }
 0x133   : > { %v10184_v31 = vpack.c.bf16 %v837_v29, %v836_v28  ;;  %v835_v32 = vsel %vm771_vm11, %v719_v24, %v803_v26  ;;  %v8994_v33 = vpop.f32.mrb[28].mxu1  ;;  %7915 = vmatpush3.bf16.msra.mxu1 %v10130_v61  ;;  %7995 = vmatpush3.bf16.msra.mxu0 %v10130_v61  ;;  %v9289_v20 = vld [vmem:[%s12621_s9 + $0x110] ss:$8 sps:$4 sm:$0xff]   ;;  %v9293_v22 = vld [vmem:[%s12621_s9 + $0x124] ss:$8 sps:$4 sm:$0xff]  }
 0x134   : > { %v10188_v35 = vpack.c.bf16 %v835_v32, %v834_v30  ;;  %v740_v36 = vadd.f32 %v8994_v33, %v10116_v27  ;;  %v731_v38 = vpop.f32.mrb[29].mxu1  ;;  %v9292_v23 = vld [vmem:[%s12621_s9 + $0x60] ss:$8 sps:$4 sm:$0xff]   ;;  %v9296_v25 = vld [vmem:[%s12621_s9 + $0x74] ss:$8 sps:$4 sm:$0xff]  }
 0x135   : > { %v732_v39 = vadd.f32 %v10116_v27, %v731_v38  ;;  %v8995_v40 = vpop.f32.mrb[30].mxu1  ;;  %v9295_v24 = vld [vmem:[%s12621_s9 + $0x120] ss:$8 sps:$4 sm:$0xff]   ;;  %v9299_v26 = vld [vmem:[%s12621_s9 + $0x134] ss:$8 sps:$4 sm:$0xff]  }
 0x136   : > { %v808_v41 = vmul.f32 0.2, %v740_v36  ;;  %v743_v42 = vadd.f32 %v8995_v40, %v10116_v27  ;;  %v734_v44 = vpop.f32.mrb[31].mxu1  ;;  %7916 = vmatprep.subr.bf16.mxu1 %v10188_v35  ;;  %7996 = vmatprep.subr.bf16.mxu0 %v10188_v35  ;;  %vm776_vm12 = vcmp.ge.f32.partialorder %v740_v36, 0.0  ;;  %v9298_v28 = vld [vmem:[%s12621_s9 + $0x70] ss:$8 sps:$4 sm:$0xff]  }
 0x137   : > { %v806_v45 = vmul.f32 0.2, %v732_v39  ;;  %v735_v47 = vadd.f32 %v10116_v27, %v734_v44  ;;  %7917 = vmatpush3.bf16.msra.mxu1 %v10140_v18  ;;  %7997 = vmatpush3.bf16.msra.mxu0 %v10140_v18  ;;  %vm774_vm13 = vcmp.ge.f32.partialorder %v732_v39, 0.0  ;;  %v9301_v29 = vld [vmem:[%s12621_s9 + $0x130] ss:$8 sps:$4 sm:$0xff]  }
 0x138   : > { %vm777_vm14 = vcmp.ge.f32.partialorder %v743_v42, 0.0  ;;  %v809_v48 = vmul.f32 0.2, %v743_v42  ;;  %7918 = vmatprep.subr.bf16.mxu1 %v10184_v31  ;;  %7998 = vmatprep.subr.bf16.mxu0 %v10184_v31  ;;  %v840_v50 = vsel %vm776_vm12, %v740_v36, %v808_v41  ;;  %v9304_v30 = vld [vmem:[%s12621_s9 + $0xc4] ss:$8 sps:$4 sm:$0xff]  }
 0x139   : > { %vm775_vm15 = vcmp.ge.f32.partialorder %v735_v47, 0.0  ;;  %v807_v49 = vmul.f32 0.2, %v735_v47  ;;  %v838_v52 = vsel %vm774_vm13, %v732_v39, %v806_v45  ;;  %v9307_v32 = vld [vmem:[%s12621_s9 + $0x184] ss:$8 sps:$4 sm:$0xff]  }
 0x13a   : > { %v841_v51 = vsel %vm777_vm14, %v743_v42, %v809_v48  ;;  %v9302_v33 = vld [vmem:[%s12621_s9 + $0xc0] ss:$8 sps:$4 sm:$0xff]   ;;  %v9308_v38 = vld [vmem:[%s12621_s9 + $0xd4] ss:$8 sps:$4 sm:$0xff]   ;;  %v9310_v40 = vld [vmem:[%s12621_s9 + $0xd0] ss:$8 sps:$4 sm:$0xff]  }
 0x13b   : > { %v10200_v53 = vpack.c.bf16 %v841_v51, %v840_v50  ;;  %v839_v55 = vsel %vm775_vm15, %v735_v47, %v807_v49  ;;  %7919 = vmatpush3.bf16.msra.mxu1 %v10138_v15  ;;  %7999 = vmatpush3.bf16.msra.mxu0 %v10138_v15  ;;  %v9305_v36 = vld [vmem:[%s12621_s9 + $0x180] ss:$8 sps:$4 sm:$0xff]   ;;  %v9311_v39 = vld [vmem:[%s12621_s9 + $0x194] ss:$8 sps:$4 sm:$0xff]   ;;  %v9313_v41 = vld [vmem:[%s12621_s9 + $0x190] ss:$8 sps:$4 sm:$0xff]  }
 0x13c   : > { %v10204_v27 = vpack.c.bf16 %v839_v55, %v838_v52  ;;  %v9314_v42 = vld [vmem:[%s12621_s9 + $0xe4] ss:$8 sps:$4 sm:$0xff]   ;;  %v9316_v45 = vld [vmem:[%s12621_s9 + $0xe0] ss:$8 sps:$4 sm:$0xff]   ;;  %v9320_v48 = vld [vmem:[%s12621_s9 + $0xf4] ss:$8 sps:$4 sm:$0xff]  }
 0x13d   : > { %v9317_v44 = vld [vmem:[%s12621_s9 + $0x1a4] ss:$8 sps:$4 sm:$0xff]   ;;  %v9319_v47 = vld [vmem:[%s12621_s9 + $0x1a0] ss:$8 sps:$4 sm:$0xff]   ;;  %v9323_v49 = vld [vmem:[%s12621_s9 + $0x1b4] ss:$8 sps:$4 sm:$0xff]  }
 0x13e   : > { %7920 = vmatprep.subr.bf16.mxu1 %v10204_v27  ;;  %8000 = vmatprep.subr.bf16.mxu0 %v10204_v27  ;;  %v9322_v50 = vld [vmem:[%s12621_s9 + $0xf0] ss:$8 sps:$4 sm:$0xff]   ;;  %v9328_v52 = vld [vmem:[%s12621_s9 + $0x144] ss:$8 sps:$4 sm:$0xff]   ;;  %vm7105_vm14 = vcmask 0  }
 0x13f   : > { %7921 = vmatpush3.bf16.msra.mxu1 %v10148_v37  ;;  %8001 = vmatpush3.bf16.msra.mxu0 %v10148_v37  ;;  %v9325_v51 = vld [vmem:[%s12621_s9 + $0x1b0] ss:$8 sps:$4 sm:$0xff]   ;;  %v9331_v55 = vld [vmem:[%s12621_s9 + $0x204] ss:$8 sps:$4 sm:$0xff]  }
 0x140   : > { %7922 = vmatprep.subr.bf16.mxu1 %v10200_v53  ;;  %8002 = vmatprep.subr.bf16.mxu0 %v10200_v53 }
 0x143   : > { %7923 = vmatpush3.bf16.msra.mxu1 %v10146_v34  ;;  %8003 = vmatpush3.bf16.msra.mxu0 %v10146_v34 }
 0x144   : > { %7948 = vmatprep.subr.bf16.mxu1 %v10156_v57  ;;  %8068 = vmatprep.subr.bf16.mxu0 %v10156_v57 }
 0x146   : > { %939 = vmatmul.mubr.bf16.vlgmr.msra.gmra.mrb[32].mxu1 %v9254_v56  ;;  %1175 = vmatmul.mubr.bf16.vlgmr.msra.gmra.mrb[0].mxu0 %v9257_v58  ;;  %v9326_v56 = vld [vmem:[%s12621_s9 + $0x140] ss:$8 sps:$4 sm:$0xff]  }
 0x147   : > { %7949 = vmatpush3.bf16.msra.mxu1 %v10124_v46  ;;  %8069 = vmatpush3.bf16.msra.mxu0 %v10124_v46  ;;  %v9329_v58 = vld [vmem:[%s12621_s9 + $0x200] ss:$8 sps:$4 sm:$0xff]  }
 0x148   : > { %7950 = vmatprep.subr.bf16.mxu1 %v10154_v54  ;;  %8070 = vmatprep.subr.bf16.mxu0 %v10154_v54 }
 0x149   : > { %946 = vmatprep.mubr.bf16.mxu1 %v9260_v59  ;;  %1182 = vmatprep.mubr.bf16.mxu0 %v9263_v60  ;;  %v9332_v59 = vld [vmem:[%s12621_s9 + $0x154] ss:$8 sps:$4 sm:$0xff]  }
 0x14a   : > { %v9335_v60 = vld [vmem:[%s12621_s9 + $0x214] ss:$8 sps:$4 sm:$0xff]  }
 0x14b   : > { %7951 = vmatpush3.bf16.msra.mxu1 %v10122_v43  ;;  %8071 = vmatpush3.bf16.msra.mxu0 %v10122_v43 }
 0x14c   : > { %7952 = vmatprep.subr.bf16.mxu1 %v10172_v13  ;;  %8072 = vmatprep.subr.bf16.mxu0 %v10172_v13 }
 0x14e   : > { %947 = vmatmul.mubr.bf16.gmra.mrb[36].mxu1 %v9262_v62  ;;  %1183 = vmatmul.mubr.bf16.gmra.mrb[4].mxu0 %v9265_v63  ;;  %v9334_v62 = vld [vmem:[%s12621_s9 + $0x150] ss:$8 sps:$4 sm:$0xff]  }
 0x14f   : > { %7953 = vmatpush3.bf16.msra.mxu1 %v10132_v0  ;;  %8073 = vmatpush3.bf16.msra.mxu0 %v10132_v0  ;;  %v9337_v63 = vld [vmem:[%s12621_s9 + $0x210] ss:$8 sps:$4 sm:$0xff]  }
 0x150   : > { %7954 = vmatprep.subr.bf16.mxu1 %v10168_v10  ;;  %8074 = vmatprep.subr.bf16.mxu0 %v10168_v10 }
 0x151   : > { %954 = vmatprep.mubr.bf16.mxu1 %v9266_v1  ;;  %1190 = vmatprep.mubr.bf16.mxu0 %v9269_v2  ;;  %v9338_v1 = vld [vmem:[%s12621_s9 + $0x164] ss:$8 sps:$4 sm:$0xff]  }
 0x152   : > { %v9341_v2 = vld [vmem:[%s12621_s9 + $0x224] ss:$8 sps:$4 sm:$0xff]  }
 0x153   : > { %7955 = vmatpush3.bf16.msra.mxu1 %v10130_v61  ;;  %8075 = vmatpush3.bf16.msra.mxu0 %v10130_v61 }
 0x154   : > { %7956 = vmatprep.subr.bf16.mxu1 %v10188_v35  ;;  %8076 = vmatprep.subr.bf16.mxu0 %v10188_v35 }
 0x156   : > { %955 = vmatmul.mubr.bf16.gmra.mrb[40].mxu1 %v9268_v3  ;;  %1191 = vmatmul.mubr.bf16.gmra.mrb[8].mxu0 %v9271_v4  ;;  %v9340_v3 = vld [vmem:[%s12621_s9 + $0x160] ss:$8 sps:$4 sm:$0xff]  }
 0x157   : > { %7957 = vmatpush3.bf16.msra.mxu1 %v10140_v18  ;;  %8077 = vmatpush3.bf16.msra.mxu0 %v10140_v18  ;;  %v9343_v4 = vld [vmem:[%s12621_s9 + $0x220] ss:$8 sps:$4 sm:$0xff]  }
 0x158   : > { %7958 = vmatprep.subr.bf16.mxu1 %v10184_v31  ;;  %8078 = vmatprep.subr.bf16.mxu0 %v10184_v31 }
 0x159   : > { %962 = vmatprep.mubr.bf16.mxu1 %v9272_v5  ;;  %1198 = vmatprep.mubr.bf16.mxu0 %v9275_v6  ;;  %v9344_v5 = vld [vmem:[%s12621_s9 + $0x174] ss:$8 sps:$4 sm:$0xff]  }
 0x15a   : > { %v9347_v6 = vld [vmem:[%s12621_s9 + $0x234] ss:$8 sps:$4 sm:$0xff]  }
 0x15b   : > { %7959 = vmatpush3.bf16.msra.mxu1 %v10138_v15  ;;  %8079 = vmatpush3.bf16.msra.mxu0 %v10138_v15 }
 0x15c   : > { %7960 = vmatprep.subr.bf16.mxu1 %v10204_v27  ;;  %8080 = vmatprep.subr.bf16.mxu0 %v10204_v27 }
 0x15e   : > { %963 = vmatmul.mubr.bf16.gmra.mrb[44].mxu1 %v9274_v7  ;;  %1199 = vmatmul.mubr.bf16.gmra.mrb[12].mxu0 %v9277_v8  ;;  %v9346_v7 = vld [vmem:[%s12621_s9 + $0x170] ss:$8 sps:$4 sm:$0xff]  }
 0x15f   : > { %7961 = vmatpush3.bf16.msra.mxu1 %v10148_v37  ;;  %8081 = vmatpush3.bf16.msra.mxu0 %v10148_v37  ;;  %v9349_v8 = vld [vmem:[%s12621_s9 + $0x230] ss:$8 sps:$4 sm:$0xff]  }
 0x160   : > { %7962 = vmatprep.subr.bf16.mxu1 %v10200_v53  ;;  %8082 = vmatprep.subr.bf16.mxu0 %v10200_v53 }
 0x161   : > { %1056 = vmatprep.mubr.bf16.mxu1 %v9280_v9  ;;  %1410 = vmatprep.mubr.bf16.mxu0 %v9283_v11  ;;  %v9352_v9 = vld [vmem:[%s12621_s9 + $0x1c4] ss:$8 sps:$4 sm:$0xff]  }
 0x162   : > { %v9355_v11 = vld [vmem:[%s12621_s9 + $0x284] ss:$8 sps:$4 sm:$0xff]  }
 0x163   : > { %7963 = vmatpush3.bf16.msra.mxu1 %v10146_v34  ;;  %8083 = vmatpush3.bf16.msra.mxu0 %v10146_v34 }
 0x164   : > { %8028 = vmatprep.subr.bf16.mxu1 %v10156_v57  ;;  %8148 = vmatprep.subr.bf16.mxu0 %v10156_v57 }
 0x166   : > { %1057 = vmatmul.mubr.bf16.vlgmr.msra.gmra.mrb[48].mxu1 %v9278_v12  ;;  %1411 = vmatmul.mubr.bf16.vlgmr.msra.gmra.mrb[16].mxu0 %v9281_v14  ;;  %v9350_v12 = vld [vmem:[%s12621_s9 + $0x1c0] ss:$8 sps:$4 sm:$0xff]  }
 0x167   : > { %8029 = vmatpush3.bf16.msra.mxu1 %v10124_v46  ;;  %8149 = vmatpush3.bf16.msra.mxu0 %v10124_v46  ;;  %v9353_v14 = vld [vmem:[%s12621_s9 + $0x280] ss:$8 sps:$4 sm:$0xff]  }
 0x168   : > { %8030 = vmatprep.subr.bf16.mxu1 %v10154_v54  ;;  %8150 = vmatprep.subr.bf16.mxu0 %v10154_v54 }
 0x169   : > { %1064 = vmatprep.mubr.bf16.mxu1 %v9284_v16  ;;  %1418 = vmatprep.mubr.bf16.mxu0 %v9287_v17  ;;  %v9356_v16 = vld [vmem:[%s12621_s9 + $0x1d4] ss:$8 sps:$4 sm:$0xff]  }
 0x16a   : > { %v9359_v17 = vld [vmem:[%s12621_s9 + $0x294] ss:$8 sps:$4 sm:$0xff]  }
 0x16b   : > { %8031 = vmatpush3.bf16.msra.mxu1 %v10122_v43  ;;  %8151 = vmatpush3.bf16.msra.mxu0 %v10122_v43 }
 0x16c   : > { %8032 = vmatprep.subr.bf16.mxu1 %v10172_v13  ;;  %8152 = vmatprep.subr.bf16.mxu0 %v10172_v13 }
 0x16e   : > { %1065 = vmatmul.mubr.bf16.gmra.mrb[52].mxu1 %v9286_v19  ;;  %1419 = vmatmul.mubr.bf16.gmra.mrb[20].mxu0 %v9289_v20  ;;  %v9358_v19 = vld [vmem:[%s12621_s9 + $0x1d0] ss:$8 sps:$4 sm:$0xff]  }
 0x16f   : > { %8033 = vmatpush3.bf16.msra.mxu1 %v10132_v0  ;;  %8153 = vmatpush3.bf16.msra.mxu0 %v10132_v0  ;;  %v9361_v20 = vld [vmem:[%s12621_s9 + $0x290] ss:$8 sps:$4 sm:$0xff]  }
 0x170   : > { %8034 = vmatprep.subr.bf16.mxu1 %v10168_v10  ;;  %8154 = vmatprep.subr.bf16.mxu0 %v10168_v10 }
 0x171   : > { %1072 = vmatprep.mubr.bf16.mxu1 %v9290_v21  ;;  %1426 = vmatprep.mubr.bf16.mxu0 %v9293_v22  ;;  %v9362_v21 = vld [vmem:[%s12621_s9 + $0x1e4] ss:$8 sps:$4 sm:$0xff]  }
 0x172   : > { %v9365_v22 = vld [vmem:[%s12621_s9 + $0x2a4] ss:$8 sps:$4 sm:$0xff]  }
 0x173   : > { %8035 = vmatpush3.bf16.msra.mxu1 %v10130_v61  ;;  %8155 = vmatpush3.bf16.msra.mxu0 %v10130_v61 }
 0x174   : > { %8036 = vmatprep.subr.bf16.mxu1 %v10188_v35  ;;  %8156 = vmatprep.subr.bf16.mxu0 %v10188_v35 }
 0x176   : > { %1073 = vmatmul.mubr.bf16.gmra.mrb[56].mxu1 %v9292_v23  ;;  %1427 = vmatmul.mubr.bf16.gmra.mrb[24].mxu0 %v9295_v24  ;;  %v9364_v23 = vld [vmem:[%s12621_s9 + $0x1e0] ss:$8 sps:$4 sm:$0xff]  }
 0x177   : > { %8037 = vmatpush3.bf16.msra.mxu1 %v10140_v18  ;;  %8157 = vmatpush3.bf16.msra.mxu0 %v10140_v18  ;;  %v9367_v24 = vld [vmem:[%s12621_s9 + $0x2a0] ss:$8 sps:$4 sm:$0xff]  }
 0x178   : > { %8038 = vmatprep.subr.bf16.mxu1 %v10184_v31  ;;  %8158 = vmatprep.subr.bf16.mxu0 %v10184_v31 }
 0x179   : > { %1080 = vmatprep.mubr.bf16.mxu1 %v9296_v25  ;;  %1434 = vmatprep.mubr.bf16.mxu0 %v9299_v26  ;;  %v9368_v25 = vld [vmem:[%s12621_s9 + $0x1f4] ss:$8 sps:$4 sm:$0xff]  }
 0x17a   : > { %v9371_v26 = vld [vmem:[%s12621_s9 + $0x2b4] ss:$8 sps:$4 sm:$0xff]  }
 0x17b   : > { %8039 = vmatpush3.bf16.msra.mxu1 %v10138_v15  ;;  %8159 = vmatpush3.bf16.msra.mxu0 %v10138_v15 }
 0x17c   : > { %8040 = vmatprep.subr.bf16.mxu1 %v10204_v27  ;;  %8160 = vmatprep.subr.bf16.mxu0 %v10204_v27 }
 0x17e   : > { %1081 = vmatmul.mubr.bf16.gmra.mrb[60].mxu1 %v9298_v28  ;;  %1435 = vmatmul.mubr.bf16.gmra.mrb[28].mxu0 %v9301_v29  ;;  %v9370_v28 = vld [vmem:[%s12621_s9 + $0x1f0] ss:$8 sps:$4 sm:$0xff]  }
 0x17f   : > { %8041 = vmatpush3.bf16.msra.mxu1 %v10148_v37  ;;  %8161 = vmatpush3.bf16.msra.mxu0 %v10148_v37  ;;  %v9373_v29 = vld [vmem:[%s12621_s9 + $0x2b0] ss:$8 sps:$4 sm:$0xff]  }
 0x180   : > { %8042 = vmatprep.subr.bf16.mxu1 %v10200_v53  ;;  %8162 = vmatprep.subr.bf16.mxu0 %v10200_v53 }
 0x181   : > { %1292 = vmatprep.mubr.bf16.mxu1 %v9304_v30  ;;  %1646 = vmatprep.mubr.bf16.mxu0 %v9307_v32  ;;  %v9376_v30 = vld [vmem:[%s12621_s9 + $0x244] ss:$8 sps:$4 sm:$0xff]  }
 0x182   : > { %v9379_v32 = vld [vmem:[%s12621_s9 + $0x304] ss:$8 sps:$4 sm:$0xff]  }
 0x183   : > { %8043 = vmatpush3.bf16.msra.mxu1 %v10146_v34  ;;  %8163 = vmatpush3.bf16.msra.mxu0 %v10146_v34 }
 0x184   : > { %8108 = vmatprep.subr.bf16.mxu1 %v10156_v57  ;;  %8228 = vmatprep.subr.bf16.mxu0 %v10156_v57 }
 0x186   : > { %1293 = vmatmul.mubr.bf16.vlgmr.msra.gmra.mrb[64].mxu1 %v9302_v33  ;;  %1647 = vmatmul.mubr.bf16.vlgmr.msra.gmra.mrb[32].mxu0 %v9305_v36  ;;  %v9374_v33 = vld [vmem:[%s12621_s9 + $0x240] ss:$8 sps:$4 sm:$0xff]  }
 0x187   : > { %8109 = vmatpush3.bf16.msra.mxu1 %v10124_v46  ;;  %8229 = vmatpush3.bf16.msra.mxu0 %v10124_v46  ;;  %v9377_v36 = vld [vmem:[%s12621_s9 + $0x300] ss:$8 sps:$4 sm:$0xff]  }
 0x188   : > { %8110 = vmatprep.subr.bf16.mxu1 %v10154_v54  ;;  %8230 = vmatprep.subr.bf16.mxu0 %v10154_v54 }
 0x189   : > { %1300 = vmatprep.mubr.bf16.mxu1 %v9308_v38  ;;  %1654 = vmatprep.mubr.bf16.mxu0 %v9311_v39  ;;  %v9380_v38 = vld [vmem:[%s12621_s9 + $0x254] ss:$8 sps:$4 sm:$0xff]  }
 0x18a   : > { %v9392_v39 = vld [vmem:[%s12621_s9 + $0x314] ss:$8 sps:$4 sm:$0xff]  }
 0x18b   : > { %8111 = vmatpush3.bf16.msra.mxu1 %v10122_v43  ;;  %8231 = vmatpush3.bf16.msra.mxu0 %v10122_v43 }
 0x18c   : > { %8112 = vmatprep.subr.bf16.mxu1 %v10172_v13  ;;  %8232 = vmatprep.subr.bf16.mxu0 %v10172_v13 }
 0x18e   : > { %1301 = vmatmul.mubr.bf16.gmra.mrb[68].mxu1 %v9310_v40  ;;  %1655 = vmatmul.mubr.bf16.gmra.mrb[36].mxu0 %v9313_v41  ;;  %v9382_v40 = vld [vmem:[%s12621_s9 + $0x250] ss:$8 sps:$4 sm:$0xff]  }
 0x18f   : > { %8113 = vmatpush3.bf16.msra.mxu1 %v10132_v0  ;;  %8233 = vmatpush3.bf16.msra.mxu0 %v10132_v0  ;;  %v9394_v41 = vld [vmem:[%s12621_s9 + $0x310] ss:$8 sps:$4 sm:$0xff]  }
 0x190   : > { %8114 = vmatprep.subr.bf16.mxu1 %v10168_v10  ;;  %8234 = vmatprep.subr.bf16.mxu0 %v10168_v10 }
 0x191   : > { %1308 = vmatprep.mubr.bf16.mxu1 %v9314_v42  ;;  %1662 = vmatprep.mubr.bf16.mxu0 %v9317_v44  ;;  %v9383_v42 = vld [vmem:[%s12621_s9 + $0x264] ss:$8 sps:$4 sm:$0xff]  }
 0x192   : > { %v9398_v44 = vld [vmem:[%s12621_s9 + $0x324] ss:$8 sps:$4 sm:$0xff]  }
 0x193   : > { %8115 = vmatpush3.bf16.msra.mxu1 %v10130_v61  ;;  %8235 = vmatpush3.bf16.msra.mxu0 %v10130_v61 }
 0x194   : > { %8116 = vmatprep.subr.bf16.mxu1 %v10188_v35  ;;  %8236 = vmatprep.subr.bf16.mxu0 %v10188_v35 }
 0x196   : > { %1309 = vmatmul.mubr.bf16.gmra.mrb[72].mxu1 %v9316_v45  ;;  %1663 = vmatmul.mubr.bf16.gmra.mrb[40].mxu0 %v9319_v47  ;;  %v9385_v45 = vld [vmem:[%s12621_s9 + $0x260] ss:$8 sps:$4 sm:$0xff]  }
 0x197   : > { %8117 = vmatpush3.bf16.msra.mxu1 %v10140_v18  ;;  %8237 = vmatpush3.bf16.msra.mxu0 %v10140_v18  ;;  %v9400_v47 = vld [vmem:[%s12621_s9 + $0x320] ss:$8 sps:$4 sm:$0xff]  }
 0x198   : > { %8118 = vmatprep.subr.bf16.mxu1 %v10184_v31  ;;  %8238 = vmatprep.subr.bf16.mxu0 %v10184_v31 }
 0x199   : > { %1316 = vmatprep.mubr.bf16.mxu1 %v9320_v48  ;;  %1670 = vmatprep.mubr.bf16.mxu0 %v9323_v49  ;;  %v9386_v48 = vld [vmem:[%s12621_s9 + $0x274] ss:$8 sps:$4 sm:$0xff]  }
 0x19a   : > { %v9404_v49 = vld [vmem:[%s12621_s9 + $0x334] ss:$8 sps:$4 sm:$0xff]  }
 0x19b   : > { %8119 = vmatpush3.bf16.msra.mxu1 %v10138_v15  ;;  %8239 = vmatpush3.bf16.msra.mxu0 %v10138_v15 }
 0x19c   : > { %8120 = vmatprep.subr.bf16.mxu1 %v10204_v27  ;;  %8240 = vmatprep.subr.bf16.mxu0 %v10204_v27 }
 0x19e   : > { %1317 = vmatmul.mubr.bf16.gmra.mrb[76].mxu1 %v9322_v50  ;;  %1671 = vmatmul.mubr.bf16.gmra.mrb[44].mxu0 %v9325_v51  ;;  %v9388_v50 = vld [vmem:[%s12621_s9 + $0x270] ss:$8 sps:$4 sm:$0xff]  }
 0x19f   : > { %8121 = vmatpush3.bf16.msra.mxu1 %v10148_v37  ;;  %8241 = vmatpush3.bf16.msra.mxu0 %v10148_v37  ;;  %v9406_v51 = vld [vmem:[%s12621_s9 + $0x330] ss:$8 sps:$4 sm:$0xff]  }
 0x1a0   : > { %8122 = vmatprep.subr.bf16.mxu1 %v10200_v53  ;;  %8242 = vmatprep.subr.bf16.mxu0 %v10200_v53 }
 0x1a1   : > { %1528 = vmatprep.mubr.bf16.mxu1 %v9328_v52  ;;  %1882 = vmatprep.mubr.bf16.mxu0 %v9331_v55  ;;  %v9391_v52 = vld [vmem:[%s12621_s9 + $0x2c4] ss:$8 sps:$4 sm:$0xff]  }
 0x1a2   : > { %v9412_v55 = vld [vmem:[%s12621_s9 + $0x384] ss:$8 sps:$4 sm:$0xff]  }
 0x1a3   : > { %8123 = vmatpush3.bf16.msra.mxu1 %v10146_v34  ;;  %8243 = vmatpush3.bf16.msra.mxu0 %v10146_v34 }
 0x1a4   : > { %8188 = vmatprep.subr.bf16.mxu1 %v10156_v57  ;;  %8308 = vmatprep.subr.bf16.mxu0 %v10156_v57 }
 0x1a6   : > { %1529 = vmatmul.mubr.bf16.vlgmr.msra.gmra.mrb[80].mxu1 %v9326_v56  ;;  %1883 = vmatmul.mubr.bf16.vlgmr.msra.gmra.mrb[48].mxu0 %v9329_v58  ;;  %v9413_v56 = vld [vmem:[%s12615_s3 + $0x40] sm:$0xff]  }
 0x1a7   : > { %8189 = vmatpush3.bf16.msra.mxu1 %v10124_v46  ;;  %8309 = vmatpush3.bf16.msra.mxu0 %v10124_v46  ;;  %v9389_v58 = vld [vmem:[%s12621_s9 + $0x2c0] ss:$8 sps:$4 sm:$0xff]  }
 0x1a8   : > { %8190 = vmatprep.subr.bf16.mxu1 %v10154_v54  ;;  %8310 = vmatprep.subr.bf16.mxu0 %v10154_v54 }
 0x1a9   : > { %1536 = vmatprep.mubr.bf16.mxu1 %v9332_v59  ;;  %1890 = vmatprep.mubr.bf16.mxu0 %v9335_v60  ;;  %v9410_v59 = vld [vmem:[%s12621_s9 + $0x380] ss:$8 sps:$4 sm:$0xff]   ;;  %v9395_v60 = vld [vmem:[%s12621_s9 + $0x2d4] ss:$8 sps:$4 sm:$0xff]  }
 0x1ab   : > { %8191 = vmatpush3.bf16.msra.mxu1 %v10122_v43  ;;  %8311 = vmatpush3.bf16.msra.mxu0 %v10122_v43 }
 0x1ac   : > { %8192 = vmatprep.subr.bf16.mxu1 %v10172_v13  ;;  %8312 = vmatprep.subr.bf16.mxu0 %v10172_v13 }
 0x1ae   : > { %1537 = vmatmul.mubr.bf16.gmra.mrb[84].mxu1 %v9334_v62  ;;  %1891 = vmatmul.mubr.bf16.gmra.mrb[52].mxu0 %v9337_v63  ;;  %v9414_v62 = vld [vmem:[%s12615_s3] sm:$0xff]   ;;  %v9418_v63 = vld [vmem:[%s12615_s3 + $0x48] sm:$0xff]  }
 0x1af   : > { %8193 = vmatpush3.bf16.msra.mxu1 %v10132_v0  ;;  %8313 = vmatpush3.bf16.msra.mxu0 %v10132_v0 }
 0x1b0   : > { %8194 = vmatprep.subr.bf16.mxu1 %v10168_v10  ;;  %8314 = vmatprep.subr.bf16.mxu0 %v10168_v10 }
 0x1b1   : > { %1544 = vmatprep.mubr.bf16.mxu1 %v9338_v1  ;;  %1898 = vmatprep.mubr.bf16.mxu0 %v9341_v2  ;;  %v9420_v1 = vld [vmem:[%s12621_s9 + $0x394] ss:$8 sps:$4 sm:$0xff]   ;;  %v9419_v2 = vld [vmem:[%s12615_s3 + $0x8] sm:$0xff]  }
 0x1b3   : > { %8195 = vmatpush3.bf16.msra.mxu1 %v10130_v61  ;;  %8315 = vmatpush3.bf16.msra.mxu0 %v10130_v61 }
 0x1b4   : > { %8196 = vmatprep.subr.bf16.mxu1 %v10188_v35  ;;  %8316 = vmatprep.subr.bf16.mxu0 %v10188_v35 }
 0x1b6   : > { %1545 = vmatmul.mubr.bf16.gmra.mrb[88].mxu1 %v9340_v3  ;;  %1899 = vmatmul.mubr.bf16.gmra.mrb[56].mxu0 %v9343_v4  ;;  %v9423_v3 = vld [vmem:[%s12615_s3 + $0x50] sm:$0xff]  }
 0x1b7   : > { %8197 = vmatpush3.bf16.msra.mxu1 %v10140_v18  ;;  %8317 = vmatpush3.bf16.msra.mxu0 %v10140_v18  ;;  %v9397_v4 = vld [vmem:[%s12621_s9 + $0x2d0] ss:$8 sps:$4 sm:$0xff]  }
 0x1b8   : > { %8198 = vmatprep.subr.bf16.mxu1 %v10184_v31  ;;  %8318 = vmatprep.subr.bf16.mxu0 %v10184_v31 }
 0x1b9   : > { %1552 = vmatprep.mubr.bf16.mxu1 %v9344_v5  ;;  %1906 = vmatprep.mubr.bf16.mxu0 %v9347_v6  ;;  %v9422_v5 = vld [vmem:[%s12621_s9 + $0x390] ss:$8 sps:$4 sm:$0xff]   ;;  %v9401_v6 = vld [vmem:[%s12621_s9 + $0x2e4] ss:$8 sps:$4 sm:$0xff]  }
 0x1bb   : > { %8199 = vmatpush3.bf16.msra.mxu1 %v10138_v15  ;;  %8319 = vmatpush3.bf16.msra.mxu0 %v10138_v15 }
 0x1bc   : > { %8200 = vmatprep.subr.bf16.mxu1 %v10204_v27  ;;  %8320 = vmatprep.subr.bf16.mxu0 %v10204_v27 }
 0x1be   : > { %1553 = vmatmul.mubr.bf16.gmra.mrb[92].mxu1 %v9346_v7  ;;  %1907 = vmatmul.mubr.bf16.gmra.mrb[60].mxu0 %v9349_v8  ;;  %v9424_v7 = vld [vmem:[%s12615_s3 + $0x10] sm:$0xff]   ;;  %v9428_v8 = vld [vmem:[%s12615_s3 + $0x58] sm:$0xff]  }
 0x1bf   : > { %8201 = vmatpush3.bf16.msra.mxu1 %v10148_v37  ;;  %8321 = vmatpush3.bf16.msra.mxu0 %v10148_v37 }
 0x1c0   : > { %8202 = vmatprep.subr.bf16.mxu1 %v10200_v53  ;;  %8322 = vmatprep.subr.bf16.mxu0 %v10200_v53 }
 0x1c1   : > { %1764 = vmatprep.mubr.bf16.mxu1 %v9352_v9  ;;  %2118 = vmatprep.mubr.bf16.mxu0 %v9355_v11  ;;  %v9430_v9 = vld [vmem:[%s12621_s9 + $0x3a4] ss:$8 sps:$4 sm:$0xff]   ;;  %v9429_v11 = vld [vmem:[%s12615_s3 + $0x18] sm:$0xff]  }
 0x1c3   : > { %8203 = vmatpush3.bf16.msra.mxu1 %v10146_v34  ;;  %8323 = vmatpush3.bf16.msra.mxu0 %v10146_v34 }
 0x1c4   : > { %8268 = vmatprep.subr.bf16.mxu1 %v10156_v57  ;;  %8388 = vmatprep.subr.bf16.mxu0 %v10156_v57 }
 0x1c6   : > { %1765 = vmatmul.mubr.bf16.vlgmr.msra.gmra.mrb[96].mxu1 %v9350_v12  ;;  %2119 = vmatmul.mubr.bf16.vlgmr.msra.gmra.mrb[64].mxu0 %v9353_v14  ;;  %v9433_v12 = vld [vmem:[%s12615_s3 + $0x60] sm:$0xff]  }
 0x1c7   : > { %8269 = vmatpush3.bf16.msra.mxu1 %v10124_v46  ;;  %8389 = vmatpush3.bf16.msra.mxu0 %v10124_v46  ;;  %v9403_v14 = vld [vmem:[%s12621_s9 + $0x2e0] ss:$8 sps:$4 sm:$0xff]  }
 0x1c8   : > { %8270 = vmatprep.subr.bf16.mxu1 %v10154_v54  ;;  %8390 = vmatprep.subr.bf16.mxu0 %v10154_v54 }
 0x1c9   : > { %1772 = vmatprep.mubr.bf16.mxu1 %v9356_v16  ;;  %2126 = vmatprep.mubr.bf16.mxu0 %v9359_v17  ;;  %v9432_v16 = vld [vmem:[%s12621_s9 + $0x3a0] ss:$8 sps:$4 sm:$0xff]   ;;  %v9407_v17 = vld [vmem:[%s12621_s9 + $0x2f4] ss:$8 sps:$4 sm:$0xff]  }
 0x1cb   : > { %8271 = vmatpush3.bf16.msra.mxu1 %v10122_v43  ;;  %8391 = vmatpush3.bf16.msra.mxu0 %v10122_v43 }
 0x1cc   : > { %8272 = vmatprep.subr.bf16.mxu1 %v10172_v13  ;;  %8392 = vmatprep.subr.bf16.mxu0 %v10172_v13 }
 0x1ce   : > { %1773 = vmatmul.mubr.bf16.gmra.mrb[100].mxu1 %v9358_v19  ;;  %2127 = vmatmul.mubr.bf16.gmra.mrb[68].mxu0 %v9361_v20  ;;  %v9434_v19 = vld [vmem:[%s12615_s3 + $0x20] sm:$0xff]   ;;  %v9438_v20 = vld [vmem:[%s12615_s3 + $0x68] sm:$0xff]  }
 0x1cf   : > { %8273 = vmatpush3.bf16.msra.mxu1 %v10132_v0  ;;  %8393 = vmatpush3.bf16.msra.mxu0 %v10132_v0 }
 0x1d0   : > { %8274 = vmatprep.subr.bf16.mxu1 %v10168_v10  ;;  %8394 = vmatprep.subr.bf16.mxu0 %v10168_v10 }
 0x1d1   : > { %1780 = vmatprep.mubr.bf16.mxu1 %v9362_v21  ;;  %2134 = vmatprep.mubr.bf16.mxu0 %v9365_v22  ;;  %v9440_v21 = vld [vmem:[%s12621_s9 + $0x3b4] ss:$8 sps:$4 sm:$0xff]   ;;  %v9439_v22 = vld [vmem:[%s12615_s3 + $0x28] sm:$0xff]  }
 0x1d3   : > { %8275 = vmatpush3.bf16.msra.mxu1 %v10130_v61  ;;  %8395 = vmatpush3.bf16.msra.mxu0 %v10130_v61 }
 0x1d4   : > { %8276 = vmatprep.subr.bf16.mxu1 %v10188_v35  ;;  %8396 = vmatprep.subr.bf16.mxu0 %v10188_v35 }
 0x1d6   : > { %1781 = vmatmul.mubr.bf16.gmra.mrb[104].mxu1 %v9364_v23  ;;  %2135 = vmatmul.mubr.bf16.gmra.mrb[72].mxu0 %v9367_v24  ;;  %v9443_v24 = vld [vmem:[%s12615_s3 + $0x70] sm:$0xff]  }
 0x1d7   : > { %8277 = vmatpush3.bf16.msra.mxu1 %v10140_v18  ;;  %8397 = vmatpush3.bf16.msra.mxu0 %v10140_v18 }
 0x1d8   : > { %8278 = vmatprep.subr.bf16.mxu1 %v10184_v31  ;;  %8398 = vmatprep.subr.bf16.mxu0 %v10184_v31 }
 0x1d9   : > { %1788 = vmatprep.mubr.bf16.mxu1 %v9368_v25  ;;  %2142 = vmatprep.mubr.bf16.mxu0 %v9371_v26  ;;  %v9409_v26 = vld [vmem:[%s12621_s9 + $0x2f0] ss:$8 sps:$4 sm:$0xff]  }
 0x1db   : > { %8279 = vmatpush3.bf16.msra.mxu1 %v10138_v15  ;;  %8399 = vmatpush3.bf16.msra.mxu0 %v10138_v15 }
 0x1dc   : > { %8280 = vmatprep.subr.bf16.mxu1 %v10204_v27  ;;  %8400 = vmatprep.subr.bf16.mxu0 %v10204_v27 }
 0x1de   : > { %1789 = vmatmul.mubr.bf16.gmra.mrb[108].mxu1 %v9370_v28  ;;  %2143 = vmatmul.mubr.bf16.gmra.mrb[76].mxu0 %v9373_v29  ;;  %v9442_v29 = vld [vmem:[%s12621_s9 + $0x3b0] ss:$8 sps:$4 sm:$0xff]  }
 0x1df   : > { %8281 = vmatpush3.bf16.msra.mxu1 %v10148_v37  ;;  %8401 = vmatpush3.bf16.msra.mxu0 %v10148_v37 }
 0x1e0   : > { %8282 = vmatprep.subr.bf16.mxu1 %v10200_v53  ;;  %8402 = vmatprep.subr.bf16.mxu0 %v10200_v53 }
 0x1e1   : > { %2000 = vmatprep.mubr.bf16.mxu1 %v9376_v30  ;;  %2354 = vmatprep.mubr.bf16.mxu0 %v9379_v32  ;;  %v9417_v32 = vld [vmem:[%s12621_s9 + $0x344] ss:$8 sps:$4 sm:$0xff]  }
 0x1e3   : > { %8283 = vmatpush3.bf16.msra.mxu1 %v10146_v34  ;;  %8403 = vmatpush3.bf16.msra.mxu0 %v10146_v34 }
 0x1e4   : > { %8348 = vmatprep.subr.bf16.mxu1 %v10156_v57  ;;  %8468 = vmatprep.subr.bf16.mxu0 %v10156_v57 }
 0x1e6   : > { %2001 = vmatmul.mubr.bf16.vlgmr.msra.gmra.mrb[112].mxu1 %v9374_v33  ;;  %2355 = vmatmul.mubr.bf16.vlgmr.msra.gmra.mrb[80].mxu0 %v9377_v36 }
 0x1e7   : > { %8349 = vmatpush3.bf16.msra.mxu1 %v10124_v46  ;;  %8469 = vmatpush3.bf16.msra.mxu0 %v10124_v46 }
 0x1e8   : > { %8350 = vmatprep.subr.bf16.mxu1 %v10154_v54  ;;  %8470 = vmatprep.subr.bf16.mxu0 %v10154_v54 }
 0x1e9   : > { %2008 = vmatprep.mubr.bf16.mxu1 %v9380_v38  ;;  %2362 = vmatprep.mubr.bf16.mxu0 %v9392_v39 }
 0x1eb   : > { %8351 = vmatpush3.bf16.msra.mxu1 %v10122_v43  ;;  %8471 = vmatpush3.bf16.msra.mxu0 %v10122_v43 }
 0x1ec   : > { %8352 = vmatprep.subr.bf16.mxu1 %v10172_v13  ;;  %8472 = vmatprep.subr.bf16.mxu0 %v10172_v13 }
 0x1ee   : > { %2009 = vmatmul.mubr.bf16.gmra.mrb[116].mxu1 %v9382_v40  ;;  %2363 = vmatmul.mubr.bf16.gmra.mrb[84].mxu0 %v9394_v41  ;;  %v9444_v41 = vld [vmem:[%s12615_s3 + $0x30] sm:$0xff]  }
 0x1ef   : > { %8353 = vmatpush3.bf16.msra.mxu1 %v10132_v0  ;;  %8473 = vmatpush3.bf16.msra.mxu0 %v10132_v0 }
 0x1f0   : > { %8354 = vmatprep.subr.bf16.mxu1 %v10168_v10  ;;  %8474 = vmatprep.subr.bf16.mxu0 %v10168_v10 }
 0x1f1   : > { %2016 = vmatprep.mubr.bf16.mxu1 %v9383_v42  ;;  %2370 = vmatprep.mubr.bf16.mxu0 %v9398_v44 }
 0x1f3   : > { %8355 = vmatpush3.bf16.msra.mxu1 %v10130_v61  ;;  %8475 = vmatpush3.bf16.msra.mxu0 %v10130_v61 }
 0x1f4   : > { %8356 = vmatprep.subr.bf16.mxu1 %v10188_v35  ;;  %8476 = vmatprep.subr.bf16.mxu0 %v10188_v35 }
 0x1f6   : > { %2017 = vmatmul.mubr.bf16.gmra.mrb[120].mxu1 %v9385_v45  ;;  %2371 = vmatmul.mubr.bf16.gmra.mrb[88].mxu0 %v9400_v47  ;;  %v9448_v45 = vld [vmem:[%s12615_s3 + $0x78] sm:$0xff]  }
 0x1f7   : > { %8357 = vmatpush3.bf16.msra.mxu1 %v10140_v18  ;;  %8477 = vmatpush3.bf16.msra.mxu0 %v10140_v18 }
 0x1f8   : > { %8358 = vmatprep.subr.bf16.mxu1 %v10184_v31  ;;  %8478 = vmatprep.subr.bf16.mxu0 %v10184_v31 }
 0x1f9   : > { %2024 = vmatprep.mubr.bf16.mxu1 %v9386_v48  ;;  %2378 = vmatprep.mubr.bf16.mxu0 %v9404_v49 }
 0x1fb   : > { %8359 = vmatpush3.bf16.msra.mxu1 %v10138_v15  ;;  %8479 = vmatpush3.bf16.msra.mxu0 %v10138_v15 }
 0x1fc   : > { %8360 = vmatprep.subr.bf16.mxu1 %v10204_v27  ;;  %8480 = vmatprep.subr.bf16.mxu0 %v10204_v27 }
 0x1fe   : > { %2025 = vmatmul.mubr.bf16.gmra.mrb[124].mxu1 %v9388_v50  ;;  %2379 = vmatmul.mubr.bf16.gmra.mrb[92].mxu0 %v9406_v51  ;;  %v9449_v50 = vld [vmem:[%s12615_s3 + $0x38] sm:$0xff]  }
 0x1ff   : > { %8361 = vmatpush3.bf16.msra.mxu1 %v10148_v37  ;;  %8481 = vmatpush3.bf16.msra.mxu0 %v10148_v37 }
 0x200   : > { %8362 = vmatprep.subr.bf16.mxu1 %v10200_v53  ;;  %8482 = vmatprep.subr.bf16.mxu0 %v10200_v53 }
 0x201   : > { %2236 = vmatprep.mubr.bf16.mxu1 %v9391_v52  ;;  %2590 = vmatprep.mubr.bf16.mxu0 %v9412_v55  ;;  %v9477_v52 = vld [vmem:[%s12615_s3 + $0x140] sm:$0xff]  }
 0x203   : > { %8363 = vmatpush3.bf16.msra.mxu1 %v10146_v34  ;;  %8483 = vmatpush3.bf16.msra.mxu0 %v10146_v34 }
 0x204   : > { %8428 = vmatprep.subr.bf16.mxu1 %v10156_v57  ;;  %8548 = vmatprep.subr.bf16.mxu0 %v9413_v56  ;;  %v9415_v56 = vld [vmem:[%s12621_s9 + $0x340] ss:$8 sps:$4 sm:$0xff]  }
 0x206   : > { %2237 = vmatmul.mubr.bf16.vlgmr.msra.gmra.mrb[128].mxu1 %v9389_v58  ;;  %2591 = vmatmul.mubr.bf16.vlgmr.msra.gmra.mrb[96].mxu0 %v9410_v59 }
 0x207   : > { %8429 = vmatpush3.bf16.msra.mxu1 %v10124_v46  ;;  %2244 = vmatprep.mubr.bf16.mxu1 %v9395_v60  ;;  %v9425_v60 = vld [vmem:[%s12621_s9 + $0x354] ss:$8 sps:$4 sm:$0xff]  }
 0x208   : > { %8430 = vmatprep.subr.bf16.mxu1 %v10154_v54  ;;  %8549 = vmatpush3.bf16.msra.mxu0 %v9414_v62 }
 0x209   : > { %8550 = vmatprep.subr.bf16.mxu0 %v9418_v63  ;;  %2598 = vmatprep.mubr.bf16.mxu0 %v9420_v1 }
 0x20b   : > { %8431 = vmatpush3.bf16.msra.mxu1 %v10122_v43 }
 0x20c   : > { %8432 = vmatprep.subr.bf16.mxu1 %v10172_v13  ;;  %8551 = vmatpush3.bf16.msra.mxu0 %v9419_v2 }
 0x20d   : > { %8552 = vmatprep.subr.bf16.mxu0 %v9423_v3 }
 0x20e   : > { %2245 = vmatmul.mubr.bf16.gmra.mrb[132].mxu1 %v9397_v4  ;;  %2599 = vmatmul.mubr.bf16.gmra.mrb[100].mxu0 %v9422_v5 }
 0x20f   : > { %8433 = vmatpush3.bf16.msra.mxu1 %v10132_v0  ;;  %2252 = vmatprep.mubr.bf16.mxu1 %v9401_v6 }
 0x210   : > { %8434 = vmatprep.subr.bf16.mxu1 %v10168_v10  ;;  %8553 = vmatpush3.bf16.msra.mxu0 %v9424_v7 }
 0x211   : > { %8554 = vmatprep.subr.bf16.mxu0 %v9428_v8  ;;  %2606 = vmatprep.mubr.bf16.mxu0 %v9430_v9 }
 0x213   : > { %8435 = vmatpush3.bf16.msra.mxu1 %v10130_v61 }
 0x214   : > { %8436 = vmatprep.subr.bf16.mxu1 %v10188_v35  ;;  %8555 = vmatpush3.bf16.msra.mxu0 %v9429_v11  ;;  %v9427_v11 = vld [vmem:[%s12621_s9 + $0x350] ss:$8 sps:$4 sm:$0xff]  }
 0x215   : > { %8556 = vmatprep.subr.bf16.mxu0 %v9433_v12 }
 0x216   : > { %2253 = vmatmul.mubr.bf16.gmra.mrb[136].mxu1 %v9403_v14  ;;  %2607 = vmatmul.mubr.bf16.gmra.mrb[104].mxu0 %v9432_v16 }
 0x217   : > { %8437 = vmatpush3.bf16.msra.mxu1 %v10140_v18  ;;  %2260 = vmatprep.mubr.bf16.mxu1 %v9407_v17  ;;  %v9435_v17 = vld [vmem:[%s12621_s9 + $0x364] ss:$8 sps:$4 sm:$0xff]  }
 0x218   : > { %8438 = vmatprep.subr.bf16.mxu1 %v10184_v31  ;;  %8557 = vmatpush3.bf16.msra.mxu0 %v9434_v19 }
 0x219   : > { %v7924_v23 = vpop.f32.mrb[32].mxu1  ;;  %8558 = vmatprep.subr.bf16.mxu0 %v9438_v20  ;;  %2614 = vmatprep.mubr.bf16.mxu0 %v9440_v21  ;;  %v8004_v25 = vpop.f32.mrb[0].mxu0 }
 0x21a   : > { %v7925_v28 = vpop.f32.mrb[33].mxu1  ;;  %v8005_v30 = vpop.f32.mrb[1].mxu0 }
 0x21b   : > { %8439 = vmatpush3.bf16.msra.mxu1 %v10138_v15  ;;  %v10790_v33 = vadd.f32 %v7925_v28, %v7924_v23  ;;  %v7927_v36 = vpop.f32.mrb[34].mxu1  ;;  %v10792_v38 = vadd.f32 %v8005_v30, %v8004_v25  ;;  %v8007_v39 = vpop.f32.mrb[2].mxu0  ;;  %v9437_v28 = vld [vmem:[%s12621_s9 + $0x360] ss:$8 sps:$4 sm:$0xff]  }
 0x21c   : > { %8440 = vmatprep.subr.bf16.mxu1 %v10204_v27  ;;  %v7928_v40 = vpop.f32.mrb[35].mxu1  ;;  %8559 = vmatpush3.bf16.msra.mxu0 %v9439_v22  ;;  %v8008_v42 = vpop.f32.mrb[3].mxu0 }
 0x21d   : > { %v10798_v44 = vadd.f32 %v7928_v40, %v7927_v36  ;;  %8560 = vmatprep.subr.bf16.mxu0 %v9443_v24  ;;  %v10803_v47 = vadd.f32 %v8008_v42, %v8007_v39 }
 0x21e   : > { %2261 = vmatmul.mubr.bf16.gmra.mrb[140].mxu1 %v9409_v26  ;;  %2615 = vmatmul.mubr.bf16.gmra.mrb[108].mxu0 %v9442_v29 }
 0x21f   : > { %8441 = vmatpush3.bf16.msra.mxu1 %v10148_v37  ;;  %2472 = vmatprep.mubr.bf16.mxu1 %v9417_v32  ;;  %v971_v48 = vpack.c.bf16 %v10798_v44, %v10790_v33  ;;  %v1207_v49 = vpack.c.bf16 %v10803_v47, %v10792_v38  ;;  %v9445_v32 = vld [vmem:[%s12621_s9 + $0x374] ss:$8 sps:$4 sm:$0xff]  }
 0x220   : > { %8442 = vmatprep.subr.bf16.mxu1 %v10200_v53  ;;  %8561 = vmatpush3.bf16.msra.mxu0 %v9444_v41 }
 0x221   : > { %v7930_v51 = vpop.f32.mrb[36].mxu1  ;;  %8562 = vmatprep.subr.bf16.mxu0 %v9448_v45  ;;  %v8010_v55 = vpop.f32.mrb[4].mxu0 }
 0x222   : > { %v7931_v58 = vpop.f32.mrb[37].mxu1  ;;  %v8011_v59 = vpop.f32.mrb[5].mxu0 }
 0x223   : > { %8443 = vmatpush3.bf16.msra.mxu1 %v10146_v34  ;;  %v10824_v62 = vadd.f32 %v7931_v58, %v7930_v51  ;;  %v7933_v63 = vpop.f32.mrb[38].mxu1  ;;  %v10826_v1 = vadd.f32 %v8011_v59, %v8010_v55  ;;  %v8013_v2 = vpop.f32.mrb[6].mxu0 }
 0x224   : > { %8508 = vmatprep.subr.bf16.mxu1 %v10156_v57  ;;  %v7934_v3 = vpop.f32.mrb[39].mxu1  ;;  %8563 = vmatpush3.bf16.msra.mxu0 %v9449_v50  ;;  %v8014_v4 = vpop.f32.mrb[7].mxu0 }
 0x225   : > { %v10829_v5 = vadd.f32 %v7934_v3, %v7933_v63  ;;  %8628 = vmatprep.subr.bf16.mxu0 %v9477_v52  ;;  %v10831_v6 = vadd.f32 %v8014_v4, %v8013_v2  ;;  %v9447_v52 = vld [vmem:[%s12621_s9 + $0x370] ss:$8 sps:$4 sm:$0xff]  }
 0x226   : > { %2473 = vmatmul.mubr.bf16.vlgmr.msra.gmra.mrb[144].mxu1 %v9415_v56 }
 0x227   : > { %8509 = vmatpush3.bf16.msra.mxu1 %v10124_v46  ;;  %2480 = vmatprep.mubr.bf16.mxu1 %v9425_v60  ;;  %v972_v7 = vpack.c.bf16 %v10829_v5, %v10824_v62  ;;  %v1208_v8 = vpack.c.bf16 %v10831_v6, %v10826_v1 }
 0x228   : > { %8510 = vmatprep.subr.bf16.mxu1 %v10154_v54 }
 0x229   : > { %v7936_v57 = vpop.f32.mrb[40].mxu1  ;;  %v8016_v9 = vpop.f32.mrb[8].mxu0 }
 0x22a   : > { %v7937_v12 = vpop.f32.mrb[41].mxu1  ;;  %v8017_v14 = vpop.f32.mrb[9].mxu0 }
 0x22b   : > { %8511 = vmatpush3.bf16.msra.mxu1 %v10122_v43  ;;  %v10843_v46 = vadd.f32 %v7937_v12, %v7936_v57  ;;  %v7939_v16 = vpop.f32.mrb[42].mxu1  ;;  %v10848_v19 = vadd.f32 %v8017_v14, %v8016_v9  ;;  %v8019_v54 = vpop.f32.mrb[10].mxu0  ;;  %v9480_v9 = vld [vmem:[%s12615_s3 + $0x148] sm:$0xff]  }
 0x22c   : > { %8512 = vmatprep.subr.bf16.mxu1 %v10172_v13  ;;  %v7940_v20 = vpop.f32.mrb[43].mxu1  ;;  %v8020_v21 = vpop.f32.mrb[11].mxu0 }
 0x22d   : > { %v10851_v22 = vadd.f32 %v7940_v20, %v7939_v16  ;;  %v10853_v23 = vadd.f32 %v8020_v21, %v8019_v54  ;;  %v9454_v54 = vld [vmem:[%s12615_s3 + $0x80] sm:$0xff]   ;;  %v9457_v20 = vld [vmem:[%s12621_s9 + $0x3d4] ss:$8 sps:$4 sm:$0xff]   ;;  %v9455_v21 = vld [vmem:[%s12615_s3 + $0xc8] sm:$0xff]  }
 0x22e   : > { %2481 = vmatmul.mubr.bf16.gmra.mrb[148].mxu1 %v9427_v11 }
 0x22f   : > { %8513 = vmatpush3.bf16.msra.mxu1 %v10132_v0  ;;  %v973_v43 = vpack.c.bf16 %v10851_v22, %v10843_v46  ;;  %2488 = vmatprep.mubr.bf16.mxu1 %v9435_v17  ;;  %v1209_v24 = vpack.c.bf16 %v10853_v23, %v10848_v19 }
 0x230   : > { %8514 = vmatprep.subr.bf16.mxu1 %v10168_v10 }
 0x231   : > { %v7942_v25 = vpop.f32.mrb[44].mxu1  ;;  %v8022_v13 = vpop.f32.mrb[12].mxu0 }
 0x232   : > { %v7943_v26 = vpop.f32.mrb[45].mxu1  ;;  %v8023_v29 = vpop.f32.mrb[13].mxu0 }
 0x233   : > { %8515 = vmatpush3.bf16.msra.mxu1 %v10130_v61  ;;  %v10865_v0 = vadd.f32 %v7943_v26, %v7942_v25  ;;  %v7945_v30 = vpop.f32.mrb[46].mxu1  ;;  %v10870_v36 = vadd.f32 %v8023_v29, %v8022_v13  ;;  %v8025_v10 = vpop.f32.mrb[14].mxu0  ;;  %v9482_v26 = vld [vmem:[%s12615_s3 + $0x150] sm:$0xff]  }
 0x234   : > { %8516 = vmatprep.subr.bf16.mxu1 %v10188_v35  ;;  %v7946_v39 = vpop.f32.mrb[47].mxu1  ;;  %v8026_v40 = vpop.f32.mrb[15].mxu0 }
 0x235   : > { %v10873_v41 = vadd.f32 %v7946_v39, %v7945_v30  ;;  %v10875_v42 = vadd.f32 %v8026_v40, %v8025_v10  ;;  %v9456_v30 = vld [vmem:[%s12615_s3 + $0x88] sm:$0xff]   ;;  %v9460_v10 = vld [vmem:[%s12615_s3 + $0xd0] sm:$0xff]  }
 0x236   : > { %2489 = vmatmul.mubr.bf16.gmra.mrb[152].mxu1 %v9437_v28  ;;  %v9483_v39 = vld [vmem:[%s12615_s3 + $0x110] sm:$0xff]  }
 0x237   : > { %8517 = vmatpush3.bf16.msra.mxu1 %v10140_v18  ;;  %v974_v61 = vpack.c.bf16 %v10873_v41, %v10865_v0  ;;  %2496 = vmatprep.mubr.bf16.mxu1 %v9445_v32  ;;  %v1210_v45 = vpack.c.bf16 %v10875_v42, %v10870_v36  ;;  %v9452_v18 = vld [vmem:[%s12621_s9 + $0x3c4] ss:$8 sps:$4 sm:$0xff]   ;;  %v9476_v0 = vld [vmem:[%s12615_s3 + $0xf8] sm:$0xff]  }
 0x238   : > { %8518 = vmatprep.subr.bf16.mxu1 %v10184_v31  ;;  %v9493_v41 = vld [vmem:[%s12615_s3 + $0x138] sm:$0xff]   ;;  %v9526_v36 = vld [vmem:[%s12615_s3 + $0x2c0] sm:$0xff]  }
 0x239   : > { %v7964_v50 = vpop.f32.mrb[48].mxu1  ;;  %v8084_v35 = vpop.f32.mrb[16].mxu0 }
 0x23a   : > { %v7965_v51 = vpop.f32.mrb[49].mxu1  ;;  %v8085_v55 = vpop.f32.mrb[17].mxu0 }
 0x23b   : > { %v7966_v56 = vadd.f32 %v7965_v51, %v7964_v50  ;;  %v7967_v58 = vpop.f32.mrb[50].mxu1  ;;  %8519 = vmatpush3.bf16.msra.mxu1 %v10138_v15  ;;  %v10890_v59 = vadd.f32 %v8085_v55, %v8084_v35  ;;  %v8087_v60 = vpop.f32.mrb[18].mxu0  ;;  %v9479_v15 = vld [vmem:[%s12615_s3 + $0x100] sm:$0xff]   ;;  %v9484_v50 = vld [vmem:[%s12615_s3 + $0x158] sm:$0xff]  }
 0x23c   : > { %v7968_v31 = vpop.f32.mrb[51].mxu1  ;;  %8520 = vmatprep.subr.bf16.mxu1 %v10204_v27  ;;  %v8088_v63 = vpop.f32.mrb[19].mxu0  ;;  %v9453_v27 = vld [vmem:[%s12615_s3 + $0xc0] sm:$0xff]  }
 0x23d   : > { %v7969_v2 = vadd.f32 %v7968_v31, %v7967_v58  ;;  %v10893_v3 = vadd.f32 %v8088_v63, %v8087_v60  ;;  %v9464_v60 = vld [vmem:[%s12621_s9 + $0x3e4] ss:$8 sps:$4 sm:$0xff]   ;;  %v9485_v63 = vld [vmem:[%s12615_s3 + $0x118] sm:$0xff]  }
 0x23e   : > { %2497 = vmatmul.mubr.bf16.gmra.mrb[156].mxu1 %v9447_v52  ;;  %v9459_v52 = vld [vmem:[%s12621_s9 + $0x3d0] ss:$8 sps:$4 sm:$0xff]  }
 0x23f   : > { %v1089_v4 = vpack.c.bf16 %v7969_v2, %v7966_v56  ;;  %8521 = vmatpush3.bf16.msra.mxu1 %v10148_v37  ;;  %2708 = vmatprep.mubr.bf16.mxu1 %v9452_v18  ;;  %v1443_v57 = vpack.c.bf16 %v10893_v3, %v10890_v59  ;;  %v9461_v18 = vld [vmem:[%s12615_s3 + $0x90] sm:$0xff]  }
 0x240   : > { %8522 = vmatprep.subr.bf16.mxu1 %v10200_v53  ;;  %v9450_v53 = vld [vmem:[%s12621_s9 + $0x3c0] ss:$8 sps:$4 sm:$0xff]  }
 0x241   : > { %v7970_v11 = vpop.f32.mrb[52].mxu1  ;;  %3808 = vmatprep.mubr.bf16.mxu0 %v1089_v4  ;;  %v8090_v37 = vpop.f32.mrb[20].mxu0 }
 0x242   : > { %v7971_v12 = vpop.f32.mrb[53].mxu1  ;;  %3809 = vmatmul.mubr.bf16.vlgmr.msra.gmra.mrb[112].mxu0 %v971_v48  ;;  %v8091_v14 = vpop.f32.mrb[21].mxu0 }
 0x243   : > { %v7972_v16 = vadd.f32 %v7971_v12, %v7970_v11  ;;  %v7973_v17 = vpop.f32.mrb[54].mxu1  ;;  %8523 = vmatpush3.bf16.msra.mxu1 %v10146_v34  ;;  %8629 = vmatpush3.bf16.msra.mxu0 %v9479_v15  ;;  %v10921_v33 = vadd.f32 %v8091_v14, %v8090_v37  ;;  %v8093_v44 = vpop.f32.mrb[22].mxu0  ;;  %v9481_v34 = vld [vmem:[%s12615_s3 + $0x108] sm:$0xff]   ;;  %v9486_v15 = vld [vmem:[%s12615_s3 + $0x160] sm:$0xff]   ;;  %v9463_v11 = vld [vmem:[%s12615_s3 + $0x98] sm:$0xff]  }
 0x244   : > { %v7974_v48 = vpop.f32.mrb[55].mxu1  ;;  %8588 = vmatprep.subr.bf16.mxu1 %v9453_v27  ;;  %8630 = vmatprep.subr.bf16.mxu0 %v9480_v9  ;;  %v8094_v25 = vpop.f32.mrb[23].mxu0  ;;  %v9467_v12 = vld [vmem:[%s12615_s3 + $0xe0] sm:$0xff]  }
 0x245   : > { %v7975_v13 = vadd.f32 %v7974_v48, %v7973_v17  ;;  %v10932_v28 = vadd.f32 %v8094_v25, %v8093_v44  ;;  %v9471_v25 = vld [vmem:[%s12621_s9 + $0x3f4] ss:$8 sps:$4 sm:$0xff]  }
 0x246   : > { %2709 = vmatmul.mubr.bf16.vlgmr.msra.gmra.mrb[160].mxu1 %v9450_v53  ;;  %v9487_v53 = vld [vmem:[%s12615_s3 + $0x120] sm:$0xff]  }
 0x247   : > { %v1090_v29 = vpack.c.bf16 %v7975_v13, %v7972_v16  ;;  %8589 = vmatpush3.bf16.msra.mxu1 %v9454_v54  ;;  %2716 = vmatprep.mubr.bf16.mxu1 %v9457_v20  ;;  %v1444_v32 = vpack.c.bf16 %v10932_v28, %v10921_v33  ;;  %v9488_v16 = vld [vmem:[%s12615_s3 + $0x168] sm:$0xff]  }
 0x248   : > { %8590 = vmatprep.subr.bf16.mxu1 %v9455_v21  ;;  %8631 = vmatpush3.bf16.msra.mxu0 %v9481_v34  ;;  %v9466_v20 = vld [vmem:[%s12621_s9 + $0x3e0] ss:$8 sps:$4 sm:$0xff]  }
 0x249   : > { %v7976_v40 = vpop.f32.mrb[56].mxu1  ;;  %3816 = vmatprep.mubr.bf16.mxu0 %v1090_v29  ;;  %8632 = vmatprep.subr.bf16.mxu0 %v9482_v26  ;;  %v8096_v35 = vpop.f32.mrb[24].mxu0  ;;  %v9468_v34 = vld [vmem:[%s12615_s3 + $0xa0] sm:$0xff]   ;;  %v9489_v26 = vld [vmem:[%s12615_s3 + $0x128] sm:$0xff]  }
 0x24a   : > { %v7977_v51 = vpop.f32.mrb[57].mxu1  ;;  %3817 = vmatmul.mubr.bf16.gmra.mrb[116].mxu0 %v972_v7  ;;  %v8097_v55 = vpop.f32.mrb[25].mxu0  ;;  %v9462_v7 = vld [vmem:[%s12615_s3 + $0xd8] sm:$0xff]  }
 0x24b   : > { %v7978_v56 = vadd.f32 %v7977_v51, %v7976_v40  ;;  %v7979_v58 = vpop.f32.mrb[58].mxu1  ;;  %8591 = vmatpush3.bf16.msra.mxu1 %v9456_v30  ;;  %v10960_v31 = vadd.f32 %v8097_v55, %v8096_v35  ;;  %v8099_v62 = vpop.f32.mrb[26].mxu0  ;;  %v9474_v51 = vld [vmem:[%s12615_s3 + $0xf0] sm:$0xff]  }
 0x24c   : > { %v7980_v5 = vpop.f32.mrb[59].mxu1  ;;  %8592 = vmatprep.subr.bf16.mxu1 %v9460_v10  ;;  %8633 = vmatpush3.bf16.msra.mxu0 %v9483_v39  ;;  %v8100_v2 = vpop.f32.mrb[27].mxu0  ;;  %v9490_v10 = vld [vmem:[%s12615_s3 + $0x170] sm:$0xff]  }
 0x24d   : > { %v7981_v4 = vadd.f32 %v7980_v5, %v7979_v58  ;;  %8634 = vmatprep.subr.bf16.mxu0 %v9484_v50  ;;  %v10971_v27 = vadd.f32 %v8100_v2, %v8099_v62  ;;  %v9470_v50 = vld [vmem:[%s12615_s3 + $0xa8] sm:$0xff]  }
 0x24e   : > { %2717 = vmatmul.mubr.bf16.gmra.mrb[164].mxu1 %v9459_v52  ;;  %v9491_v52 = vld [vmem:[%s12615_s3 + $0x130] sm:$0xff]  }
 0x24f   : > { %v1091_v9 = vpack.c.bf16 %v7981_v4, %v7978_v56  ;;  %8593 = vmatpush3.bf16.msra.mxu1 %v9461_v18  ;;  %2724 = vmatprep.mubr.bf16.mxu1 %v9464_v60  ;;  %v1445_v37 = vpack.c.bf16 %v10971_v27, %v10960_v31  ;;  %v9492_v56 = vld [vmem:[%s12615_s3 + $0x178] sm:$0xff]  }
 0x250   : > { %8594 = vmatprep.subr.bf16.mxu1 %v9462_v7  ;;  %8635 = vmatpush3.bf16.msra.mxu0 %v9485_v63  ;;  %v9473_v60 = vld [vmem:[%s12621_s9 + $0x3f0] ss:$8 sps:$4 sm:$0xff]  }
 0x251   : > { %v7982_v14 = vpop.f32.mrb[60].mxu1  ;;  %3824 = vmatprep.mubr.bf16.mxu0 %v1091_v9  ;;  %8636 = vmatprep.subr.bf16.mxu0 %v9486_v15  ;;  %v8102_v17 = vpop.f32.mrb[28].mxu0  ;;  %v9475_v63 = vld [vmem:[%s12615_s3 + $0xb0] sm:$0xff]  }
 0x252   : > { %v7983_v54 = vpop.f32.mrb[61].mxu1  ;;  %3825 = vmatmul.mubr.bf16.gmra.mrb[120].mxu0 %v973_v43  ;;  %v8103_v44 = vpop.f32.mrb[29].mxu0  ;;  %v9469_v43 = vld [vmem:[%s12615_s3 + $0xe8] sm:$0xff]  }
 0x253   : > { %v7984_v48 = vadd.f32 %v7983_v54, %v7982_v14  ;;  %v7985_v21 = vpop.f32.mrb[62].mxu1  ;;  %8595 = vmatpush3.bf16.msra.mxu1 %v9463_v11  ;;  %v10999_v13 = vadd.f32 %v8103_v44, %v8102_v17  ;;  %v8105_v46 = vpop.f32.mrb[30].mxu0  ;;  %v9478_v14 = vld [vmem:[%s12615_s3 + $0xb8] sm:$0xff]   ;;  %v9494_v17 = vld [vmem:[%s12615_s3 + $0x1c0] sm:$0xff]  }
 0x254   : > { %v7986_v22 = vpop.f32.mrb[63].mxu1  ;;  %8596 = vmatprep.subr.bf16.mxu1 %v9467_v12  ;;  %8637 = vmatpush3.bf16.msra.mxu0 %v9487_v53  ;;  %v8106_v29 = vpop.f32.mrb[31].mxu0  ;;  %v9510_v12 = vld [vmem:[%s12615_s3 + $0x240] sm:$0xff]  }
 0x255   : > { %v7987_v30 = vadd.f32 %v7986_v22, %v7985_v21  ;;  %8638 = vmatprep.subr.bf16.mxu0 %v9488_v16  ;;  %v11010_v39 = vadd.f32 %v8106_v29, %v8105_v46 }
 0x256   : > { %2725 = vmatmul.mubr.bf16.gmra.mrb[168].mxu1 %v9466_v20 }
 0x257   : > { %v1092_v40 = vpack.c.bf16 %v7987_v30, %v7984_v48  ;;  %8597 = vmatpush3.bf16.msra.mxu1 %v9468_v34  ;;  %2732 = vmatprep.mubr.bf16.mxu1 %v9471_v25  ;;  %v1446_v35 = vpack.c.bf16 %v11010_v39, %v10999_v13  ;;  %v9495_v25 = vld [vmem:[%s12615_s3 + $0x180] sm:$0xff]  }
 0x258   : > { %8598 = vmatprep.subr.bf16.mxu1 %v9469_v43  ;;  %8639 = vmatpush3.bf16.msra.mxu0 %v9489_v26  ;;  %v9496_v26 = vld [vmem:[%s12615_s3 + $0x1c8] sm:$0xff]  }
 0x259   : > { %3832 = vmatprep.mubr.bf16.mxu0 %v1092_v40  ;;  %v8044_v55 = vpop.f32.mrb[64].mxu1  ;;  %8640 = vmatprep.subr.bf16.mxu0 %v9490_v10  ;;  %v8164_v58 = vpop.f32.mrb[32].mxu0 }
 0x25a   : > { %3833 = vmatmul.mubr.bf16.gmra.mrb[124].mxu0 %v974_v61  ;;  %v8045_v18 = vpop.f32.mrb[65].mxu1  ;;  %v8165_v62 = vpop.f32.mrb[33].mxu0 }
 0x25b   : > { %8599 = vmatpush3.bf16.msra.mxu1 %v9470_v50  ;;  %v8046_v5 = vadd.f32 %v8045_v18, %v8044_v55  ;;  %v8047_v7 = vpop.f32.mrb[66].mxu1  ;;  %v11035_v2 = vadd.f32 %v8165_v62, %v8164_v58  ;;  %v8167_v4 = vpop.f32.mrb[34].mxu0  ;;  %v9497_v50 = vld [vmem:[%s12615_s3 + $0x188] sm:$0xff]   ;;  %v9499_v18 = vld [vmem:[%s12615_s3 + $0x190] sm:$0xff]  }
 0x25c   : > { %8600 = vmatprep.subr.bf16.mxu1 %v9474_v51  ;;  %v8048_v15 = vpop.f32.mrb[67].mxu1  ;;  %8641 = vmatpush3.bf16.msra.mxu0 %v9491_v52  ;;  %v8168_v61 = vpop.f32.mrb[35].mxu0  ;;  %v9498_v52 = vld [vmem:[%s12615_s3 + $0x1d0] sm:$0xff]  }
 0x25d   : > { %v8049_v9 = vadd.f32 %v8048_v15, %v8047_v7  ;;  %8642 = vmatprep.subr.bf16.mxu0 %v9492_v56  ;;  %v11043_v11 = vadd.f32 %v8168_v61, %v8167_v4  ;;  %v9500_v7 = vld [vmem:[%s12615_s3 + $0x1d8] sm:$0xff]  }
 0x25e   : > { %2733 = vmatmul.mubr.bf16.gmra.mrb[172].mxu1 %v9473_v60 }
 0x25f   : > { %8601 = vmatpush3.bf16.msra.mxu1 %v9475_v63  ;;  %v1325_v53 = vpack.c.bf16 %v8049_v9, %v8046_v5  ;;  %v1679_v16 = vpack.c.bf16 %v11043_v11, %v11035_v2  ;;  %v9502_v9 = vld [vmem:[%s12615_s3 + $0x1e0] sm:$0xff]  }
 0x260   : > { %8602 = vmatprep.subr.bf16.mxu1 %v9476_v0  ;;  %8643 = vmatpush3.bf16.msra.mxu0 %v9493_v41  ;;  %v9501_v41 = vld [vmem:[%s12615_s3 + $0x198] sm:$0xff]  }
 0x261   : > { %v8050_v54 = vpop.f32.mrb[68].mxu1  ;;  %3873 = vmatprep.mubr.bf16.mxu1 %v1325_v53  ;;  %v8170_v20 = vpop.f32.mrb[36].mxu0  ;;  %8708 = vmatprep.subr.bf16.mxu0 %v9510_v12 }
 0x262   : > { %v8051_v44 = vpop.f32.mrb[69].mxu1  ;;  %v8171_v48 = vpop.f32.mrb[37].mxu0 }
 0x263   : > { %8603 = vmatpush3.bf16.msra.mxu1 %v9478_v14  ;;  %v8052_v21 = vadd.f32 %v8051_v44, %v8050_v54  ;;  %v8053_v34 = vpop.f32.mrb[70].mxu1  ;;  %v11059_v46 = vadd.f32 %v8171_v48, %v8170_v20  ;;  %v8173_v22 = vpop.f32.mrb[38].mxu0  ;;  %v9504_v48 = vld [vmem:[%s12615_s3 + $0x1e8] sm:$0xff]  }
 0x264   : > { %v8054_v43 = vpop.f32.mrb[71].mxu1  ;;  %8668 = vmatprep.subr.bf16.mxu1 %v9494_v17  ;;  %v8174_v29 = vpop.f32.mrb[39].mxu0  ;;  %v9503_v17 = vld [vmem:[%s12615_s3 + $0x1a0] sm:$0xff]  }
 0x265   : > { %v8055_v30 = vadd.f32 %v8054_v43, %v8053_v34  ;;  %v11064_v10 = vadd.f32 %v8174_v29, %v8173_v22  ;;  %v9505_v43 = vld [vmem:[%s12615_s3 + $0x1a8] sm:$0xff]   ;;  %v9506_v29 = vld [vmem:[%s12615_s3 + $0x1f0] sm:$0xff]  }
 0x266   : > { %3874 = vmatmul.mubr.bf16.vlgmr.msra.gmra.mrb[176].mxu1 %v1207_v49 }
 0x267   : > { %v1326_v40 = vpack.c.bf16 %v8055_v30, %v8052_v21  ;;  %8669 = vmatpush3.bf16.msra.mxu1 %v9495_v25  ;;  %v1680_v51 = vpack.c.bf16 %v11064_v10, %v11059_v46 }
 0x268   : > { %8670 = vmatprep.subr.bf16.mxu1 %v9496_v26 }
 0x269   : > { %v8056_v55 = vpop.f32.mrb[72].mxu1  ;;  %3881 = vmatprep.mubr.bf16.mxu1 %v1326_v40  ;;  %v8176_v56 = vpop.f32.mrb[40].mxu0 }
 0x26a   : > { %v8057_v58 = vpop.f32.mrb[73].mxu1  ;;  %v8177_v38 = vpop.f32.mrb[41].mxu0 }
 0x26b   : > { %v8058_v47 = vadd.f32 %v8057_v58, %v8056_v55  ;;  %v8059_v49 = vpop.f32.mrb[74].mxu1  ;;  %8671 = vmatpush3.bf16.msra.mxu1 %v9497_v50  ;;  %v11080_v60 = vadd.f32 %v8177_v38, %v8176_v56  ;;  %v8179_v62 = vpop.f32.mrb[42].mxu0  ;;  %v9508_v38 = vld [vmem:[%s12615_s3 + $0x1f8] sm:$0xff]  }
 0x26c   : > { %v8060_v5 = vpop.f32.mrb[75].mxu1  ;;  %8672 = vmatprep.subr.bf16.mxu1 %v9498_v52  ;;  %v8180_v63 = vpop.f32.mrb[43].mxu0  ;;  %v9507_v52 = vld [vmem:[%s12615_s3 + $0x1b0] sm:$0xff]  }
 0x26d   : > { %v8061_v4 = vadd.f32 %v8060_v5, %v8059_v49  ;;  %v11085_v15 = vadd.f32 %v8180_v63, %v8179_v62  ;;  %v9509_v5 = vld [vmem:[%s12615_s3 + $0x1b8] sm:$0xff]  }
 0x26e   : > { %3882 = vmatmul.mubr.bf16.gmra.mrb[180].mxu1 %v1208_v8 }
 0x26f   : > { %v1327_v0 = vpack.c.bf16 %v8061_v4, %v8058_v47  ;;  %8673 = vmatpush3.bf16.msra.mxu1 %v9499_v18  ;;  %v1681_v61 = vpack.c.bf16 %v11085_v15, %v11080_v60  ;;  %v9512_v4 = vld [vmem:[%s12615_s3 + $0x248] sm:$0xff]  }
 0x270   : > { %8674 = vmatprep.subr.bf16.mxu1 %v9500_v7  ;;  %v9511_v7 = vld [vmem:[%s12615_s3 + $0x200] sm:$0xff]  }
 0x271   : > { %v8062_v12 = vpop.f32.mrb[76].mxu1  ;;  %3889 = vmatprep.mubr.bf16.mxu1 %v1327_v0  ;;  %v8182_v53 = vpop.f32.mrb[44].mxu0 }
 0x272   : > { %v8063_v14 = vpop.f32.mrb[77].mxu1  ;;  %v8183_v1 = vpop.f32.mrb[45].mxu0 }
 0x273   : > { %v8064_v6 = vadd.f32 %v8063_v14, %v8062_v12  ;;  %v8065_v8 = vpop.f32.mrb[78].mxu1  ;;  %8675 = vmatpush3.bf16.msra.mxu1 %v9501_v41  ;;  %v11101_v54 = vadd.f32 %v8183_v1, %v8182_v53  ;;  %v8185_v20 = vpop.f32.mrb[46].mxu0  ;;  %v9513_v53 = vld [vmem:[%s12615_s3 + $0x208] sm:$0xff]  }
 0x274   : > { %v8066_v44 = vpop.f32.mrb[79].mxu1  ;;  %8676 = vmatprep.subr.bf16.mxu1 %v9502_v9  ;;  %v8186_v21 = vpop.f32.mrb[47].mxu0 }
 0x275   : > { %v8067_v34 = vadd.f32 %v8066_v44, %v8065_v8  ;;  %v11106_v25 = vadd.f32 %v8186_v21, %v8185_v20  ;;  %v9514_v8 = vld [vmem:[%s12615_s3 + $0x250] sm:$0xff]  }
 0x276   : > { %3890 = vmatmul.mubr.bf16.gmra.mrb[184].mxu1 %v1209_v24  ;;  %v9515_v20 = vld [vmem:[%s12615_s3 + $0x210] sm:$0xff]  }
 0x277   : > { %v1328_v22 = vpack.c.bf16 %v8067_v34, %v8064_v6  ;;  %8677 = vmatpush3.bf16.msra.mxu1 %v9503_v17  ;;  %v1682_v26 = vpack.c.bf16 %v11106_v25, %v11101_v54 }
 0x278   : > { %8678 = vmatprep.subr.bf16.mxu1 %v9504_v48  ;;  %v9516_v48 = vld [vmem:[%s12615_s3 + $0x258] sm:$0xff]  }
 0x279   : > { %v8124_v30 = vpop.f32.mrb[80].mxu1  ;;  %3897 = vmatprep.mubr.bf16.mxu1 %v1328_v22  ;;  %v8244_v40 = vpop.f32.mrb[48].mxu0 }
 0x27a   : > { %v8125_v50 = vpop.f32.mrb[81].mxu1  ;;  %v8245_v19 = vpop.f32.mrb[49].mxu0 }
 0x27b   : > { %v8126_v23 = vadd.f32 %v8125_v50, %v8124_v30  ;;  %v8127_v24 = vpop.f32.mrb[82].mxu1  ;;  %8679 = vmatpush3.bf16.msra.mxu1 %v9505_v43  ;;  %v11122_v55 = vadd.f32 %v8245_v19, %v8244_v40  ;;  %v8247_v56 = vpop.f32.mrb[50].mxu0  ;;  %v9517_v40 = vld [vmem:[%s12615_s3 + $0x218] sm:$0xff]  }
 0x27c   : > { %v8128_v58 = vpop.f32.mrb[83].mxu1  ;;  %8680 = vmatprep.subr.bf16.mxu1 %v9506_v29  ;;  %v8248_v47 = vpop.f32.mrb[51].mxu0 }
 0x27d   : > { %v8129_v49 = vadd.f32 %v8128_v58, %v8127_v24  ;;  %v11127_v18 = vadd.f32 %v8248_v47, %v8247_v56  ;;  %v9518_v24 = vld [vmem:[%s12615_s3 + $0x260] sm:$0xff]  }
 0x27e   : > { %3898 = vmatmul.mubr.bf16.gmra.mrb[188].mxu1 %v1210_v45  ;;  %v9519_v56 = vld [vmem:[%s12615_s3 + $0x220] sm:$0xff]  }
 0x27f   : > { %v1561_v62 = vpack.c.bf16 %v8129_v49, %v8126_v23  ;;  %8681 = vmatpush3.bf16.msra.mxu1 %v9507_v52  ;;  %v1915_v63 = vpack.c.bf16 %v11127_v18, %v11122_v55 }
 0x280   : > { %8682 = vmatprep.subr.bf16.mxu1 %v9508_v38  ;;  %v9520_v38 = vld [vmem:[%s12615_s3 + $0x268] sm:$0xff]  }
 0x281   : > { %v8130_v42 = vpop.f32.mrb[84].mxu1  ;;  %3938 = vmatprep.mubr.bf16.mxu0 %v1561_v62  ;;  %v8250_v45 = vpop.f32.mrb[52].mxu0 }
 0x282   : > { %v8131_v0 = vpop.f32.mrb[85].mxu1  ;;  %3939 = vmatmul.mubr.bf16.vlgmr.msra.gmra.mrb[128].mxu0 %v1443_v57  ;;  %v8251_v41 = vpop.f32.mrb[53].mxu0 }
 0x283   : > { %v8132_v9 = vadd.f32 %v8131_v0, %v8130_v42  ;;  %v8133_v12 = vpop.f32.mrb[86].mxu1  ;;  %8683 = vmatpush3.bf16.msra.mxu1 %v9509_v5  ;;  %8709 = vmatpush3.bf16.msra.mxu0 %v9511_v7  ;;  %v11152_v14 = vadd.f32 %v8251_v41, %v8250_v45  ;;  %v8253_v1 = vpop.f32.mrb[54].mxu0  ;;  %v9522_v41 = vld [vmem:[%s12615_s3 + $0x270] sm:$0xff]  }
 0x284   : > { %v8134_v6 = vpop.f32.mrb[87].mxu1  ;;  %8710 = vmatprep.subr.bf16.mxu0 %v9512_v4  ;;  %8748 = vmatprep.subr.bf16.mxu1 %v9526_v36  ;;  %v8254_v59 = vpop.f32.mrb[55].mxu0  ;;  %v9521_v36 = vld [vmem:[%s12615_s3 + $0x228] sm:$0xff]  }
 0x285   : > { %v8135_v3 = vadd.f32 %v8134_v6, %v8133_v12  ;;  %v11157_v57 = vadd.f32 %v8254_v59, %v8253_v1  ;;  %v9523_v12 = vld [vmem:[%s12615_s3 + $0x230] sm:$0xff]   ;;  %v9524_v1 = vld [vmem:[%s12615_s3 + $0x278] sm:$0xff]  }
 0x287   : > { %v1562_v17 = vpack.c.bf16 %v8135_v3, %v8132_v9  ;;  %8711 = vmatpush3.bf16.msra.mxu0 %v9513_v53  ;;  %v1916_v44 = vpack.c.bf16 %v11157_v57, %v11152_v14 }
 0x288   : > { %8712 = vmatprep.subr.bf16.mxu0 %v9514_v8 }
 0x289   : > { %v8136_v21 = vpop.f32.mrb[88].mxu1  ;;  %3946 = vmatprep.mubr.bf16.mxu0 %v1562_v17  ;;  %v8256_v34 = vpop.f32.mrb[56].mxu0 }
 0x28a   : > { %v8137_v22 = vpop.f32.mrb[89].mxu1  ;;  %3947 = vmatmul.mubr.bf16.gmra.mrb[132].mxu0 %v1444_v32  ;;  %v8257_v43 = vpop.f32.mrb[57].mxu0 }
 0x28b   : > { %v8138_v29 = vadd.f32 %v8137_v22, %v8136_v21  ;;  %v8139_v30 = vpop.f32.mrb[90].mxu1  ;;  %8713 = vmatpush3.bf16.msra.mxu0 %v9515_v20  ;;  %v11173_v50 = vadd.f32 %v8257_v43, %v8256_v34  ;;  %v8259_v19 = vpop.f32.mrb[58].mxu0 }
 0x28c   : > { %v8140_v23 = vpop.f32.mrb[91].mxu1  ;;  %8714 = vmatprep.subr.bf16.mxu0 %v9516_v48  ;;  %v8260_v52 = vpop.f32.mrb[59].mxu0  ;;  %v9525_v48 = vld [vmem:[%s12615_s3 + $0x238] sm:$0xff]  }
 0x28d   : > { %v8141_v33 = vadd.f32 %v8140_v23, %v8139_v30  ;;  %v11178_v28 = vadd.f32 %v8260_v52, %v8259_v19  ;;  %v9527_v30 = vld [vmem:[%s12615_s3 + $0x280] sm:$0xff]   ;;  %v9528_v19 = vld [vmem:[%s12615_s3 + $0x2c8] sm:$0xff]  }
 0x28f   : > { %v1563_v32 = vpack.c.bf16 %v8141_v33, %v8138_v29  ;;  %8715 = vmatpush3.bf16.msra.mxu0 %v9517_v40  ;;  %v1917_v58 = vpack.c.bf16 %v11178_v28, %v11173_v50  ;;  %v9542_v29 = vld [vmem:[%s12615_s3 + $0x340] sm:$0xff]  }
 0x290   : > { %8716 = vmatprep.subr.bf16.mxu0 %v9518_v24 }
 0x291   : > { %v8142_v47 = vpop.f32.mrb[92].mxu1  ;;  %3954 = vmatprep.mubr.bf16.mxu0 %v1563_v32  ;;  %v8262_v49 = vpop.f32.mrb[60].mxu0 }
 0x292   : > { %v8143_v62 = vpop.f32.mrb[93].mxu1  ;;  %3955 = vmatmul.mubr.bf16.gmra.mrb[136].mxu0 %v1445_v37  ;;  %v8263_v5 = vpop.f32.mrb[61].mxu0 }
 0x293   : > { %v8144_v7 = vadd.f32 %v8143_v62, %v8142_v47  ;;  %v8145_v4 = vpop.f32.mrb[94].mxu1  ;;  %8717 = vmatpush3.bf16.msra.mxu0 %v9519_v56  ;;  %v11194_v42 = vadd.f32 %v8263_v5, %v8262_v49  ;;  %v8265_v45 = vpop.f32.mrb[62].mxu0  ;;  %v9530_v5 = vld [vmem:[%s12615_s3 + $0x2d0] sm:$0xff]  }
 0x294   : > { %v8146_v0 = vpop.f32.mrb[95].mxu1  ;;  %8718 = vmatprep.subr.bf16.mxu0 %v9520_v38  ;;  %v8266_v9 = vpop.f32.mrb[63].mxu0  ;;  %v9529_v38 = vld [vmem:[%s12615_s3 + $0x288] sm:$0xff]  }
 0x295   : > { %v8147_v31 = vadd.f32 %v8146_v0, %v8145_v4  ;;  %v11199_v27 = vadd.f32 %v8266_v9, %v8265_v45  ;;  %v9531_v4 = vld [vmem:[%s12615_s3 + $0x290] sm:$0xff]   ;;  %v9532_v45 = vld [vmem:[%s12615_s3 + $0x2d8] sm:$0xff]  }
 0x297   : > { %v1564_v37 = vpack.c.bf16 %v8147_v31, %v8144_v7  ;;  %8719 = vmatpush3.bf16.msra.mxu0 %v9521_v36  ;;  %v1918_v53 = vpack.c.bf16 %v11199_v27, %v11194_v42  ;;  %v9559_v42 = vld [vmem:[%s12615_s3 + $0x380] sm:$0xff]  }
 0x298   : > { %8720 = vmatprep.subr.bf16.mxu0 %v9522_v41 }
 0x299   : > { %v8204_v6 = vpop.f32.mrb[96].mxu1  ;;  %3962 = vmatprep.mubr.bf16.mxu0 %v1564_v37  ;;  %v8324_v8 = vpop.f32.mrb[64].mxu0 }
 0x29a   : > { %v8205_v59 = vpop.f32.mrb[97].mxu1  ;;  %3963 = vmatmul.mubr.bf16.gmra.mrb[140].mxu0 %v1446_v35  ;;  %v8325_v3 = vpop.f32.mrb[65].mxu0 }
 0x29b   : > { %v8206_v17 = vadd.f32 %v8205_v59, %v8204_v6  ;;  %v8207_v20 = vpop.f32.mrb[98].mxu1  ;;  %8721 = vmatpush3.bf16.msra.mxu0 %v9523_v12  ;;  %v11215_v21 = vadd.f32 %v8325_v3, %v8324_v8  ;;  %v8327_v34 = vpop.f32.mrb[66].mxu0  ;;  %v9534_v3 = vld [vmem:[%s12615_s3 + $0x2e0] sm:$0xff]  }
 0x29c   : > { %v8208_v22 = vpop.f32.mrb[99].mxu1  ;;  %8722 = vmatprep.subr.bf16.mxu0 %v9524_v1  ;;  %v8328_v43 = vpop.f32.mrb[67].mxu0  ;;  %v9533_v1 = vld [vmem:[%s12615_s3 + $0x298] sm:$0xff]  }
 0x29d   : > { %v8209_v13 = vadd.f32 %v8208_v22, %v8207_v20  ;;  %v11220_v39 = vadd.f32 %v8328_v43, %v8327_v34  ;;  %v9535_v20 = vld [vmem:[%s12615_s3 + $0x2a0] sm:$0xff]   ;;  %v9536_v34 = vld [vmem:[%s12615_s3 + $0x2e8] sm:$0xff]  }
 0x29f   : > { %v1797_v35 = vpack.c.bf16 %v8209_v13, %v8206_v17  ;;  %8723 = vmatpush3.bf16.msra.mxu0 %v9525_v48  ;;  %v2151_v40 = vpack.c.bf16 %v11220_v39, %v11215_v21 }
 0x2a0   : > { %8788 = vmatprep.subr.bf16.mxu0 %v9542_v29 }
 0x2a1   : > { %v8210_v23 = vpop.f32.mrb[100].mxu1  ;;  %4003 = vmatprep.mubr.bf16.mxu1 %v1797_v35  ;;  %v8330_v24 = vpop.f32.mrb[68].mxu0 }
 0x2a2   : > { %v8211_v52 = vpop.f32.mrb[101].mxu1  ;;  %4004 = vmatmul.mubr.bf16.vlgmr.msra.gmra.mrb[192].mxu1 %v1679_v16  ;;  %v8331_v33 = vpop.f32.mrb[69].mxu0 }
 0x2a3   : > { %v8212_v32 = vadd.f32 %v8211_v52, %v8210_v23  ;;  %v8213_v56 = vpop.f32.mrb[102].mxu1  ;;  %8749 = vmatpush3.bf16.msra.mxu1 %v9527_v30  ;;  %v11236_v47 = vadd.f32 %v8331_v33, %v8330_v24  ;;  %v8333_v49 = vpop.f32.mrb[70].mxu0  ;;  %v9538_v33 = vld [vmem:[%s12615_s3 + $0x2f0] sm:$0xff]  }
 0x2a4   : > { %v8214_v62 = vpop.f32.mrb[103].mxu1  ;;  %8750 = vmatprep.subr.bf16.mxu1 %v9528_v19  ;;  %v8334_v7 = vpop.f32.mrb[71].mxu0  ;;  %v9537_v19 = vld [vmem:[%s12615_s3 + $0x2a8] sm:$0xff]  }
 0x2a5   : > { %v8215_v2 = vadd.f32 %v8214_v62, %v8213_v56  ;;  %v11241_v11 = vadd.f32 %v8334_v7, %v8333_v49  ;;  %v9539_v56 = vld [vmem:[%s12615_s3 + $0x2b0] sm:$0xff]   ;;  %v9540_v49 = vld [vmem:[%s12615_s3 + $0x2f8] sm:$0xff]  }
 0x2a7   : > { %v1798_v16 = vpack.c.bf16 %v8215_v2, %v8212_v32  ;;  %8751 = vmatpush3.bf16.msra.mxu1 %v9529_v38  ;;  %v2152_v36 = vpack.c.bf16 %v11241_v11, %v11236_v47 }
 0x2a8   : > { %8752 = vmatprep.subr.bf16.mxu1 %v9530_v5 }
 0x2a9   : > { %v8216_v0 = vpop.f32.mrb[104].mxu1  ;;  %4011 = vmatprep.mubr.bf16.mxu1 %v1798_v16  ;;  %v8336_v41 = vpop.f32.mrb[72].mxu0 }
 0x2aa   : > { %v8217_v9 = vpop.f32.mrb[105].mxu1  ;;  %4012 = vmatmul.mubr.bf16.gmra.mrb[196].mxu1 %v1680_v51  ;;  %v8337_v31 = vpop.f32.mrb[73].mxu0 }
 0x2ab   : > { %v8218_v37 = vadd.f32 %v8217_v9, %v8216_v0  ;;  %v8219_v12 = vpop.f32.mrb[106].mxu1  ;;  %8753 = vmatpush3.bf16.msra.mxu1 %v9531_v4  ;;  %v11257_v6 = vadd.f32 %v8337_v31, %v8336_v41  ;;  %v8339_v8 = vpop.f32.mrb[74].mxu0 }
 0x2ac   : > { %v8220_v59 = vpop.f32.mrb[107].mxu1  ;;  %8754 = vmatprep.subr.bf16.mxu1 %v9532_v45  ;;  %v8340_v17 = vpop.f32.mrb[75].mxu0  ;;  %v9541_v45 = vld [vmem:[%s12615_s3 + $0x2b8] sm:$0xff]  }
 0x2ad   : > { %v8221_v46 = vadd.f32 %v8220_v59, %v8219_v12  ;;  %v11262_v10 = vadd.f32 %v8340_v17, %v8339_v8  ;;  %v9543_v12 = vld [vmem:[%s12615_s3 + $0x300] sm:$0xff]   ;;  %v9544_v8 = vld [vmem:[%s12615_s3 + $0x348] sm:$0xff]  }
 0x2af   : > { %v1799_v51 = vpack.c.bf16 %v8221_v46, %v8218_v37  ;;  %8755 = vmatpush3.bf16.msra.mxu1 %v9533_v1  ;;  %v2153_v48 = vpack.c.bf16 %v11262_v10, %v11257_v6  ;;  %v9558_v37 = vld [vmem:[%s12615_s3 + $0x3c0] sm:$0xff]  }
 0x2b0   : > { %8756 = vmatprep.subr.bf16.mxu1 %v9534_v3 }
 0x2b1   : > { %v8222_v22 = vpop.f32.mrb[108].mxu1  ;;  %4019 = vmatprep.mubr.bf16.mxu1 %v1799_v51  ;;  %v8342_v43 = vpop.f32.mrb[76].mxu0 }
 0x2b2   : > { %v8223_v29 = vpop.f32.mrb[109].mxu1  ;;  %4020 = vmatmul.mubr.bf16.gmra.mrb[200].mxu1 %v1681_v61  ;;  %v8343_v13 = vpop.f32.mrb[77].mxu0 }
 0x2b3   : > { %v8224_v35 = vadd.f32 %v8223_v29, %v8222_v22  ;;  %v8225_v30 = vpop.f32.mrb[110].mxu1  ;;  %8757 = vmatpush3.bf16.msra.mxu1 %v9535_v20  ;;  %v11278_v23 = vadd.f32 %v8343_v13, %v8342_v43  ;;  %v8345_v24 = vpop.f32.mrb[78].mxu0  ;;  %v9546_v13 = vld [vmem:[%s12615_s3 + $0x350] sm:$0xff]  }
 0x2b4   : > { %v8226_v52 = vpop.f32.mrb[111].mxu1  ;;  %8758 = vmatprep.subr.bf16.mxu1 %v9536_v34  ;;  %v8346_v32 = vpop.f32.mrb[79].mxu0  ;;  %v9545_v34 = vld [vmem:[%s12615_s3 + $0x308] sm:$0xff]  }
 0x2b5   : > { %v8227_v60 = vadd.f32 %v8226_v52, %v8225_v30  ;;  %v11283_v15 = vadd.f32 %v8346_v32, %v8345_v24  ;;  %v9547_v30 = vld [vmem:[%s12615_s3 + $0x310] sm:$0xff]   ;;  %v9548_v24 = vld [vmem:[%s12615_s3 + $0x358] sm:$0xff]  }
 0x2b7   : > { %v1800_v61 = vpack.c.bf16 %v8227_v60, %v8224_v35  ;;  %8759 = vmatpush3.bf16.msra.mxu1 %v9537_v19  ;;  %v2154_v38 = vpack.c.bf16 %v11283_v15, %v11278_v23 }
 0x2b8   : > { %8760 = vmatprep.subr.bf16.mxu1 %v9538_v33 }
 0x2b9   : > { %v8284_v62 = vpop.f32.mrb[112].mxu1  ;;  %4027 = vmatprep.mubr.bf16.mxu1 %v1800_v61  ;;  %v8404_v5 = vpop.f32.mrb[80].mxu0 }
 0x2ba   : > { %v8285_v7 = vpop.f32.mrb[113].mxu1  ;;  %4028 = vmatmul.mubr.bf16.gmra.mrb[204].mxu1 %v1682_v26  ;;  %v8405_v2 = vpop.f32.mrb[81].mxu0 }
 0x2bb   : > { %v8286_v16 = vadd.f32 %v8285_v7, %v8284_v62  ;;  %v8287_v4 = vpop.f32.mrb[114].mxu1  ;;  %8761 = vmatpush3.bf16.msra.mxu1 %v9539_v56  ;;  %v11299_v0 = vadd.f32 %v8405_v2, %v8404_v5  ;;  %v8407_v41 = vpop.f32.mrb[82].mxu0  ;;  %v9550_v2 = vld [vmem:[%s12615_s3 + $0x360] sm:$0xff]  }
 0x2bc   : > { %v8288_v9 = vpop.f32.mrb[115].mxu1  ;;  %8762 = vmatprep.subr.bf16.mxu1 %v9540_v49  ;;  %v8408_v31 = vpop.f32.mrb[83].mxu0  ;;  %v9549_v49 = vld [vmem:[%s12615_s3 + $0x318] sm:$0xff]  }
 0x2bd   : > { %v8289_v54 = vadd.f32 %v8288_v9, %v8287_v4  ;;  %v11304_v25 = vadd.f32 %v8408_v31, %v8407_v41  ;;  %v9551_v4 = vld [vmem:[%s12615_s3 + $0x320] sm:$0xff]   ;;  %v9552_v41 = vld [vmem:[%s12615_s3 + $0x368] sm:$0xff]  }
 0x2bf   : > { %v2033_v26 = vpack.c.bf16 %v8289_v54, %v8286_v16  ;;  %8763 = vmatpush3.bf16.msra.mxu1 %v9541_v45  ;;  %v2387_v1 = vpack.c.bf16 %v11304_v25, %v11299_v0 }
 0x2c0   : > { %8828 = vmatprep.subr.bf16.mxu1 %v9558_v37 }
 0x2c1   : > { %v8290_v59 = vpop.f32.mrb[116].mxu1  ;;  %4068 = vmatprep.mubr.bf16.mxu0 %v2033_v26  ;;  %v8410_v3 = vpop.f32.mrb[84].mxu0 }
 0x2c2   : > { %v8291_v17 = vpop.f32.mrb[117].mxu1  ;;  %4069 = vmatmul.mubr.bf16.vlgmr.msra.gmra.mrb[144].mxu0 %v1915_v63  ;;  %v8411_v46 = vpop.f32.mrb[85].mxu0 }
 0x2c3   : > { %v8292_v51 = vadd.f32 %v8291_v17, %v8290_v59  ;;  %v8293_v20 = vpop.f32.mrb[118].mxu1  ;;  %8789 = vmatpush3.bf16.msra.mxu0 %v9543_v12  ;;  %v11320_v22 = vadd.f32 %v8411_v46, %v8410_v3  ;;  %v8413_v43 = vpop.f32.mrb[86].mxu0  ;;  %v9554_v46 = vld [vmem:[%s12615_s3 + $0x370] sm:$0xff]  }
 0x2c4   : > { %v8294_v29 = vpop.f32.mrb[119].mxu1  ;;  %8790 = vmatprep.subr.bf16.mxu0 %v9544_v8  ;;  %v8414_v35 = vpop.f32.mrb[87].mxu0  ;;  %v9553_v8 = vld [vmem:[%s12615_s3 + $0x328] sm:$0xff]  }
 0x2c5   : > { %v8295_v55 = vadd.f32 %v8294_v29, %v8293_v20  ;;  %v11325_v18 = vadd.f32 %v8414_v35, %v8413_v43  ;;  %v9555_v20 = vld [vmem:[%s12615_s3 + $0x330] sm:$0xff]   ;;  %v9556_v43 = vld [vmem:[%s12615_s3 + $0x378] sm:$0xff]  }
 0x2c7   : > { %v2034_v63 = vpack.c.bf16 %v8295_v55, %v8292_v51  ;;  %8791 = vmatpush3.bf16.msra.mxu0 %v9545_v34  ;;  %v2388_v19 = vpack.c.bf16 %v11325_v18, %v11320_v22 }
 0x2c8   : > { %8792 = vmatprep.subr.bf16.mxu0 %v9546_v13 }
 0x2c9   : > { %v8296_v52 = vpop.f32.mrb[120].mxu1  ;;  %4076 = vmatprep.mubr.bf16.mxu0 %v2034_v63  ;;  %v8416_v33 = vpop.f32.mrb[88].mxu0 }
 0x2ca   : > { %v8297_v32 = vpop.f32.mrb[121].mxu1  ;;  %4077 = vmatmul.mubr.bf16.gmra.mrb[148].mxu0 %v1916_v44  ;;  %v8417_v60 = vpop.f32.mrb[89].mxu0 }
 0x2cb   : > { %v8298_v61 = vadd.f32 %v8297_v32, %v8296_v52  ;;  %v8299_v56 = vpop.f32.mrb[122].mxu1  ;;  %8793 = vmatpush3.bf16.msra.mxu0 %v9547_v30  ;;  %v11341_v62 = vadd.f32 %v8417_v60, %v8416_v33  ;;  %v8419_v5 = vpop.f32.mrb[90].mxu0 }
 0x2cc   : > { %v8300_v7 = vpop.f32.mrb[123].mxu1  ;;  %8794 = vmatprep.subr.bf16.mxu0 %v9548_v24  ;;  %v8420_v16 = vpop.f32.mrb[91].mxu0  ;;  %v9557_v24 = vld [vmem:[%s12615_s3 + $0x338] sm:$0xff]  }
 0x2cd   : > { %v8301_v14 = vadd.f32 %v8300_v7, %v8299_v56  ;;  %v11346_v57 = vadd.f32 %v8420_v16, %v8419_v5 }
 0x2cf   : > { %v2035_v44 = vpack.c.bf16 %v8301_v14, %v8298_v61  ;;  %8795 = vmatpush3.bf16.msra.mxu0 %v9549_v49  ;;  %v2389_v45 = vpack.c.bf16 %v11346_v57, %v11341_v62 }
 0x2d0   : > { %8796 = vmatprep.subr.bf16.mxu0 %v9550_v2 }
 0x2d1   : > { %v8302_v9 = vpop.f32.mrb[124].mxu1  ;;  %4084 = vmatprep.mubr.bf16.mxu0 %v2035_v44  ;;  %v8422_v31 = vpop.f32.mrb[92].mxu0 }
 0x2d2   : > { %v8303_v37 = vpop.f32.mrb[125].mxu1  ;;  %4085 = vmatmul.mubr.bf16.gmra.mrb[152].mxu0 %v1917_v58  ;;  %v8423_v54 = vpop.f32.mrb[93].mxu0 }
 0x2d3   : > { %v8304_v26 = vadd.f32 %v8303_v37, %v8302_v9  ;;  %v8305_v12 = vpop.f32.mrb[126].mxu1  ;;  %8797 = vmatpush3.bf16.msra.mxu0 %v9551_v4  ;;  %v11362_v59 = vadd.f32 %v8423_v54, %v8422_v31  ;;  %v8425_v3 = vpop.f32.mrb[94].mxu0  ;;  %v9561_v4 = vld [vmem:[%s12615_s3 + $0x388] sm:$0xff]   ;;  %v9562_v37 = vld [vmem:[%s12615_s3 + $0x3d0] sm:$0xff]  }
 0x2d4   : > { %v8306_v17 = vpop.f32.mrb[127].mxu1  ;;  %8798 = vmatprep.subr.bf16.mxu0 %v9552_v41  ;;  %v8426_v51 = vpop.f32.mrb[95].mxu0 }
 0x2d5   : > { %v8307_v50 = vadd.f32 %v8306_v17, %v8305_v12  ;;  %v11367_v28 = vadd.f32 %v8426_v51, %v8425_v3 }
 0x2d7   : > { %v2036_v58 = vpack.c.bf16 %v8307_v50, %v8304_v26  ;;  %8799 = vmatpush3.bf16.msra.mxu0 %v9553_v8  ;;  %v2390_v34 = vpack.c.bf16 %v11367_v28, %v11362_v59  ;;  %v9563_v26 = vld [vmem:[%s12615_s3 + $0x390] sm:$0xff]   ;;  %v9564_v8 = vld [vmem:[%s12615_s3 + $0x3d8] sm:$0xff]  }
 0x2d8   : > { %8800 = vmatprep.subr.bf16.mxu0 %v9554_v46 }
 0x2d9   : > { %v8364_v29 = vpop.f32.mrb[128].mxu1  ;;  %4092 = vmatprep.mubr.bf16.mxu0 %v2036_v58  ;;  %v8484_v13 = vpop.f32.mrb[96].mxu0 }
 0x2da   : > { %v8365_v35 = vpop.f32.mrb[129].mxu1  ;;  %4093 = vmatmul.mubr.bf16.gmra.mrb[156].mxu0 %v1918_v53  ;;  %v8485_v55 = vpop.f32.mrb[97].mxu0  ;;  %v9560_v53 = vld [vmem:[%s12615_s3 + $0x3c8] sm:$0xff]  }
 0x2db   : > { %v8366_v63 = vadd.f32 %v8365_v35, %v8364_v29  ;;  %v8367_v30 = vpop.f32.mrb[130].mxu1  ;;  %8801 = vmatpush3.bf16.msra.mxu0 %v9555_v20  ;;  %v11383_v52 = vadd.f32 %v8485_v55, %v8484_v13  ;;  %v8487_v33 = vpop.f32.mrb[98].mxu0  ;;  %v9565_v29 = vld [vmem:[%s12615_s3 + $0x398] sm:$0xff]   ;;  %v9566_v55 = vld [vmem:[%s12615_s3 + $0x3e0] sm:$0xff]  }
 0x2dc   : > { %v8368_v32 = vpop.f32.mrb[131].mxu1  ;;  %8802 = vmatprep.subr.bf16.mxu0 %v9556_v43  ;;  %v8488_v60 = vpop.f32.mrb[99].mxu0 }
 0x2dd   : > { %v8369_v61 = vadd.f32 %v8368_v32, %v8367_v30  ;;  %v11385_v56 = vadd.f32 %v8488_v60, %v8487_v33  ;;  %v9567_v30 = vld [vmem:[%s12615_s3 + $0x3a0] sm:$0xff]  }
 0x2df   : > { %v2269_v49 = vpack.c.bf16 %v8369_v61, %v8366_v63  ;;  %8803 = vmatpush3.bf16.msra.mxu0 %v9557_v24  ;;  %v2623_v27 = vpack.c.bf16 %v11385_v56, %v11383_v52  ;;  %v9568_v24 = vld [vmem:[%s12615_s3 + $0x3e8] sm:$0xff]  }
 0x2e1   : > { %v8370_v5 = vpop.f32.mrb[132].mxu1  ;;  %4133 = vmatprep.mubr.bf16.mxu1 %v2269_v49  ;;  %v8490_v7 = vpop.f32.mrb[100].mxu0 }
 0x2e2   : > { %v8371_v2 = vpop.f32.mrb[133].mxu1  ;;  %4134 = vmatmul.mubr.bf16.vlgmr.msra.gmra.mrb[208].mxu1 %v2151_v40  ;;  %v8491_v16 = vpop.f32.mrb[101].mxu0 }
 0x2e3   : > { %v8372_v14 = vadd.f32 %v8371_v2, %v8370_v5  ;;  %v8373_v44 = vpop.f32.mrb[134].mxu1  ;;  %8829 = vmatpush3.bf16.msra.mxu1 %v9559_v42  ;;  %v11401_v41 = vadd.f32 %v8491_v16, %v8490_v7  ;;  %v8493_v9 = vpop.f32.mrb[102].mxu0  ;;  %v9569_v7 = vld [vmem:[%s12615_s3 + $0x3a8] sm:$0xff]  }
 0x2e4   : > { %v8374_v31 = vpop.f32.mrb[135].mxu1  ;;  %8830 = vmatprep.subr.bf16.mxu1 %v9560_v53  ;;  %v8494_v54 = vpop.f32.mrb[103].mxu0 }
 0x2e5   : > { %v8375_v21 = vadd.f32 %v8374_v31, %v8373_v44  ;;  %v11406_v39 = vadd.f32 %v8494_v54, %v8493_v9  ;;  %v9572_v9 = vld [vmem:[%s12615_s3 + $0x3f8] sm:$0xff]  }
 0x2e7   : > { %v2270_v40 = vpack.c.bf16 %v8375_v21, %v8372_v14  ;;  %8831 = vmatpush3.bf16.msra.mxu1 %v9561_v4  ;;  %v2624_v12 = vpack.c.bf16 %v11406_v39, %v11401_v41  ;;  %v9570_v14 = vld [vmem:[%s12615_s3 + $0x3f0] sm:$0xff]  }
 0x2e8   : > { %8832 = vmatprep.subr.bf16.mxu1 %v9562_v37  ;;  %v9571_v4 = vld [vmem:[%s12615_s3 + $0x3b0] sm:$0xff]  }
 0x2e9   : > { %v8376_v3 = vpop.f32.mrb[136].mxu1  ;;  %4141 = vmatprep.mubr.bf16.mxu1 %v2270_v40  ;;  %v8496_v17 = vpop.f32.mrb[104].mxu0  ;;  %v9573_v40 = vld [vmem:[%s12615_s3 + $0x3b8] sm:$0xff]  }
 0x2ea   : > { %v8377_v46 = vpop.f32.mrb[137].mxu1  ;;  %4142 = vmatmul.mubr.bf16.gmra.mrb[212].mxu1 %v2152_v36  ;;  %v8497_v51 = vpop.f32.mrb[105].mxu0 }
 0x2eb   : > { %v8378_v50 = vadd.f32 %v8377_v46, %v8376_v3  ;;  %v8379_v58 = vpop.f32.mrb[138].mxu1  ;;  %8833 = vmatpush3.bf16.msra.mxu1 %v9563_v26  ;;  %v11419_v20 = vadd.f32 %v8497_v51, %v8496_v17  ;;  %v8499_v43 = vpop.f32.mrb[106].mxu0 }
 0x2ec   : > { %v8380_v13 = vpop.f32.mrb[139].mxu1  ;;  %8834 = vmatprep.subr.bf16.mxu1 %v9564_v8  ;;  %v8500_v35 = vpop.f32.mrb[107].mxu0 }
 0x2ed   : > { %v8381_v47 = vadd.f32 %v8380_v13, %v8379_v58  ;;  %v11427_v11 = vadd.f32 %v8500_v35, %v8499_v43 }
 0x2ef   : > { %v2271_v36 = vpack.c.bf16 %v8381_v47, %v8378_v50  ;;  %8835 = vmatpush3.bf16.msra.mxu1 %v9565_v29  ;;  %v2625_v63 = vpack.c.bf16 %v11427_v11, %v11419_v20 }
 0x2f0   : > { %8836 = vmatprep.subr.bf16.mxu1 %v9566_v55 }
 0x2f1   : > { %v8382_v33 = vpop.f32.mrb[140].mxu1  ;;  %4149 = vmatprep.mubr.bf16.mxu1 %v2271_v36  ;;  %v8502_v32 = vpop.f32.mrb[108].mxu0 }
 0x2f2   : > { %v8383_v60 = vpop.f32.mrb[141].mxu1  ;;  %4150 = vmatmul.mubr.bf16.gmra.mrb[216].mxu1 %v2153_v48  ;;  %v8503_v61 = vpop.f32.mrb[109].mxu0 }
 0x2f3   : > { %v8384_v49 = vadd.f32 %v8383_v60, %v8382_v33  ;;  %v8385_v42 = vpop.f32.mrb[142].mxu1  ;;  %v11440_v53 = vadd.f32 %v8503_v61, %v8502_v32  ;;  %v8505_v5 = vpop.f32.mrb[110].mxu0  ;;  %8837 = vmatpush3.bf16.msra.mxu1 %v9567_v30 }
 0x2f4   : > { %v8386_v2 = vpop.f32.mrb[143].mxu1  ;;  %v8506_v16 = vpop.f32.mrb[111].mxu0  ;;  %8838 = vmatprep.subr.bf16.mxu1 %v9568_v24 }
 0x2f5   : > { %v8387_v6 = vadd.f32 %v8386_v2, %v8385_v42  ;;  %v11448_v10 = vadd.f32 %v8506_v16, %v8505_v5 }
 0x2f7   : > { %v2272_v48 = vpack.c.bf16 %v8387_v6, %v8384_v49  ;;  %v2626_v44 = vpack.c.bf16 %v11448_v10, %v11440_v53  ;;  %8839 = vmatpush3.bf16.msra.mxu1 %v9569_v7 }
 0x2f8   : > { %8840 = vmatprep.subr.bf16.mxu1 %v9570_v14 }
 0x2f9   : > { %v8444_v31 = vpop.f32.mrb[144].mxu1  ;;  %4157 = vmatprep.mubr.bf16.mxu1 %v2272_v48 }
 0x2fa   : > { %v8445_v37 = vpop.f32.mrb[145].mxu1  ;;  %4158 = vmatmul.mubr.bf16.gmra.mrb[220].mxu1 %v2154_v38 }
 0x2fb   : > { %v8446_v54 = vadd.f32 %v8445_v37, %v8444_v31  ;;  %v8447_v21 = vpop.f32.mrb[146].mxu1  ;;  %8841 = vmatpush3.bf16.msra.mxu1 %v9571_v4 }
 0x2fc   : > { %v8448_v26 = vpop.f32.mrb[147].mxu1  ;;  %8842 = vmatprep.subr.bf16.mxu1 %v9572_v9 }
 0x2fd   : > { %v8449_v8 = vadd.f32 %v8448_v26, %v8447_v21 }
 0x2ff   : > { %v2505_v3 = vpack.c.bf16 %v8449_v8, %v8446_v54  ;;  %8843 = vmatpush3.bf16.msra.mxu1 %v9573_v40 }
 0x301   : > { %v8450_v17 = vpop.f32.mrb[148].mxu1  ;;  %4198 = vmatprep.mubr.bf16.mxu0 %v2505_v3 }
 0x302   : > { %v8451_v46 = vpop.f32.mrb[149].mxu1  ;;  %4199 = vmatmul.mubr.bf16.vlgmr.msra.gmra.mrb[160].mxu0 %v2387_v1 }
 0x303   : > { %v8452_v23 = vadd.f32 %v8451_v46, %v8450_v17  ;;  %v8453_v15 = vpop.f32.mrb[150].mxu1 }
 0x304   : > { %v8454_v38 = vpop.f32.mrb[151].mxu1 }
 0x305   : > { %v8455_v51 = vadd.f32 %v8454_v38, %v8453_v15 }
 0x307   : > { %v2506_v50 = vpack.c.bf16 %v8455_v51, %v8452_v23 }
 0x309   : > { %v8456_v58 = vpop.f32.mrb[152].mxu1  ;;  %4206 = vmatprep.mubr.bf16.mxu0 %v2506_v50 }
 0x30a   : > { %v8457_v43 = vpop.f32.mrb[153].mxu1  ;;  %4207 = vmatmul.mubr.bf16.gmra.mrb[164].mxu0 %v2388_v19 }
 0x30b   : > { %v8458_v29 = vadd.f32 %v8457_v43, %v8456_v58  ;;  %v8459_v13 = vpop.f32.mrb[154].mxu1 }
 0x30c   : > { %v8460_v35 = vpop.f32.mrb[155].mxu1 }
 0x30d   : > { %v8461_v55 = vadd.f32 %v8460_v35, %v8459_v13 }
 0x30f   : > { %v2507_v47 = vpack.c.bf16 %v8461_v55, %v8458_v29 }
 0x311   : > { %v8462_v36 = vpop.f32.mrb[156].mxu1  ;;  %4214 = vmatprep.mubr.bf16.mxu0 %v2507_v47 }
 0x312   : > { %v8463_v0 = vpop.f32.mrb[157].mxu1  ;;  %4215 = vmatmul.mubr.bf16.gmra.mrb[168].mxu0 %v2389_v45 }
 0x313   : > { %v8464_v25 = vadd.f32 %v8463_v0, %v8462_v36  ;;  %v8465_v1 = vpop.f32.mrb[158].mxu1  ;;  %v7434_v0 = vld [vmem:[%s12616_s4] ss:$0 sm:$0xff] }
 0x314   : > { %v8466_v30 = vpop.f32.mrb[159].mxu1 }
 0x315   : > { %v8467_v24 = vadd.f32 %v8466_v30, %v8465_v1  ;;  %v8564_v33 = vpop.f32.mrb[112].mxu0 }
 0x316   : > { %v8565_v32 = vpop.f32.mrb[113].mxu0 }
 0x317   : > { %v2508_v22 = vpack.c.bf16 %v8467_v24, %v8464_v25  ;;  %v11473_v18 = vadd.f32 %v8565_v32, %v8564_v33  ;;  %v8567_v19 = vpop.f32.mrb[114].mxu0 }
 0x318   : > { %v8568_v60 = vpop.f32.mrb[115].mxu0 }
 0x319   : > { %v11475_v61 = vadd.f32 %v8568_v60, %v8567_v19  ;;  %v8524_v49 = vpop.f32.mrb[160].mxu1  ;;  %4222 = vmatprep.mubr.bf16.mxu0 %v2508_v22  ;;  %v3811_v30 = vadd.f32 %v11473_v18, %v7434_v0 }
 0x31a   : > { %v8525_v42 = vpop.f32.mrb[161].mxu1  ;;  %4223 = vmatmul.mubr.bf16.gmra.mrb[172].mxu0 %v2390_v34 }
 0x31b   : > { %v8526_v62 = vadd.f32 %v8525_v42, %v8524_v49  ;;  %v8527_v57 = vpop.f32.mrb[162].mxu1  ;;  %v3814_v24 = vadd.f32 %v11475_v61, %v7434_v0 }
 0x31c   : > { %v8528_v45 = vpop.f32.mrb[163].mxu1 }
 0x31d   : > { %v8529_v5 = vadd.f32 %v8528_v45, %v8527_v57  ;;  %v8570_v7 = vpop.f32.mrb[116].mxu0 }
 0x31e   : > { %v8571_v2 = vpop.f32.mrb[117].mxu0 }
 0x31f   : > { %v2741_v16 = vpack.c.bf16 %v8529_v5, %v8526_v62  ;;  %v8572_v14 = vadd.f32 %v8571_v2, %v8570_v7  ;;  %v8573_v6 = vpop.f32.mrb[118].mxu0 }
 0x320   : > { %v8574_v48 = vpop.f32.mrb[119].mxu0 }
 0x321   : > { %v8575_v4 = vadd.f32 %v8574_v48, %v8573_v6  ;;  %v8530_v9 = vpop.f32.mrb[164].mxu1  ;;  %4263 = vmatprep.mubr.bf16.mxu1 %v2741_v16  ;;  %v3819_v49 = vadd.f32 %v8572_v14, %v7434_v0 }
 0x322   : > { %v8531_v31 = vpop.f32.mrb[165].mxu1  ;;  %4264 = vmatmul.mubr.bf16.vlgmr.msra.gmra.mrb[224].mxu1 %v2623_v27 }
 0x323   : > { %v8532_v59 = vadd.f32 %v8531_v31, %v8530_v9  ;;  %v8533_v28 = vpop.f32.mrb[166].mxu1  ;;  %v3822_v45 = vadd.f32 %v8575_v4, %v7434_v0 }
 0x324   : > { %v8534_v34 = vpop.f32.mrb[167].mxu1 }
 0x325   : > { %v8535_v37 = vadd.f32 %v8534_v34, %v8533_v28  ;;  %v8576_v54 = vpop.f32.mrb[120].mxu0 }
 0x326   : > { %v8577_v21 = vpop.f32.mrb[121].mxu0 }
 0x327   : > { %v2742_v40 = vpack.c.bf16 %v8535_v37, %v8532_v59  ;;  %v8578_v26 = vadd.f32 %v8577_v21, %v8576_v54  ;;  %v8579_v8 = vpop.f32.mrb[122].mxu0 }
 0x328   : > { %v8580_v3 = vpop.f32.mrb[123].mxu0 }
 0x329   : > { %v8581_v17 = vadd.f32 %v8580_v3, %v8579_v8  ;;  %v8536_v46 = vpop.f32.mrb[168].mxu1  ;;  %4271 = vmatprep.mubr.bf16.mxu1 %v2742_v40  ;;  %v3827_v7 = vadd.f32 %v8578_v26, %v7434_v0 }
 0x32a   : > { %v8537_v23 = vpop.f32.mrb[169].mxu1  ;;  %4272 = vmatmul.mubr.bf16.gmra.mrb[228].mxu1 %v2624_v12 }
 0x32b   : > { %v8538_v52 = vadd.f32 %v8537_v23, %v8536_v46  ;;  %v8539_v56 = vpop.f32.mrb[170].mxu1  ;;  %v3830_v61 = vadd.f32 %v8581_v17, %v7434_v0 }
 0x32c   : > { %v8540_v27 = vpop.f32.mrb[171].mxu1 }
 0x32d   : > { %v8541_v15 = vadd.f32 %v8540_v27, %v8539_v56  ;;  %v8582_v38 = vpop.f32.mrb[124].mxu0 }
 0x32e   : > { %v8583_v51 = vpop.f32.mrb[125].mxu0 }
 0x32f   : > { %v2743_v50 = vpack.c.bf16 %v8541_v15, %v8538_v52  ;;  %v8584_v58 = vadd.f32 %v8583_v51, %v8582_v38  ;;  %v8585_v43 = vpop.f32.mrb[126].mxu0 }
 0x330   : > { %v8586_v29 = vpop.f32.mrb[127].mxu0 }
 0x331   : > { %v8587_v13 = vadd.f32 %v8586_v29, %v8585_v43  ;;  %v8542_v35 = vpop.f32.mrb[172].mxu1  ;;  %4279 = vmatprep.mubr.bf16.mxu1 %v2743_v50  ;;  %v3835_v14 = vadd.f32 %v8584_v58, %v7434_v0 }
 0x332   : > { %v8543_v55 = vpop.f32.mrb[173].mxu1  ;;  %4280 = vmatmul.mubr.bf16.gmra.mrb[232].mxu1 %v2625_v63 }
 0x333   : > { %v8544_v41 = vadd.f32 %v8543_v55, %v8542_v35  ;;  %v8545_v39 = vpop.f32.mrb[174].mxu1  ;;  %v3838_v4 = vadd.f32 %v8587_v13, %v7434_v0 }
 0x334   : > { %v8546_v12 = vpop.f32.mrb[175].mxu1 }
 0x335   : > { %v8547_v47 = vadd.f32 %v8546_v12, %v8545_v39 }
 0x337   : > { %v2744_v36 = vpack.c.bf16 %v8547_v47, %v8544_v41 }
 0x339   : > { %v8604_v25 = vpop.f32.mrb[176].mxu1  ;;  %4287 = vmatprep.mubr.bf16.mxu1 %v2744_v36 }
 0x33a   : > { %v8605_v1 = vpop.f32.mrb[177].mxu1  ;;  %4288 = vmatmul.mubr.bf16.gmra.mrb[236].mxu1 %v2626_v44 }
 0x33b   : > { %v8606_v20 = vadd.f32 %v8605_v1, %v8604_v25  ;;  %v8607_v11 = vpop.f32.mrb[178].mxu1 }
 0x33c   : > { %v8608_v63 = vpop.f32.mrb[179].mxu1 }
 0x33d   : > { %v3876_v33 = vadd.f32 %v8606_v20, %v3811_v30  ;;  %v8609_v32 = vadd.f32 %v8608_v63, %v8607_v11 }
 0x33f   : > { %v3879_v22 = vadd.f32 %v8609_v32, %v3814_v24 }
 0x341   : > { %v8610_v19 = vpop.f32.mrb[180].mxu1 }
 0x342   : > { %v8611_v60 = vpop.f32.mrb[181].mxu1 }
 0x343   : > { %v8612_v42 = vadd.f32 %v8611_v60, %v8610_v19  ;;  %v8613_v62 = vpop.f32.mrb[182].mxu1 }
 0x344   : > { %v8614_v57 = vpop.f32.mrb[183].mxu1 }
 0x345   : > { %v3884_v5 = vadd.f32 %v8612_v42, %v3819_v49  ;;  %v8615_v53 = vadd.f32 %v8614_v57, %v8613_v62 }
 0x347   : > { %v3887_v10 = vadd.f32 %v8615_v53, %v3822_v45 }
 0x349   : > { %v8616_v44 = vpop.f32.mrb[184].mxu1 }
 0x34a   : > { %v8617_v18 = vpop.f32.mrb[185].mxu1 }
 0x34b   : > { %v8618_v2 = vadd.f32 %v8617_v18, %v8616_v44  ;;  %v8619_v16 = vpop.f32.mrb[186].mxu1 }
 0x34c   : > { %v8620_v6 = vpop.f32.mrb[187].mxu1 }
 0x34d   : > { %v3892_v48 = vadd.f32 %v8618_v2, %v3827_v7  ;;  %v8621_v9 = vadd.f32 %v8620_v6, %v8619_v16  ;;  %v9986_v2 = vmov 0.0  }
 0x34e   : > { %8996 = vmatprep.subr.bf16.mxu0 %v9986_v2  ;;  %9008 = vmatprep.subr.bf16.mxu1 %v9986_v2 }
 0x34f   : > { %v3895_v31 = vadd.f32 %v8621_v9, %v3830_v61  ;;  %9016 = vmatprep.mubr.msk.bf16.mxu1 %vm9987_vm0, %v9986_v2  ;;  %9004 = vmatprep.mubr.msk.bf16.mxu0 %vm9987_vm0, %v9986_v2 }
 0x351   : > { %v8622_v59 = vpop.f32.mrb[188].mxu1 }
 0x352   : > { %v8623_v28 = vpop.f32.mrb[189].mxu1 }
 0x353   : > { %v8624_v34 = vadd.f32 %v8623_v28, %v8622_v59  ;;  %v8625_v37 = vpop.f32.mrb[190].mxu1 }
 0x354   : > { %v8626_v54 = vpop.f32.mrb[191].mxu1 }
 0x355   : > { %v3900_v21 = vadd.f32 %v8624_v34, %v3835_v14  ;;  %v8627_v40 = vadd.f32 %v8626_v54, %v8625_v37  ;;  %v8644_v8 = vpop.f32.mrb[128].mxu0 }
 0x356   : > { %v8645_v3 = vpop.f32.mrb[129].mxu0 }
 0x357   : > { %v3903_v46 = vadd.f32 %v8627_v40, %v3838_v4  ;;  %v8646_v26 = vadd.f32 %v8645_v3, %v8644_v8  ;;  %v8647_v23 = vpop.f32.mrb[130].mxu0 }
 0x358   : > { %v8648_v52 = vpop.f32.mrb[131].mxu0 }
 0x359   : > { %v3941_v56 = vadd.f32 %v8646_v26, %v3876_v33  ;;  %v8649_v17 = vadd.f32 %v8648_v52, %v8647_v23 }
 0x35b   : > { %v3944_v27 = vadd.f32 %v8649_v17, %v3879_v22 }
 0x35d   : > { %v8650_v15 = vpop.f32.mrb[132].mxu0 }
 0x35e   : > { %v8651_v38 = vpop.f32.mrb[133].mxu0 }
 0x35f   : > { %v8652_v51 = vadd.f32 %v8651_v38, %v8650_v15  ;;  %v8653_v50 = vpop.f32.mrb[134].mxu0 }
 0x360   : > { %v8654_v58 = vpop.f32.mrb[135].mxu0 }
 0x361   : > { %v3949_v43 = vadd.f32 %v8652_v51, %v3884_v5  ;;  %v8655_v29 = vadd.f32 %v8654_v58, %v8653_v50 }
 0x363   : > { %v3952_v35 = vadd.f32 %v8655_v29, %v3887_v10 }
 0x365   : > { %v8656_v13 = vpop.f32.mrb[136].mxu0 }
 0x366   : > { %v8657_v55 = vpop.f32.mrb[137].mxu0 }
 0x367   : > { %v8658_v41 = vadd.f32 %v8657_v55, %v8656_v13  ;;  %v8659_v39 = vpop.f32.mrb[138].mxu0 }
 0x368   : > { %v8660_v12 = vpop.f32.mrb[139].mxu0 }
 0x369   : > { %v3957_v47 = vadd.f32 %v8658_v41, %v3892_v48  ;;  %v8661_v36 = vadd.f32 %v8660_v12, %v8659_v39 }
 0x36b   : > { %v3960_v0 = vadd.f32 %v8661_v36, %v3895_v31 }
 0x36d   : > { %v8662_v25 = vpop.f32.mrb[140].mxu0 }
 0x36e   : > { %v8663_v1 = vpop.f32.mrb[141].mxu0 }
 0x36f   : > { %v8664_v30 = vadd.f32 %v8663_v1, %v8662_v25  ;;  %v8665_v20 = vpop.f32.mrb[142].mxu0 }
 0x370   : > { %v8666_v11 = vpop.f32.mrb[143].mxu0 }
 0x371   : > { %v3965_v63 = vadd.f32 %v8664_v30, %v3900_v21  ;;  %v8667_v24 = vadd.f32 %v8666_v11, %v8665_v20 }
 0x373   : > { %v3968_v33 = vadd.f32 %v8667_v24, %v3903_v46 }
 0x375   : > { %v8684_v32 = vpop.f32.mrb[192].mxu1 }
 0x376   : > { %v8685_v22 = vpop.f32.mrb[193].mxu1 }
 0x377   : > { %v8686_v19 = vadd.f32 %v8685_v22, %v8684_v32  ;;  %v8687_v60 = vpop.f32.mrb[194].mxu1 }
 0x378   : > { %v8688_v49 = vpop.f32.mrb[195].mxu1 }
 0x379   : > { %v4006_v42 = vadd.f32 %v8686_v19, %v3941_v56  ;;  %v8689_v62 = vadd.f32 %v8688_v49, %v8687_v60 }
 0x37b   : > { %v4009_v57 = vadd.f32 %v8689_v62, %v3944_v27 }
 0x37d   : > { %v8690_v45 = vpop.f32.mrb[196].mxu1 }
 0x37e   : > { %v8691_v5 = vpop.f32.mrb[197].mxu1 }
 0x37f   : > { %v8692_v53 = vadd.f32 %v8691_v5, %v8690_v45  ;;  %v8693_v10 = vpop.f32.mrb[198].mxu1 }
 0x380   : > { %v8694_v44 = vpop.f32.mrb[199].mxu1 }
 0x381   : > { %v4014_v18 = vadd.f32 %v8692_v53, %v3949_v43  ;;  %v8695_v7 = vadd.f32 %v8694_v44, %v8693_v10 }
 0x383   : > { %v4017_v16 = vadd.f32 %v8695_v7, %v3952_v35 }
 0x385   : > { %v8696_v6 = vpop.f32.mrb[200].mxu1 }
 0x386   : > { %v8697_v61 = vpop.f32.mrb[201].mxu1 }
 0x387   : > { %v8698_v48 = vadd.f32 %v8697_v61, %v8696_v6  ;;  %v8699_v9 = vpop.f32.mrb[202].mxu1 }
 0x388   : > { %v8700_v31 = vpop.f32.mrb[203].mxu1 }
 0x389   : > { %v4022_v59 = vadd.f32 %v8698_v48, %v3957_v47  ;;  %v8701_v28 = vadd.f32 %v8700_v31, %v8699_v9 }
 0x38b   : > { %v4025_v14 = vadd.f32 %v8701_v28, %v3960_v0 }
 0x38d   : > { %v8702_v34 = vpop.f32.mrb[204].mxu1 }
 0x38e   : > { %v8703_v37 = vpop.f32.mrb[205].mxu1 }
 0x38f   : > { %v8704_v54 = vadd.f32 %v8703_v37, %v8702_v34  ;;  %v8705_v4 = vpop.f32.mrb[206].mxu1 }
 0x390   : > { %v8706_v21 = vpop.f32.mrb[207].mxu1 }
 0x391   : > { %v4030_v40 = vadd.f32 %v8704_v54, %v3965_v63  ;;  %v8707_v8 = vadd.f32 %v8706_v21, %v8705_v4 }
 0x393   : > { %v4033_v3 = vadd.f32 %v8707_v8, %v3968_v33 }
 0x395   : > { %v8724_v46 = vpop.f32.mrb[144].mxu0 }
 0x396   : > { %v8725_v26 = vpop.f32.mrb[145].mxu0 }
 0x397   : > { %v8726_v23 = vadd.f32 %v8725_v26, %v8724_v46  ;;  %v8727_v52 = vpop.f32.mrb[146].mxu0 }
 0x398   : > { %v8728_v56 = vpop.f32.mrb[147].mxu0 }
 0x399   : > { %v4071_v17 = vadd.f32 %v8726_v23, %v4006_v42  ;;  %v8729_v27 = vadd.f32 %v8728_v56, %v8727_v52 }
 0x39b   : > { %v4074_v15 = vadd.f32 %v8729_v27, %v4009_v57 }
 0x39d   : > { %v8730_v38 = vpop.f32.mrb[148].mxu0 }
 0x39e   : > { %v8731_v51 = vpop.f32.mrb[149].mxu0 }
 0x39f   : > { %v8732_v50 = vadd.f32 %v8731_v51, %v8730_v38  ;;  %v8733_v58 = vpop.f32.mrb[150].mxu0 }
 0x3a0   : > { %v8734_v43 = vpop.f32.mrb[151].mxu0 }
 0x3a1   : > { %v4079_v29 = vadd.f32 %v8732_v50, %v4014_v18  ;;  %v8735_v35 = vadd.f32 %v8734_v43, %v8733_v58 }
 0x3a3   : > { %v4082_v13 = vadd.f32 %v8735_v35, %v4017_v16 }
 0x3a5   : > { %v8736_v55 = vpop.f32.mrb[152].mxu0 }
 0x3a6   : > { %v8737_v41 = vpop.f32.mrb[153].mxu0 }
 0x3a7   : > { %v8738_v39 = vadd.f32 %v8737_v41, %v8736_v55  ;;  %v8739_v12 = vpop.f32.mrb[154].mxu0 }
 0x3a8   : > { %v8740_v47 = vpop.f32.mrb[155].mxu0 }
 0x3a9   : > { %v4087_v36 = vadd.f32 %v8738_v39, %v4022_v59  ;;  %v8741_v0 = vadd.f32 %v8740_v47, %v8739_v12 }
 0x3ab   : > { %v4090_v25 = vadd.f32 %v8741_v0, %v4025_v14 }
 0x3ad   : > { %v8742_v1 = vpop.f32.mrb[156].mxu0 }
 0x3ae   : > { %v8743_v30 = vpop.f32.mrb[157].mxu0 }
 0x3af   : > { %v8744_v20 = vadd.f32 %v8743_v30, %v8742_v1  ;;  %v8745_v11 = vpop.f32.mrb[158].mxu0 }
 0x3b0   : > { %v8746_v63 = vpop.f32.mrb[159].mxu0 }
 0x3b1   : > { %v4095_v24 = vadd.f32 %v8744_v20, %v4030_v40  ;;  %v8747_v33 = vadd.f32 %v8746_v63, %v8745_v11 }
 0x3b3   : > { %v4098_v32 = vadd.f32 %v8747_v33, %v4033_v3 }
 0x3b5   : > { %v8764_v22 = vpop.f32.mrb[208].mxu1 }
 0x3b6   : > { %v8765_v19 = vpop.f32.mrb[209].mxu1 }
 0x3b7   : > { %v8766_v60 = vadd.f32 %v8765_v19, %v8764_v22  ;;  %v8767_v49 = vpop.f32.mrb[210].mxu1 }
 0x3b8   : > { %v8768_v42 = vpop.f32.mrb[211].mxu1 }
 0x3b9   : > { %v4136_v62 = vadd.f32 %v8766_v60, %v4071_v17  ;;  %v8769_v57 = vadd.f32 %v8768_v42, %v8767_v49 }
 0x3bb   : > { %v4139_v45 = vadd.f32 %v8769_v57, %v4074_v15 }
 0x3bd   : > { %v8770_v5 = vpop.f32.mrb[212].mxu1 }
 0x3be   : > { %v8771_v53 = vpop.f32.mrb[213].mxu1 }
 0x3bf   : > { %v8772_v10 = vadd.f32 %v8771_v53, %v8770_v5  ;;  %v8773_v44 = vpop.f32.mrb[214].mxu1 }
 0x3c0   : > { %v8774_v18 = vpop.f32.mrb[215].mxu1 }
 0x3c1   : > { %v4144_v7 = vadd.f32 %v8772_v10, %v4079_v29  ;;  %v8775_v16 = vadd.f32 %v8774_v18, %v8773_v44 }
 0x3c3   : > { %v4147_v6 = vadd.f32 %v8775_v16, %v4082_v13 }
 0x3c5   : > { %v8776_v61 = vpop.f32.mrb[216].mxu1 }
 0x3c6   : > { %v8777_v48 = vpop.f32.mrb[217].mxu1 }
 0x3c7   : > { %v8778_v9 = vadd.f32 %v8777_v48, %v8776_v61  ;;  %v8779_v31 = vpop.f32.mrb[218].mxu1 }
 0x3c8   : > { %v8780_v59 = vpop.f32.mrb[219].mxu1 }
 0x3c9   : > { %v4152_v28 = vadd.f32 %v8778_v9, %v4087_v36  ;;  %v8781_v14 = vadd.f32 %v8780_v59, %v8779_v31 }
 0x3cb   : > { %v4155_v34 = vadd.f32 %v8781_v14, %v4090_v25 }
 0x3cd   : > { %v8782_v37 = vpop.f32.mrb[220].mxu1 }
 0x3ce   : > { %v8783_v54 = vpop.f32.mrb[221].mxu1 }
 0x3cf   : > { %v8784_v4 = vadd.f32 %v8783_v54, %v8782_v37  ;;  %v8785_v21 = vpop.f32.mrb[222].mxu1 }
 0x3d0   : > { %v8786_v40 = vpop.f32.mrb[223].mxu1 }
 0x3d1   : > { %v4160_v8 = vadd.f32 %v8784_v4, %v4095_v24  ;;  %v8787_v3 = vadd.f32 %v8786_v40, %v8785_v21 }
 0x3d3   : > { %v4163_v46 = vadd.f32 %v8787_v3, %v4098_v32 }
 0x3d5   : > { %v8804_v26 = vpop.f32.mrb[160].mxu0 }
 0x3d6   : > { %v8805_v23 = vpop.f32.mrb[161].mxu0 }
 0x3d7   : > { %v8806_v52 = vadd.f32 %v8805_v23, %v8804_v26  ;;  %v8807_v56 = vpop.f32.mrb[162].mxu0 }
 0x3d8   : > { %v8808_v17 = vpop.f32.mrb[163].mxu0 }
 0x3d9   : > { %v4201_v27 = vadd.f32 %v8806_v52, %v4136_v62  ;;  %v8809_v15 = vadd.f32 %v8808_v17, %v8807_v56 }
 0x3db   : > { %v4204_v38 = vadd.f32 %v8809_v15, %v4139_v45 }
 0x3dd   : > { %v8810_v51 = vpop.f32.mrb[164].mxu0 }
 0x3de   : > { %v8811_v50 = vpop.f32.mrb[165].mxu0 }
 0x3df   : > { %v8812_v58 = vadd.f32 %v8811_v50, %v8810_v51  ;;  %v8813_v43 = vpop.f32.mrb[166].mxu0 }
 0x3e0   : > { %v8814_v29 = vpop.f32.mrb[167].mxu0 }
 0x3e1   : > { %v4209_v35 = vadd.f32 %v8812_v58, %v4144_v7  ;;  %v8815_v13 = vadd.f32 %v8814_v29, %v8813_v43 }
 0x3e3   : > { %v4212_v55 = vadd.f32 %v8815_v13, %v4147_v6 }
 0x3e5   : > { %v8816_v41 = vpop.f32.mrb[168].mxu0 }
 0x3e6   : > { %v8817_v39 = vpop.f32.mrb[169].mxu0 }
 0x3e7   : > { %v8818_v12 = vadd.f32 %v8817_v39, %v8816_v41  ;;  %v8819_v47 = vpop.f32.mrb[170].mxu0 }
 0x3e8   : > { %v8820_v36 = vpop.f32.mrb[171].mxu0 }
 0x3e9   : > { %v4217_v0 = vadd.f32 %v8818_v12, %v4152_v28  ;;  %v8821_v25 = vadd.f32 %v8820_v36, %v8819_v47 }
 0x3eb   : > { %v4220_v1 = vadd.f32 %v8821_v25, %v4155_v34  ;;  %v9575_v25 = vld [vmem:[%s12622_s10] sm:$0xff]  }
 0x3ed   : > { %v8822_v30 = vpop.f32.mrb[172].mxu0 }
 0x3ee   : > { %v8823_v20 = vpop.f32.mrb[173].mxu0 }
 0x3ef   : > { %v8824_v11 = vadd.f32 %v8823_v20, %v8822_v30  ;;  %v8825_v63 = vpop.f32.mrb[174].mxu0  ;;  %v9577_v30 = vld [vmem:[%s12622_s10 + $0x18] sm:$0xff]   ;;  %v9578_v20 = vld [vmem:[%s12622_s10 + $0x20] sm:$0xff]  }
 0x3f0   : > { %v8826_v24 = vpop.f32.mrb[175].mxu0 }
 0x3f1   : > { %v4225_v33 = vadd.f32 %v8824_v11, %v4160_v8  ;;  %v8827_v32 = vadd.f32 %v8826_v24, %v8825_v63  ;;  %v9579_v11 = vld [vmem:[%s12622_s10 + $0x28] sm:$0xff]   ;;  %v9580_v63 = vld [vmem:[%s12622_s10 + $0x38] sm:$0xff]   ;;  %v9581_v24 = vld [vmem:[%s12622_s10 + $0x30] sm:$0xff]  }
 0x3f3   : > { %v11503_v22 = vadd.f32 %v8827_v32, %v4163_v46  ;;  %v9583_v32 = vld [vmem:[%s12622_s10 + $0x48] sm:$0xff]  }
 0x3f5   : > { %v8844_v19 = vpop.f32.mrb[224].mxu1 }
 0x3f6   : > { %v8845_v60 = vpop.f32.mrb[225].mxu1 }
 0x3f7   : > { %v8846_v49 = vadd.f32 %v8845_v60, %v8844_v19  ;;  %v8847_v42 = vpop.f32.mrb[226].mxu1  ;;  %v9585_v19 = vld [vmem:[%s12622_s10 + $0x58] sm:$0xff]   ;;  %v9586_v60 = vld [vmem:[%s12622_s10 + $0x60] sm:$0xff]  }
 0x3f8   : > { %v8848_v62 = vpop.f32.mrb[227].mxu1 }
 0x3f9   : > { %v4266_v57 = vadd.f32 %v8846_v49, %v4201_v27  ;;  %v8849_v45 = vadd.f32 %v8848_v62, %v8847_v42  ;;  %v9587_v49 = vld [vmem:[%s12622_s10 + $0x68] sm:$0xff]  }
 0x3fa   : > { %v9590_v42 = vld [vmem:[%s12617_s5 + $0x4] ss:$8 sps:$4 sm:$0xff]  }
 0x3fb   : > { %v4304_v5 = vmul.f32 0.2, %v4266_v57  ;;  %v4269_v53 = vadd.f32 %v8849_v45, %v4204_v38  ;;  %vm4296_vm1 = vcmp.ge.f32.partialorder %v4266_v57, 0.0  ;;  %v9630_v62 = vld [vmem:[%s12617_s5 + $0x304] ss:$8 sps:$4 sm:$0xff]   ;;  %v9631_v45 = vld [vmem:[%s12622_s10 + $0x70] sm:$0xff]  }
 0x3fd   : > { %vm4297_vm2 = vcmp.ge.f32.partialorder %v4269_v53, 0.0  ;;  %v4305_v10 = vmul.f32 0.2, %v4269_v53  ;;  %v8850_v44 = vpop.f32.mrb[228].mxu1  ;;  %v4312_v7 = vsel %vm4296_vm1, %v4266_v57, %v4304_v5  ;;  %v9591_v57 = vld [vmem:[%s12622_s10 + $0x78] sm:$0xff]  }
 0x3fe   : > { %v8851_v18 = vpop.f32.mrb[229].mxu1  ;;  %v9628_v5 = vld [vmem:[%s12617_s5 + $0x300] ss:$8 sps:$4 sm:$0xff]  }
 0x3ff   : > { %v4313_v16 = vsel %vm4297_vm2, %v4269_v53, %v4305_v10  ;;  %v8852_v6 = vadd.f32 %v8851_v18, %v8850_v44  ;;  %v8853_v61 = vpop.f32.mrb[230].mxu1  ;;  %v9594_v53 = vld [vmem:[%s12617_s5 + $0x14] ss:$8 sps:$4 sm:$0xff]   ;;  %v9592_v44 = vld [vmem:[%s12617_s5 + $0x10] ss:$8 sps:$4 sm:$0xff]  }
 0x400   : > { %v11505_v48 = vpack.c.bf16 %v4313_v16, %v4312_v7  ;;  %v8854_v9 = vpop.f32.mrb[231].mxu1  ;;  %v9637_v10 = vld [vmem:[%s12617_s5 + $0x314] ss:$8 sps:$4 sm:$0xff]   ;;  %v9635_v18 = vld [vmem:[%s12617_s5 + $0x310] ss:$8 sps:$4 sm:$0xff]  }
 0x401   : > { %v4274_v31 = vadd.f32 %v8852_v6, %v4209_v35  ;;  %v8855_v59 = vadd.f32 %v8854_v9, %v8853_v61  ;;  %v9597_v7 = vld [vmem:[%s12617_s5 + $0x24] ss:$8 sps:$4 sm:$0xff]   ;;  %v9595_v6 = vld [vmem:[%s12617_s5 + $0x20] ss:$8 sps:$4 sm:$0xff]   ;;  %v9649_v9 = vld [vmem:[%s12617_s5 + $0x334] ss:$8 sps:$4 sm:$0xff]  }
 0x402   : > { %8997 = vmatpush3.bf16.msra.mxu0 %v11505_v48  ;;  %9009 = vmatpush3.bf16.msra.mxu1 %v11505_v48  ;;  %v9643_v16 = vld [vmem:[%s12617_s5 + $0x324] ss:$8 sps:$4 sm:$0xff]   ;;  %v9641_v61 = vld [vmem:[%s12617_s5 + $0x320] ss:$8 sps:$4 sm:$0xff]  }
 0x403   : > { %v4306_v28 = vmul.f32 0.2, %v4274_v31  ;;  %v4277_v14 = vadd.f32 %v8855_v59, %v4212_v55  ;;  %8998 = vmatprep.subr.bf16.mxu0 %v9986_v2  ;;  %9010 = vmatprep.subr.bf16.mxu1 %v9986_v2  ;;  %vm4298_vm3 = vcmp.ge.f32.partialorder %v4274_v31, 0.0  ;;  %v9647_v59 = vld [vmem:[%s12617_s5 + $0x330] ss:$8 sps:$4 sm:$0xff]  }
 0x405   : > { %vm4299_vm4 = vcmp.ge.f32.partialorder %v4277_v14, 0.0  ;;  %v4307_v34 = vmul.f32 0.2, %v4277_v14  ;;  %v8856_v37 = vpop.f32.mrb[232].mxu1  ;;  %v4314_v4 = vsel %vm4298_vm3, %v4274_v31, %v4306_v28  ;;  %v9598_v31 = vld [vmem:[%s12617_s5 + $0x30] ss:$8 sps:$4 sm:$0xff]  }
 0x406   : > { %v8857_v54 = vpop.f32.mrb[233].mxu1  ;;  %v9603_v28 = vld [vmem:[%s12617_s5 + $0x44] ss:$8 sps:$4 sm:$0xff]  }
 0x407   : > { %v4315_v21 = vsel %vm4299_vm4, %v4277_v14, %v4307_v34  ;;  %v8858_v40 = vadd.f32 %v8857_v54, %v8856_v37  ;;  %v8859_v8 = vpop.f32.mrb[234].mxu1  ;;  %v9655_v14 = vld [vmem:[%s12617_s5 + $0x344] ss:$8 sps:$4 sm:$0xff]   ;;  %v9601_v34 = vld [vmem:[%s12617_s5 + $0x40] ss:$8 sps:$4 sm:$0xff]  }
 0x408   : > { %v11511_v3 = vpack.c.bf16 %v4315_v21, %v4314_v4  ;;  %v8860_v46 = vpop.f32.mrb[235].mxu1  ;;  %v9653_v37 = vld [vmem:[%s12617_s5 + $0x340] ss:$8 sps:$4 sm:$0xff]   ;;  %v9606_v54 = vld [vmem:[%s12617_s5 + $0x54] ss:$8 sps:$4 sm:$0xff]  }
 0x409   : > { %v4282_v26 = vadd.f32 %v8858_v40, %v4217_v0  ;;  %v8861_v23 = vadd.f32 %v8860_v46, %v8859_v8  ;;  %v9574_v0 = vld [vmem:[%s12622_s10 + $0x8] sm:$0xff]   ;;  %v9661_v4 = vld [vmem:[%s12617_s5 + $0x354] ss:$8 sps:$4 sm:$0xff]   ;;  %v9604_v21 = vld [vmem:[%s12617_s5 + $0x50] ss:$8 sps:$4 sm:$0xff]  }
 0x40a   : > { %8999 = vmatpush3.bf16.msra.mxu0 %v11511_v3  ;;  %9011 = vmatpush3.bf16.msra.mxu1 %v11511_v3  ;;  %v9659_v40 = vld [vmem:[%s12617_s5 + $0x350] ss:$8 sps:$4 sm:$0xff]   ;;  %v9609_v8 = vld [vmem:[%s12617_s5 + $0x64] ss:$8 sps:$4 sm:$0xff]   ;;  %v9607_v46 = vld [vmem:[%s12617_s5 + $0x60] ss:$8 sps:$4 sm:$0xff]  }
 0x40b   : > { %v4308_v52 = vmul.f32 0.2, %v4282_v26  ;;  %v4285_v56 = vadd.f32 %v8861_v23, %v4220_v1  ;;  %9000 = vmatprep.subr.bf16.mxu0 %v9986_v2  ;;  %9012 = vmatprep.subr.bf16.mxu1 %v9986_v2  ;;  %vm4300_vm5 = vcmp.ge.f32.partialorder %v4282_v26, 0.0  ;;  %v9576_v1 = vld [vmem:[%s12622_s10 + $0x10] sm:$0xff]  }
 0x40c   : > { %v9612_v23 = vld [vmem:[%s12617_s5 + $0x74] ss:$8 sps:$4 sm:$0xff]  }
 0x40d   : > { %vm4301_vm6 = vcmp.ge.f32.partialorder %v4285_v56, 0.0  ;;  %v4309_v17 = vmul.f32 0.2, %v4285_v56  ;;  %v8862_v27 = vpop.f32.mrb[236].mxu1  ;;  %v4316_v38 = vsel %vm4300_vm5, %v4282_v26, %v4308_v52  ;;  %v9665_v26 = vld [vmem:[%s12617_s5 + $0x360] ss:$8 sps:$4 sm:$0xff]  }
 0x40e   : > { %v8863_v15 = vpop.f32.mrb[237].mxu1  ;;  %v9673_v52 = vld [vmem:[%s12617_s5 + $0x374] ss:$8 sps:$4 sm:$0xff]  }
 0x40f   : > { %v4317_v51 = vsel %vm4301_vm6, %v4285_v56, %v4309_v17  ;;  %v8864_v50 = vadd.f32 %v8863_v15, %v8862_v27  ;;  %v8865_v58 = vpop.f32.mrb[238].mxu1  ;;  %v9610_v56 = vld [vmem:[%s12617_s5 + $0x70] ss:$8 sps:$4 sm:$0xff]   ;;  %v9615_v27 = vld [vmem:[%s12617_s5 + $0x84] ss:$8 sps:$4 sm:$0xff]  }
 0x410   : > { %v11517_v43 = vpack.c.bf16 %v4317_v51, %v4316_v38  ;;  %v8866_v29 = vpop.f32.mrb[239].mxu1  ;;  %v9671_v17 = vld [vmem:[%s12617_s5 + $0x370] ss:$8 sps:$4 sm:$0xff]   ;;  %v9679_v15 = vld [vmem:[%s12617_s5 + $0x384] ss:$8 sps:$4 sm:$0xff]  }
 0x411   : > { %v4290_v35 = vadd.f32 %v8864_v50, %v4225_v33  ;;  %v8867_v13 = vadd.f32 %v8866_v29, %v8865_v58  ;;  %v9582_v33 = vld [vmem:[%s12622_s10 + $0x40] sm:$0xff]   ;;  %v9618_v50 = vld [vmem:[%s12617_s5 + $0x94] ss:$8 sps:$4 sm:$0xff]   ;;  %v9683_v29 = vld [vmem:[%s12617_s5 + $0x390] ss:$8 sps:$4 sm:$0xff]  }
 0x412   : > { %9001 = vmatpush3.bf16.msra.mxu0 %v11517_v43  ;;  %9013 = vmatpush3.bf16.msra.mxu1 %v11517_v43  ;;  %v9613_v38 = vld [vmem:[%s12617_s5 + $0x80] ss:$8 sps:$4 sm:$0xff]   ;;  %v9685_v58 = vld [vmem:[%s12617_s5 + $0x394] ss:$8 sps:$4 sm:$0xff]  }
 0x413   : > { %v4310_v55 = vmul.f32 0.2, %v4290_v35  ;;  %v4293_v41 = vadd.f32 %v8867_v13, %v11503_v22  ;;  %9002 = vmatprep.subr.bf16.mxu0 %v9986_v2  ;;  %9014 = vmatprep.subr.bf16.mxu1 %v9986_v2  ;;  %vm4302_vm7 = vcmp.ge.f32.partialorder %v4290_v35, 0.0  ;;  %v9584_v22 = vld [vmem:[%s12622_s10 + $0x50] sm:$0xff]   ;;  %v9677_v51 = vld [vmem:[%s12617_s5 + $0x380] ss:$8 sps:$4 sm:$0xff]  }
 0x414   : > { %v9691_v13 = vld [vmem:[%s12617_s5 + $0x3a4] ss:$8 sps:$4 sm:$0xff]  }
 0x415   : > { %vm4303_vm8 = vcmp.ge.f32.partialorder %v4293_v41, 0.0  ;;  %v4311_v39 = vmul.f32 0.2, %v4293_v41  ;;  %v4318_v12 = vsel %vm4302_vm7, %v4290_v35, %v4310_v55  ;;  %v9621_v35 = vld [vmem:[%s12617_s5 + $0xa4] ss:$8 sps:$4 sm:$0xff]  }
 0x416   : > { %v9619_v55 = vld [vmem:[%s12617_s5 + $0xa0] ss:$8 sps:$4 sm:$0xff]  }
 0x417   : > { %v4319_v47 = vsel %vm4303_vm8, %v4293_v41, %v4311_v39  ;;  %v9689_v41 = vld [vmem:[%s12617_s5 + $0x3a0] ss:$8 sps:$4 sm:$0xff]   ;;  %v9624_v39 = vld [vmem:[%s12617_s5 + $0xb4] ss:$8 sps:$4 sm:$0xff]  }
 0x418   : > { %v11524_v36 = vpack.c.bf16 %v4319_v47, %v4318_v12  ;;  %v9697_v12 = vld [vmem:[%s12617_s5 + $0x3b4] ss:$8 sps:$4 sm:$0xff]   ;;  %v9622_v47 = vld [vmem:[%s12617_s5 + $0xb0] ss:$8 sps:$4 sm:$0xff]  }
 0x41a   : > { %9003 = vmatpush3.bf16.msra.mxu0 %v11524_v36  ;;  %9015 = vmatpush3.bf16.msra.mxu1 %v11524_v36 }
 0x41b   : > { %9020 = vmatprep.subr.bf16.mxu0 %v9986_v2  ;;  %9032 = vmatprep.subr.bf16.mxu1 %v9986_v2 }
 0x41d   : > { %9017 = vmatmul.mubr.msk.bf16.vlgmr.msra.gmra.mrb[240].mxu1 %vm4331_vm9, %v9574_v0  ;;  %9005 = vmatmul.mubr.msk.bf16.vlgmr.msra.gmra.mrb[176].mxu0 %vm4331_vm9, %v9575_v25  ;;  %v9627_v0 = vld [vmem:[%s12617_s5 + $0xc4] ss:$8 sps:$4 sm:$0xff]  }
 0x41e   : > { %9021 = vmatpush3.bf16.msra.mxu0 %v11505_v48  ;;  %9033 = vmatpush3.bf16.msra.mxu1 %v11505_v48  ;;  %v9703_v25 = vld [vmem:[%s12617_s5 + $0x3c4] ss:$8 sps:$4 sm:$0xff]  }
 0x41f   : > { %9022 = vmatprep.subr.bf16.mxu0 %v9986_v2  ;;  %9034 = vmatprep.subr.bf16.mxu1 %v9986_v2 }
 0x420   : > { %9028 = vmatprep.mubr.msk.bf16.mxu0 %vm9987_vm0, %v9986_v2  ;;  %9040 = vmatprep.mubr.msk.bf16.mxu1 %vm9987_vm0, %v9986_v2 }
 0x422   : > { %9023 = vmatpush3.bf16.msra.mxu0 %v11511_v3  ;;  %9035 = vmatpush3.bf16.msra.mxu1 %v11511_v3 }
 0x423   : > { %9024 = vmatprep.subr.bf16.mxu0 %v9986_v2  ;;  %9036 = vmatprep.subr.bf16.mxu1 %v9986_v2 }
 0x426   : > { %9025 = vmatpush3.bf16.msra.mxu0 %v11517_v43  ;;  %9037 = vmatpush3.bf16.msra.mxu1 %v11517_v43 }
 0x427   : > { %9026 = vmatprep.subr.bf16.mxu0 %v9986_v2  ;;  %9038 = vmatprep.subr.bf16.mxu1 %v9986_v2 }
 0x42a   : > { %9027 = vmatpush3.bf16.msra.mxu0 %v11524_v36  ;;  %9039 = vmatpush3.bf16.msra.mxu1 %v11524_v36 }
 0x42b   : > { %9044 = vmatprep.subr.bf16.mxu0 %v9986_v2  ;;  %9056 = vmatprep.subr.bf16.mxu1 %v9986_v2 }
 0x42d   : > { %9029 = vmatmul.mubr.msk.bf16.vlgmr.msra.gmra.mrb[180].mxu0 %vm4331_vm9, %v9576_v1  ;;  %9041 = vmatmul.mubr.msk.bf16.vlgmr.msra.gmra.mrb[244].mxu1 %vm4331_vm9, %v9577_v30  ;;  %v9625_v1 = vld [vmem:[%s12617_s5 + $0xc0] ss:$8 sps:$4 sm:$0xff]  }
 0x42e   : > { %9045 = vmatpush3.bf16.msra.mxu0 %v11505_v48  ;;  %9057 = vmatpush3.bf16.msra.mxu1 %v11505_v48  ;;  %v9701_v30 = vld [vmem:[%s12617_s5 + $0x3c0] ss:$8 sps:$4 sm:$0xff]  }
 0x42f   : > { %9046 = vmatprep.subr.bf16.mxu0 %v9986_v2  ;;  %9058 = vmatprep.subr.bf16.mxu1 %v9986_v2 }
 0x430   : > { %9052 = vmatprep.mubr.msk.bf16.mxu0 %vm9987_vm0, %v9986_v2  ;;  %9064 = vmatprep.mubr.msk.bf16.mxu1 %vm9987_vm0, %v9986_v2 }
 0x432   : > { %9047 = vmatpush3.bf16.msra.mxu0 %v11511_v3  ;;  %9059 = vmatpush3.bf16.msra.mxu1 %v11511_v3 }
 0x433   : > { %9048 = vmatprep.subr.bf16.mxu0 %v9986_v2  ;;  %9060 = vmatprep.subr.bf16.mxu1 %v9986_v2 }
 0x436   : > { %9049 = vmatpush3.bf16.msra.mxu0 %v11517_v43  ;;  %9061 = vmatpush3.bf16.msra.mxu1 %v11517_v43 }
 0x437   : > { %9050 = vmatprep.subr.bf16.mxu0 %v9986_v2  ;;  %9062 = vmatprep.subr.bf16.mxu1 %v9986_v2 }
 0x43a   : > { %9051 = vmatpush3.bf16.msra.mxu0 %v11524_v36  ;;  %9063 = vmatpush3.bf16.msra.mxu1 %v11524_v36 }
 0x43b   : > { %9068 = vmatprep.subr.bf16.mxu0 %v9986_v2  ;;  %9080 = vmatprep.subr.bf16.mxu1 %v9986_v2 }
 0x43d   : > { %9053 = vmatmul.mubr.msk.bf16.vlgmr.msra.gmra.mrb[184].mxu0 %vm4331_vm9, %v9578_v20  ;;  %9065 = vmatmul.mubr.msk.bf16.vlgmr.msra.gmra.mrb[248].mxu1 %vm4331_vm9, %v9579_v11  ;;  %v9634_v20 = vld [vmem:[%s12617_s5 + $0xd4] ss:$8 sps:$4 sm:$0xff]  }
 0x43e   : > { %9069 = vmatpush3.bf16.msra.mxu0 %v11505_v48  ;;  %9081 = vmatpush3.bf16.msra.mxu1 %v11505_v48  ;;  %v9709_v11 = vld [vmem:[%s12617_s5 + $0x3d4] ss:$8 sps:$4 sm:$0xff]  }
 0x43f   : > { %9070 = vmatprep.subr.bf16.mxu0 %v9986_v2  ;;  %9082 = vmatprep.subr.bf16.mxu1 %v9986_v2 }
 0x440   : > { %9088 = vmatprep.mubr.msk.bf16.mxu1 %vm9987_vm0, %v9986_v2  ;;  %9076 = vmatprep.mubr.msk.bf16.mxu0 %vm9987_vm0, %v9986_v2 }
 0x442   : > { %9071 = vmatpush3.bf16.msra.mxu0 %v11511_v3  ;;  %9083 = vmatpush3.bf16.msra.mxu1 %v11511_v3 }
 0x443   : > { %9072 = vmatprep.subr.bf16.mxu0 %v9986_v2  ;;  %9084 = vmatprep.subr.bf16.mxu1 %v9986_v2 }
 0x446   : > { %9073 = vmatpush3.bf16.msra.mxu0 %v11517_v43  ;;  %9085 = vmatpush3.bf16.msra.mxu1 %v11517_v43 }
 0x447   : > { %9074 = vmatprep.subr.bf16.mxu0 %v9986_v2  ;;  %9086 = vmatprep.subr.bf16.mxu1 %v9986_v2 }
 0x44a   : > { %9075 = vmatpush3.bf16.msra.mxu0 %v11524_v36  ;;  %9087 = vmatpush3.bf16.msra.mxu1 %v11524_v36 }
 0x44b   : > { %9092 = vmatprep.subr.bf16.mxu0 %v9986_v2  ;;  %9104 = vmatprep.subr.bf16.mxu1 %v9986_v2 }
 0x44d   : > { %9089 = vmatmul.mubr.msk.bf16.vlgmr.msra.gmra.mrb[252].mxu1 %vm4331_vm9, %v9580_v63  ;;  %9077 = vmatmul.mubr.msk.bf16.vlgmr.msra.gmra.mrb[188].mxu0 %vm4331_vm9, %v9581_v24  ;;  %v9632_v63 = vld [vmem:[%s12617_s5 + $0xd0] ss:$8 sps:$4 sm:$0xff]  }
 0x44e   : > { %9093 = vmatpush3.bf16.msra.mxu0 %v11505_v48  ;;  %9105 = vmatpush3.bf16.msra.mxu1 %v11505_v48  ;;  %v9707_v24 = vld [vmem:[%s12617_s5 + $0x3d0] ss:$8 sps:$4 sm:$0xff]  }
 0x44f   : > { %9094 = vmatprep.subr.bf16.mxu0 %v9986_v2  ;;  %9106 = vmatprep.subr.bf16.mxu1 %v9986_v2 }
 0x450   : > { %9100 = vmatprep.mubr.msk.bf16.mxu0 %vm9987_vm0, %v9986_v2  ;;  %9112 = vmatprep.mubr.msk.bf16.mxu1 %vm9987_vm0, %v9986_v2 }
 0x452   : > { %9095 = vmatpush3.bf16.msra.mxu0 %v11511_v3  ;;  %9107 = vmatpush3.bf16.msra.mxu1 %v11511_v3 }
 0x453   : > { %9096 = vmatprep.subr.bf16.mxu0 %v9986_v2  ;;  %9108 = vmatprep.subr.bf16.mxu1 %v9986_v2 }
 0x456   : > { %9097 = vmatpush3.bf16.msra.mxu0 %v11517_v43  ;;  %9109 = vmatpush3.bf16.msra.mxu1 %v11517_v43 }
 0x457   : > { %9098 = vmatprep.subr.bf16.mxu0 %v9986_v2  ;;  %9110 = vmatprep.subr.bf16.mxu1 %v9986_v2 }
 0x45a   : > { %9099 = vmatpush3.bf16.msra.mxu0 %v11524_v36  ;;  %9111 = vmatpush3.bf16.msra.mxu1 %v11524_v36 }
 0x45b   : > { %9116 = vmatprep.subr.bf16.mxu0 %v9986_v2  ;;  %9128 = vmatprep.subr.bf16.mxu1 %v9986_v2 }
 0x45d   : > { %9101 = vmatmul.mubr.msk.bf16.vlgmr.msra.gmra.mrb[192].mxu0 %vm4331_vm9, %v9582_v33  ;;  %9113 = vmatmul.mubr.msk.bf16.vlgmr.msra.gmra.mrb[0].mxu1 %vm4331_vm9, %v9583_v32  ;;  %v9640_v33 = vld [vmem:[%s12617_s5 + $0xe4] ss:$8 sps:$4 sm:$0xff]  }
 0x45e   : > { %9117 = vmatpush3.bf16.msra.mxu0 %v11505_v48  ;;  %9129 = vmatpush3.bf16.msra.mxu1 %v11505_v48  ;;  %v9715_v32 = vld [vmem:[%s12617_s5 + $0x3e4] ss:$8 sps:$4 sm:$0xff]  }
 0x45f   : > { %9118 = vmatprep.subr.bf16.mxu0 %v9986_v2  ;;  %9130 = vmatprep.subr.bf16.mxu1 %v9986_v2 }
 0x460   : > { %9124 = vmatprep.mubr.msk.bf16.mxu0 %vm9987_vm0, %v9986_v2  ;;  %9136 = vmatprep.mubr.msk.bf16.mxu1 %vm9987_vm0, %v9986_v2 }
 0x462   : > { %9119 = vmatpush3.bf16.msra.mxu0 %v11511_v3  ;;  %9131 = vmatpush3.bf16.msra.mxu1 %v11511_v3 }
 0x463   : > { %9120 = vmatprep.subr.bf16.mxu0 %v9986_v2  ;;  %9132 = vmatprep.subr.bf16.mxu1 %v9986_v2 }
 0x466   : > { %9121 = vmatpush3.bf16.msra.mxu0 %v11517_v43  ;;  %9133 = vmatpush3.bf16.msra.mxu1 %v11517_v43 }
 0x467   : > { %9122 = vmatprep.subr.bf16.mxu0 %v9986_v2  ;;  %9134 = vmatprep.subr.bf16.mxu1 %v9986_v2 }
 0x46a   : > { %9123 = vmatpush3.bf16.msra.mxu0 %v11524_v36  ;;  %9135 = vmatpush3.bf16.msra.mxu1 %v11524_v36 }
 0x46b   : > { %9140 = vmatprep.subr.bf16.mxu0 %v9986_v2  ;;  %9152 = vmatprep.subr.bf16.mxu1 %v9986_v2 }
 0x46d   : > { %9125 = vmatmul.mubr.msk.bf16.vlgmr.msra.gmra.mrb[196].mxu0 %vm4331_vm9, %v9584_v22  ;;  %9137 = vmatmul.mubr.msk.bf16.vlgmr.msra.gmra.mrb[4].mxu1 %vm4331_vm9, %v9585_v19  ;;  %v9638_v22 = vld [vmem:[%s12617_s5 + $0xe0] ss:$8 sps:$4 sm:$0xff]  }
 0x46e   : > { %9141 = vmatpush3.bf16.msra.mxu0 %v11505_v48  ;;  %9153 = vmatpush3.bf16.msra.mxu1 %v11505_v48  ;;  %v9713_v19 = vld [vmem:[%s12617_s5 + $0x3e0] ss:$8 sps:$4 sm:$0xff]  }
 0x46f   : > { %9142 = vmatprep.subr.bf16.mxu0 %v9986_v2  ;;  %9154 = vmatprep.subr.bf16.mxu1 %v9986_v2 }
 0x470   : > { %9148 = vmatprep.mubr.msk.bf16.mxu0 %vm9987_vm0, %v9986_v2  ;;  %9160 = vmatprep.mubr.msk.bf16.mxu1 %vm9987_vm0, %v9986_v2 }
 0x472   : > { %9143 = vmatpush3.bf16.msra.mxu0 %v11511_v3  ;;  %9155 = vmatpush3.bf16.msra.mxu1 %v11511_v3 }
 0x473   : > { %9144 = vmatprep.subr.bf16.mxu0 %v9986_v2  ;;  %9156 = vmatprep.subr.bf16.mxu1 %v9986_v2 }
 0x476   : > { %9145 = vmatpush3.bf16.msra.mxu0 %v11517_v43  ;;  %9157 = vmatpush3.bf16.msra.mxu1 %v11517_v43 }
 0x477   : > { %9146 = vmatprep.subr.bf16.mxu0 %v9986_v2  ;;  %9158 = vmatprep.subr.bf16.mxu1 %v9986_v2 }
 0x47a   : > { %9147 = vmatpush3.bf16.msra.mxu0 %v11524_v36  ;;  %9159 = vmatpush3.bf16.msra.mxu1 %v11524_v36 }
 0x47b   : > { %9164 = vmatprep.subr.bf16.mxu0 %v9986_v2  ;;  %9176 = vmatprep.subr.bf16.mxu1 %v9986_v2 }
 0x47d   : > { %9149 = vmatmul.mubr.msk.bf16.vlgmr.msra.gmra.mrb[200].mxu0 %vm4331_vm9, %v9586_v60  ;;  %9161 = vmatmul.mubr.msk.bf16.vlgmr.msra.gmra.mrb[8].mxu1 %vm4331_vm9, %v9587_v49  ;;  %v9646_v60 = vld [vmem:[%s12617_s5 + $0xf4] ss:$8 sps:$4 sm:$0xff]  }
 0x47e   : > { %9165 = vmatpush3.bf16.msra.mxu0 %v11505_v48  ;;  %9177 = vmatpush3.bf16.msra.mxu1 %v11505_v48  ;;  %v9600_v48 = vld [vmem:[%s12617_s5 + $0x34] ss:$8 sps:$4 sm:$0xff]  }
 0x47f   : > { %9166 = vmatprep.subr.bf16.mxu0 %v9986_v2  ;;  %9178 = vmatprep.subr.bf16.mxu1 %v9986_v2  ;;  %v9721_v49 = vld [vmem:[%s12617_s5 + $0x3f4] ss:$8 sps:$4 sm:$0xff]  }
 0x480   : > { %9184 = vmatprep.mubr.msk.bf16.mxu1 %vm9987_vm0, %v9986_v2  ;;  %9172 = vmatprep.mubr.msk.bf16.mxu0 %vm9987_vm0, %v9986_v2 }
 0x482   : > { %9167 = vmatpush3.bf16.msra.mxu0 %v11511_v3  ;;  %9179 = vmatpush3.bf16.msra.mxu1 %v11511_v3  ;;  %v9667_v3 = vld [vmem:[%s12617_s5 + $0x364] ss:$8 sps:$4 sm:$0xff]  }
 0x483   : > { %9168 = vmatprep.subr.bf16.mxu0 %v9986_v2  ;;  %9180 = vmatprep.subr.bf16.mxu1 %v9986_v2 }
 0x486   : > { %9169 = vmatpush3.bf16.msra.mxu0 %v11517_v43  ;;  %9181 = vmatpush3.bf16.msra.mxu1 %v11517_v43  ;;  %v9616_v43 = vld [vmem:[%s12617_s5 + $0x90] ss:$8 sps:$4 sm:$0xff]  }
 0x487   : > { %9170 = vmatprep.subr.bf16.mxu0 %v9986_v2  ;;  %9182 = vmatprep.subr.bf16.mxu1 %v9986_v2  ;;  %v9588_v2 = vld [vmem:[%s12617_s5] ss:$8 sps:$4 sm:$0xff]  }
 0x48a   : > { %9171 = vmatpush3.bf16.msra.mxu0 %v11524_v36  ;;  %9183 = vmatpush3.bf16.msra.mxu1 %v11524_v36  ;;  %v9695_v36 = vld [vmem:[%s12617_s5 + $0x3b0] ss:$8 sps:$4 sm:$0xff]  }
 0x48b   : > { %6720 = vmatprep.subr.bf16.mxu1 %v9590_v42  ;;  %6849 = vmatprep.subr.bf16.mxu0 %v9630_v62  ;;  %v9644_v42 = vld [vmem:[%s12617_s5 + $0xf0] ss:$8 sps:$4 sm:$0xff]  }
 0x48c   : > { %v9719_v62 = vld [vmem:[%s12617_s5 + $0x3f0] ss:$8 sps:$4 sm:$0xff]  }
 0x48d   : > { %9185 = vmatmul.mubr.msk.bf16.vlgmr.msra.gmra.mrb[12].mxu1 %vm4331_vm9, %v9591_v57  ;;  %9173 = vmatmul.mubr.msk.bf16.vlgmr.msra.gmra.mrb[204].mxu0 %vm4331_vm9, %v9631_v45  ;;  %v9652_v57 = vld [vmem:[%s12617_s5 + $0x104] ss:$8 sps:$4 sm:$0xff]  }
 0x48e   : > { %6721 = vmatpush1.bf16.msra.mxu1 %v9588_v2  ;;  %6850 = vmatpush1.bf16.msra.mxu0 %v9628_v5  ;;  %v9727_v45 = vld [vmem:[%s12617_s5 + $0x404] ss:$8 sps:$4 sm:$0xff]  }
 0x48f   : > { %6722 = vmatprep.subr.bf16.mxu1 %v9594_v53  ;;  %6851 = vmatprep.subr.bf16.mxu0 %v9637_v10 }
 0x492   : > { %6723 = vmatpush1.bf16.msra.mxu1 %v9592_v44  ;;  %6852 = vmatpush1.bf16.msra.mxu0 %v9635_v18 }
 0x493   : > { %6724 = vmatprep.subr.bf16.mxu1 %v9597_v7  ;;  %6853 = vmatprep.subr.bf16.mxu0 %v9643_v16 }
 0x496   : > { %6725 = vmatpush1.bf16.msra.mxu1 %v9595_v6  ;;  %6854 = vmatpush1.bf16.msra.mxu0 %v9641_v61  ;;  %v9650_v6 = vld [vmem:[%s12617_s5 + $0x100] ss:$8 sps:$4 sm:$0xff]  }
 0x497   : > { %6726 = vmatprep.subr.bf16.mxu1 %v9600_v48  ;;  %6855 = vmatprep.subr.bf16.mxu0 %v9649_v9  ;;  %v9658_v9 = vld [vmem:[%s12617_s5 + $0x114] ss:$8 sps:$4 sm:$0xff]  }
 0x49a   : > { %6727 = vmatpush1.bf16.msra.mxu1 %v9598_v31  ;;  %6856 = vmatpush1.bf16.msra.mxu0 %v9647_v59  ;;  %v9656_v31 = vld [vmem:[%s12617_s5 + $0x110] ss:$8 sps:$4 sm:$0xff]   ;;  %v9664_v59 = vld [vmem:[%s12617_s5 + $0x124] ss:$8 sps:$4 sm:$0xff]  }
 0x49b   : > { %6728 = vmatprep.subr.bf16.mxu1 %v9603_v28  ;;  %6857 = vmatprep.subr.bf16.mxu0 %v9655_v14  ;;  %v9662_v28 = vld [vmem:[%s12617_s5 + $0x120] ss:$8 sps:$4 sm:$0xff]   ;;  %v9670_v14 = vld [vmem:[%s12617_s5 + $0x134] ss:$8 sps:$4 sm:$0xff]  }
 0x49e   : > { %6729 = vmatpush1.bf16.msra.mxu1 %v9601_v34  ;;  %6858 = vmatpush1.bf16.msra.mxu0 %v9653_v37  ;;  %v9668_v34 = vld [vmem:[%s12617_s5 + $0x130] ss:$8 sps:$4 sm:$0xff]   ;;  %v9676_v37 = vld [vmem:[%s12617_s5 + $0x144] ss:$8 sps:$4 sm:$0xff]  }
 0x49f   : > { %6730 = vmatprep.subr.bf16.mxu1 %v9606_v54  ;;  %6859 = vmatprep.subr.bf16.mxu0 %v9661_v4 }
 0x4a2   : > { %6731 = vmatpush1.bf16.msra.mxu1 %v9604_v21  ;;  %6860 = vmatpush1.bf16.msra.mxu0 %v9659_v40 }
 0x4a3   : > { %6732 = vmatprep.subr.bf16.mxu1 %v9609_v8  ;;  %6861 = vmatprep.subr.bf16.mxu0 %v9667_v3 }
 0x4a6   : > { %6733 = vmatpush1.bf16.msra.mxu1 %v9607_v46  ;;  %6862 = vmatpush1.bf16.msra.mxu0 %v9665_v26  ;;  %v9674_v46 = vld [vmem:[%s12617_s5 + $0x140] ss:$8 sps:$4 sm:$0xff]  }
 0x4a7   : > { %6734 = vmatprep.subr.bf16.mxu1 %v9612_v23  ;;  %6863 = vmatprep.subr.bf16.mxu0 %v9673_v52 }
 0x4aa   : > { %6735 = vmatpush1.bf16.msra.mxu1 %v9610_v56  ;;  %6864 = vmatpush1.bf16.msra.mxu0 %v9671_v17  ;;  %v9682_v17 = vld [vmem:[%s12617_s5 + $0x154] ss:$8 sps:$4 sm:$0xff]  }
 0x4ab   : > { %6736 = vmatprep.subr.bf16.mxu1 %v9615_v27  ;;  %6865 = vmatprep.subr.bf16.mxu0 %v9679_v15  ;;  %v9680_v27 = vld [vmem:[%s12617_s5 + $0x150] ss:$8 sps:$4 sm:$0xff]   ;;  %v9688_v15 = vld [vmem:[%s12617_s5 + $0x164] ss:$8 sps:$4 sm:$0xff]  }
 0x4ae   : > { %6737 = vmatpush1.bf16.msra.mxu1 %v9613_v38  ;;  %6866 = vmatpush1.bf16.msra.mxu0 %v9677_v51  ;;  %v9686_v38 = vld [vmem:[%s12617_s5 + $0x160] ss:$8 sps:$4 sm:$0xff]   ;;  %v9694_v51 = vld [vmem:[%s12617_s5 + $0x174] ss:$8 sps:$4 sm:$0xff]  }
 0x4af   : > { %6738 = vmatprep.subr.bf16.mxu1 %v9618_v50  ;;  %6867 = vmatprep.subr.bf16.mxu0 %v9685_v58  ;;  %v9692_v50 = vld [vmem:[%s12617_s5 + $0x170] ss:$8 sps:$4 sm:$0xff]   ;;  %v9700_v58 = vld [vmem:[%s12617_s5 + $0x184] ss:$8 sps:$4 sm:$0xff]  }
 0x4b2   : > { %6739 = vmatpush1.bf16.msra.mxu1 %v9616_v43  ;;  %6868 = vmatpush1.bf16.msra.mxu0 %v9683_v29 }
 0x4b3   : > { %6740 = vmatprep.subr.bf16.mxu1 %v9621_v35  ;;  %6869 = vmatprep.subr.bf16.mxu0 %v9691_v13 }
 0x4b6   : > { %6741 = vmatpush1.bf16.msra.mxu1 %v9619_v55  ;;  %6870 = vmatpush1.bf16.msra.mxu0 %v9689_v41 }
 0x4b7   : > { %6742 = vmatprep.subr.bf16.mxu1 %v9624_v39  ;;  %6871 = vmatprep.subr.bf16.mxu0 %v9697_v12  ;;  %v9698_v39 = vld [vmem:[%s12617_s5 + $0x180] ss:$8 sps:$4 sm:$0xff]  }
 0x4ba   : > { %6743 = vmatpush1.bf16.msra.mxu1 %v9622_v47  ;;  %6872 = vmatpush1.bf16.msra.mxu0 %v9695_v36 }
 0x4bb   : > { %6744 = vmatprep.subr.bf16.mxu1 %v9627_v0  ;;  %6873 = vmatprep.subr.bf16.mxu0 %v9703_v25  ;;  %v9706_v25 = vld [vmem:[%s12617_s5 + $0x194] ss:$8 sps:$4 sm:$0xff]  }
 0x4be   : > { %6745 = vmatpush1.bf16.msra.mxu1 %v9625_v1  ;;  %6874 = vmatpush1.bf16.msra.mxu0 %v9701_v30  ;;  %v9704_v1 = vld [vmem:[%s12617_s5 + $0x190] ss:$8 sps:$4 sm:$0xff]   ;;  %v9712_v30 = vld [vmem:[%s12617_s5 + $0x1a4] ss:$8 sps:$4 sm:$0xff]  }
 0x4bf   : > { %6746 = vmatprep.subr.bf16.mxu1 %v9634_v20  ;;  %6875 = vmatprep.subr.bf16.mxu0 %v9709_v11  ;;  %v9710_v20 = vld [vmem:[%s12617_s5 + $0x1a0] ss:$8 sps:$4 sm:$0xff]   ;;  %v9718_v11 = vld [vmem:[%s12617_s5 + $0x1b4] ss:$8 sps:$4 sm:$0xff]  }
 0x4c2   : > { %6747 = vmatpush1.bf16.msra.mxu1 %v9632_v63  ;;  %6876 = vmatpush1.bf16.msra.mxu0 %v9707_v24  ;;  %v9716_v63 = vld [vmem:[%s12617_s5 + $0x1b0] ss:$8 sps:$4 sm:$0xff]  }
 0x4c3   : > { %6748 = vmatprep.subr.bf16.mxu1 %v9640_v33  ;;  %6877 = vmatprep.subr.bf16.mxu0 %v9715_v32  ;;  %v9724_v32 = vld [vmem:[%s12617_s5 + $0x1c4] ss:$8 sps:$4 sm:$0xff]  }
 0x4c6   : > { %6749 = vmatpush1.bf16.msra.mxu1 %v9638_v22  ;;  %6878 = vmatpush1.bf16.msra.mxu0 %v9713_v19 }
 0x4c7   : > { %6750 = vmatprep.subr.bf16.mxu1 %v9646_v60  ;;  %6879 = vmatprep.subr.bf16.mxu0 %v9721_v49 }
 0x4ca   : > { %6751 = vmatpush1.bf16.msra.mxu1 %v9644_v42  ;;  %6880 = vmatpush1.bf16.msra.mxu0 %v9719_v62 }
 0x4cb   : > { %6763 = vmatprep.subr.bf16.mxu1 %v9652_v57  ;;  %6892 = vmatprep.subr.bf16.mxu0 %v9727_v45  ;;  %v9722_v57 = vld [vmem:[%s12617_s5 + $0x1c0] ss:$8 sps:$4 sm:$0xff]  }
 0x4cc   : > { %v9725_v45 = vld [vmem:[%s12617_s5 + $0x400] ss:$8 sps:$4 sm:$0xff]  }
 0x4f0   : > { %v4422_v2 = vpop.f32.mrb[240].mxu1  ;;  %v4369_v5 = vpop.f32.mrb[176].mxu0 }
 0x4f1   : > { %v9018_v53 = vpop.f32.mrb[241].mxu1  ;;  %v9006_v10 = vpop.f32.mrb[177].mxu0 }
 0x4f2   : > { %v4425_v44 = vpop.f32.mrb[242].mxu1  ;;  %v4372_v18 = vpop.f32.mrb[178].mxu0  ;;  %v9730_v53 = vld [vmem:[%s12617_s5 + $0x1d4] ss:$8 sps:$4 sm:$0xff]  }
 0x4f3   : > { %v4429_v7 = vpack.c.bf16 %v4425_v44, %v4422_v2  ;;  %v4376_v16 = vpack.c.bf16 %v4372_v18, %v4369_v5  ;;  %v9019_v61 = vpop.f32.mrb[243].mxu1  ;;  %v9007_v48 = vpop.f32.mrb[179].mxu0  ;;  %v9733_v10 = vld [vmem:[%s12617_s5 + $0x414] ss:$8 sps:$4 sm:$0xff]   ;;  %v9728_v44 = vld [vmem:[%s12617_s5 + $0x1d0] ss:$8 sps:$4 sm:$0xff]  }
 0x4f4   : > { %v9731_v18 = vld [vmem:[%s12617_s5 + $0x410] ss:$8 sps:$4 sm:$0xff]   ;;  %v9737_v61 = vld [vmem:[%s12617_s5 + $0x420] ss:$8 sps:$4 sm:$0xff]   ;;  %v9742_v48 = vld [vmem:[%s12617_s5 + $0x1f4] ss:$8 sps:$4 sm:$0xff]  }
 0x4f5   : > { %6752 = vmatprep.mubr.bf16.mxu1 %v4429_v7  ;;  %v9736_v7 = vld [vmem:[%s12617_s5 + $0x1e4] ss:$8 sps:$4 sm:$0xff]  }
 0x4f6   : > { %6753 = vmatmul.mubr.bf16.vlgmr.msra.gmra.mrb[16].mxu1 %v4376_v16  ;;  %v9739_v16 = vld [vmem:[%s12617_s5 + $0x424] ss:$8 sps:$4 sm:$0xff]  }
 0x4f7   : > { %6764 = vmatpush1.bf16.msra.mxu1 %v9650_v6  ;;  %v9734_v6 = vld [vmem:[%s12617_s5 + $0x1e0] ss:$8 sps:$4 sm:$0xff]  }
 0x4f8   : > { %6765 = vmatprep.subr.bf16.mxu1 %v9658_v9  ;;  %v9745_v9 = vld [vmem:[%s12617_s5 + $0x434] ss:$8 sps:$4 sm:$0xff]  }
 0x4fb   : > { %6766 = vmatpush1.bf16.msra.mxu1 %v9656_v31  ;;  %v9740_v31 = vld [vmem:[%s12617_s5 + $0x1f0] ss:$8 sps:$4 sm:$0xff]  }
 0x4fc   : > { %6767 = vmatprep.subr.bf16.mxu1 %v9664_v59  ;;  %v9743_v59 = vld [vmem:[%s12617_s5 + $0x430] ss:$8 sps:$4 sm:$0xff]  }
 0x4ff   : > { %6768 = vmatpush1.bf16.msra.mxu1 %v9662_v28  ;;  %v9748_v28 = vld [vmem:[%s12617_s5 + $0x204] ss:$8 sps:$4 sm:$0xff]  }
 0x500   : > { %6769 = vmatprep.subr.bf16.mxu1 %v9670_v14  ;;  %v4528_v54 = vpop.f32.mrb[244].mxu1  ;;  %v11954_v4 = vpop.f32.mrb[180].mxu0  ;;  %v9751_v14 = vld [vmem:[%s12617_s5 + $0x444] ss:$8 sps:$4 sm:$0xff]  }
 0x501   : > { %v9042_v21 = vpop.f32.mrb[245].mxu1  ;;  %v9030_v40 = vpop.f32.mrb[181].mxu0 }
 0x502   : > { %v4531_v8 = vpop.f32.mrb[246].mxu1  ;;  %v11956_v3 = vpop.f32.mrb[182].mxu0 }
 0x503   : > { %6770 = vmatpush1.bf16.msra.mxu1 %v9668_v34  ;;  %v4535_v26 = vpack.c.bf16 %v4531_v8, %v4528_v54  ;;  %v4482_v23 = vpack.c.bf16 %v11956_v3, %v11954_v4  ;;  %v9043_v52 = vpop.f32.mrb[247].mxu1  ;;  %v9031_v56 = vpop.f32.mrb[183].mxu0  ;;  %v9760_v4 = vld [vmem:[%s12617_s5 + $0x224] ss:$8 sps:$4 sm:$0xff]  }
 0x504   : > { %6771 = vmatprep.subr.bf16.mxu1 %v9676_v37  ;;  %v9763_v3 = vld [vmem:[%s12617_s5 + $0x464] ss:$8 sps:$4 sm:$0xff]  }
 0x505   : > { %6795 = vmatprep.mubr.bf16.mxu1 %v4535_v26 }
 0x507   : > { %6772 = vmatpush1.bf16.msra.mxu1 %v9674_v46  ;;  %v9746_v46 = vld [vmem:[%s12617_s5 + $0x200] ss:$8 sps:$4 sm:$0xff]  }
 0x508   : > { %6773 = vmatprep.subr.bf16.mxu1 %v9682_v17 }
 0x50b   : > { %6774 = vmatpush1.bf16.msra.mxu1 %v9680_v27  ;;  %v9749_v27 = vld [vmem:[%s12617_s5 + $0x440] ss:$8 sps:$4 sm:$0xff]  }
 0x50c   : > { %6775 = vmatprep.subr.bf16.mxu1 %v9688_v15  ;;  %v9754_v15 = vld [vmem:[%s12617_s5 + $0x214] ss:$8 sps:$4 sm:$0xff]  }
 0x50f   : > { %6776 = vmatpush1.bf16.msra.mxu1 %v9686_v38  ;;  %v9757_v38 = vld [vmem:[%s12617_s5 + $0x454] ss:$8 sps:$4 sm:$0xff]  }
 0x510   : > { %6777 = vmatprep.subr.bf16.mxu1 %v9694_v51  ;;  %v11984_v43 = vpop.f32.mrb[248].mxu1  ;;  %v11986_v29 = vpop.f32.mrb[184].mxu0  ;;  %v9752_v51 = vld [vmem:[%s12617_s5 + $0x210] ss:$8 sps:$4 sm:$0xff]  }
 0x511   : > { %v9066_v35 = vpop.f32.mrb[249].mxu1  ;;  %v9054_v13 = vpop.f32.mrb[185].mxu0 }
 0x512   : > { %v11988_v55 = vpop.f32.mrb[250].mxu1  ;;  %v11990_v41 = vpop.f32.mrb[186].mxu0  ;;  %v9769_v35 = vld [vmem:[%s12617_s5 + $0x474] ss:$8 sps:$4 sm:$0xff]   ;;  %v9764_v13 = vld [vmem:[%s12617_s5 + $0x230] ss:$8 sps:$4 sm:$0xff]  }
 0x513   : > { %6778 = vmatpush1.bf16.msra.mxu1 %v9692_v50  ;;  %v4641_v12 = vpack.c.bf16 %v11988_v55, %v11984_v43  ;;  %v4588_v47 = vpack.c.bf16 %v11990_v41, %v11986_v29  ;;  %v9067_v36 = vpop.f32.mrb[251].mxu1  ;;  %v9055_v0 = vpop.f32.mrb[187].mxu0  ;;  %v9755_v50 = vld [vmem:[%s12617_s5 + $0x450] ss:$8 sps:$4 sm:$0xff]   ;;  %v9766_v43 = vld [vmem:[%s12617_s5 + $0x234] ss:$8 sps:$4 sm:$0xff]  }
 0x514   : > { %6779 = vmatprep.subr.bf16.mxu1 %v9700_v58  ;;  %v9761_v58 = vld [vmem:[%s12617_s5 + $0x460] ss:$8 sps:$4 sm:$0xff]   ;;  %v9767_v55 = vld [vmem:[%s12617_s5 + $0x470] ss:$8 sps:$4 sm:$0xff]   ;;  %v9775_v0 = vld [vmem:[%s12617_s5 + $0x484] ss:$8 sps:$4 sm:$0xff]  }
 0x515   : > { %v9853_v29 = vld [vmem:[%s12617_s5 + $0x574] ss:$8 sps:$4 sm:$0xff]   ;;  %v9851_v41 = vld [vmem:[%s12617_s5 + $0x570] ss:$8 sps:$4 sm:$0xff]  }
 0x517   : > { %6780 = vmatpush1.bf16.msra.mxu1 %v9698_v39  ;;  %v9772_v39 = vld [vmem:[%s12617_s5 + $0x244] ss:$8 sps:$4 sm:$0xff]  }
 0x518   : > { %6781 = vmatprep.subr.bf16.mxu1 %v9706_v25 }
 0x51b   : > { %6782 = vmatpush1.bf16.msra.mxu1 %v9704_v1 }
 0x51c   : > { %6783 = vmatprep.subr.bf16.mxu1 %v9712_v30 }
 0x51f   : > { %6784 = vmatpush1.bf16.msra.mxu1 %v9710_v20 }
 0x520   : > { %v4740_v24 = vpop.f32.mrb[252].mxu1  ;;  %v4687_v33 = vpop.f32.mrb[188].mxu0  ;;  %6785 = vmatprep.subr.bf16.mxu1 %v9718_v11  ;;  %v9770_v11 = vld [vmem:[%s12617_s5 + $0x240] ss:$8 sps:$4 sm:$0xff]  }
 0x521   : > { %v9090_v22 = vpop.f32.mrb[253].mxu1  ;;  %v9078_v19 = vpop.f32.mrb[189].mxu0 }
 0x522   : > { %v4743_v60 = vpop.f32.mrb[254].mxu1  ;;  %v4690_v49 = vpop.f32.mrb[190].mxu0  ;;  %v9773_v22 = vld [vmem:[%s12617_s5 + $0x480] ss:$8 sps:$4 sm:$0xff]   ;;  %v9778_v19 = vld [vmem:[%s12617_s5 + $0x254] ss:$8 sps:$4 sm:$0xff]  }
 0x523   : > { %v4747_v42 = vpack.c.bf16 %v4743_v60, %v4740_v24  ;;  %6786 = vmatpush1.bf16.msra.mxu1 %v9716_v63  ;;  %v4694_v62 = vpack.c.bf16 %v4690_v49, %v4687_v33  ;;  %v9091_v2 = vpop.f32.mrb[255].mxu1  ;;  %v9079_v5 = vpop.f32.mrb[191].mxu0  ;;  %v9781_v60 = vld [vmem:[%s12617_s5 + $0x494] ss:$8 sps:$4 sm:$0xff]   ;;  %v9776_v49 = vld [vmem:[%s12617_s5 + $0x250] ss:$8 sps:$4 sm:$0xff]  }
 0x524   : > { %6787 = vmatprep.subr.bf16.mxu1 %v9724_v32  ;;  %v9785_v2 = vld [vmem:[%s12617_s5 + $0x4a0] ss:$8 sps:$4 sm:$0xff]   ;;  %v9790_v5 = vld [vmem:[%s12617_s5 + $0x274] ss:$8 sps:$4 sm:$0xff]  }
 0x525   : > { %6881 = vmatprep.mubr.bf16.mxu0 %v4747_v42  ;;  %v9779_v42 = vld [vmem:[%s12617_s5 + $0x490] ss:$8 sps:$4 sm:$0xff]  }
 0x526   : > { %6882 = vmatmul.mubr.bf16.vlgmr.msra.gmra.mrb[208].mxu0 %v4694_v62  ;;  %v9784_v62 = vld [vmem:[%s12617_s5 + $0x264] ss:$8 sps:$4 sm:$0xff]  }
 0x527   : > { %6788 = vmatpush1.bf16.msra.mxu1 %v9722_v57  ;;  %6893 = vmatpush1.bf16.msra.mxu0 %v9725_v45  ;;  %v9787_v57 = vld [vmem:[%s12617_s5 + $0x4a4] ss:$8 sps:$4 sm:$0xff]   ;;  %v9782_v45 = vld [vmem:[%s12617_s5 + $0x260] ss:$8 sps:$4 sm:$0xff]  }
 0x528   : > { %6789 = vmatprep.subr.bf16.mxu1 %v9730_v53  ;;  %6894 = vmatprep.subr.bf16.mxu0 %v9733_v10  ;;  %v9793_v53 = vld [vmem:[%s12617_s5 + $0x4b4] ss:$8 sps:$4 sm:$0xff]   ;;  %v9788_v10 = vld [vmem:[%s12617_s5 + $0x270] ss:$8 sps:$4 sm:$0xff]  }
 0x52b   : > { %6790 = vmatpush1.bf16.msra.mxu1 %v9728_v44  ;;  %6895 = vmatpush1.bf16.msra.mxu0 %v9731_v18  ;;  %v9791_v44 = vld [vmem:[%s12617_s5 + $0x4b0] ss:$8 sps:$4 sm:$0xff]   ;;  %v9796_v18 = vld [vmem:[%s12617_s5 + $0x284] ss:$8 sps:$4 sm:$0xff]  }
 0x52c   : > { %6791 = vmatprep.subr.bf16.mxu1 %v9736_v7  ;;  %6896 = vmatprep.subr.bf16.mxu0 %v9739_v16  ;;  %v9799_v16 = vld [vmem:[%s12617_s5 + $0x4c4] ss:$8 sps:$4 sm:$0xff]  }
 0x52f   : > { %6792 = vmatpush1.bf16.msra.mxu1 %v9734_v6  ;;  %6897 = vmatpush1.bf16.msra.mxu0 %v9737_v61 }
 0x530   : > { %6793 = vmatprep.subr.bf16.mxu1 %v9742_v48  ;;  %6898 = vmatprep.subr.bf16.mxu0 %v9745_v9  ;;  %v4846_v34 = vpop.f32.mrb[0].mxu1  ;;  %v12068_v37 = vpop.f32.mrb[192].mxu0  ;;  %v9794_v48 = vld [vmem:[%s12617_s5 + $0x280] ss:$8 sps:$4 sm:$0xff]  }
 0x531   : > { %v9114_v54 = vpop.f32.mrb[1].mxu1  ;;  %v9102_v21 = vpop.f32.mrb[193].mxu0 }
 0x532   : > { %v4849_v40 = vpop.f32.mrb[2].mxu1  ;;  %v12070_v8 = vpop.f32.mrb[194].mxu0  ;;  %v9803_v54 = vld [vmem:[%s12617_s5 + $0x4d0] ss:$8 sps:$4 sm:$0xff]   ;;  %v9808_v21 = vld [vmem:[%s12617_s5 + $0x2a4] ss:$8 sps:$4 sm:$0xff]  }
 0x533   : > { %6794 = vmatpush1.bf16.msra.mxu1 %v9740_v31  ;;  %6899 = vmatpush1.bf16.msra.mxu0 %v9743_v59  ;;  %v4853_v26 = vpack.c.bf16 %v4849_v40, %v4846_v34  ;;  %v4800_v52 = vpack.c.bf16 %v12070_v8, %v12068_v37  ;;  %v9115_v56 = vpop.f32.mrb[3].mxu1  ;;  %v9103_v17 = vpop.f32.mrb[195].mxu0  ;;  %v9797_v59 = vld [vmem:[%s12617_s5 + $0x4c0] ss:$8 sps:$4 sm:$0xff]   ;;  %v9800_v34 = vld [vmem:[%s12617_s5 + $0x290] ss:$8 sps:$4 sm:$0xff]  }
 0x534   : > { %6806 = vmatprep.subr.bf16.mxu1 %v9748_v28  ;;  %6900 = vmatprep.subr.bf16.mxu0 %v9751_v14  ;;  %v9802_v28 = vld [vmem:[%s12617_s5 + $0x294] ss:$8 sps:$4 sm:$0xff]   ;;  %v9811_v40 = vld [vmem:[%s12617_s5 + $0x4e4] ss:$8 sps:$4 sm:$0xff]   ;;  %v9830_v8 = vld [vmem:[%s12617_s5 + $0x2e0] ss:$8 sps:$4 sm:$0xff]  }
 0x535   : > { %6924 = vmatprep.mubr.bf16.mxu0 %v4853_v26  ;;  %v9805_v14 = vld [vmem:[%s12617_s5 + $0x4d4] ss:$8 sps:$4 sm:$0xff]   ;;  %v9809_v26 = vld [vmem:[%s12617_s5 + $0x4e0] ss:$8 sps:$4 sm:$0xff]   ;;  %v9835_v37 = vld [vmem:[%s12617_s5 + $0x524] ss:$8 sps:$4 sm:$0xff]  }
 0x536   : > { %6796 = vmatmul.mubr.bf16.vlgmr.msra.gmra.mrb[16].mxu1 %v4482_v23  ;;  %v9758_v23 = vld [vmem:[%s12617_s5 + $0x220] ss:$8 sps:$4 sm:$0xff]   ;;  %v9814_v56 = vld [vmem:[%s12617_s5 + $0x2b4] ss:$8 sps:$4 sm:$0xff]  }
 0x537   : > { %6807 = vmatpush1.bf16.msra.mxu1 %v9746_v46  ;;  %6838 = vmatprep.mubr.bf16.mxu1 %v4641_v12  ;;  %v9806_v46 = vld [vmem:[%s12617_s5 + $0x2a0] ss:$8 sps:$4 sm:$0xff]   ;;  %v9817_v17 = vld [vmem:[%s12617_s5 + $0x4f4] ss:$8 sps:$4 sm:$0xff]  }
 0x538   : > { %6901 = vmatpush1.bf16.msra.mxu0 %v9749_v27  ;;  %6808 = vmatprep.subr.bf16.mxu1 %v9754_v15  ;;  %v9812_v27 = vld [vmem:[%s12617_s5 + $0x2b0] ss:$8 sps:$4 sm:$0xff]  }
 0x539   : > { %6902 = vmatprep.subr.bf16.mxu0 %v9757_v38  ;;  %v9815_v38 = vld [vmem:[%s12617_s5 + $0x4f0] ss:$8 sps:$4 sm:$0xff]  }
 0x53b   : > { %6809 = vmatpush1.bf16.msra.mxu1 %v9752_v51  ;;  %v9820_v51 = vld [vmem:[%s12617_s5 + $0x2c4] ss:$8 sps:$4 sm:$0xff]  }
 0x53c   : > { %6903 = vmatpush1.bf16.msra.mxu0 %v9755_v50  ;;  %6810 = vmatprep.subr.bf16.mxu1 %v9760_v4 }
 0x53d   : > { %6904 = vmatprep.subr.bf16.mxu0 %v9763_v3  ;;  %v9823_v3 = vld [vmem:[%s12617_s5 + $0x504] ss:$8 sps:$4 sm:$0xff]  }
 0x53f   : > { %6811 = vmatpush1.bf16.msra.mxu1 %v9758_v23 }
 0x540   : > { %6905 = vmatpush1.bf16.msra.mxu0 %v9761_v58  ;;  %6812 = vmatprep.subr.bf16.mxu1 %v9766_v43  ;;  %v12125_v12 = vpop.f32.mrb[4].mxu1  ;;  %v12127_v36 = vpop.f32.mrb[196].mxu0 }
 0x541   : > { %6906 = vmatprep.subr.bf16.mxu0 %v9769_v35  ;;  %v9138_v25 = vpop.f32.mrb[5].mxu1  ;;  %v9126_v1 = vpop.f32.mrb[197].mxu0 }
 0x542   : > { %v12132_v30 = vpop.f32.mrb[6].mxu1  ;;  %v12134_v20 = vpop.f32.mrb[198].mxu0  ;;  %v9821_v25 = vld [vmem:[%s12617_s5 + $0x500] ss:$8 sps:$4 sm:$0xff]   ;;  %v9826_v1 = vld [vmem:[%s12617_s5 + $0x2d4] ss:$8 sps:$4 sm:$0xff]  }
 0x543   : > { %6813 = vmatpush1.bf16.msra.mxu1 %v9764_v13  ;;  %v4959_v63 = vpack.c.bf16 %v12132_v30, %v12125_v12  ;;  %v4906_v24 = vpack.c.bf16 %v12134_v20, %v12127_v36  ;;  %v9127_v33 = vpop.f32.mrb[199].mxu0  ;;  %v9139_v32 = vpop.f32.mrb[7].mxu1  ;;  %v9841_v12 = vld [vmem:[%s12617_s5 + $0x534] ss:$8 sps:$4 sm:$0xff]   ;;  %v9836_v30 = vld [vmem:[%s12617_s5 + $0x2f0] ss:$8 sps:$4 sm:$0xff]  }
 0x544   : > { %6907 = vmatpush1.bf16.msra.mxu0 %v9767_v55  ;;  %6814 = vmatprep.subr.bf16.mxu1 %v9772_v39  ;;  %v9818_v55 = vld [vmem:[%s12617_s5 + $0x2c0] ss:$8 sps:$4 sm:$0xff]   ;;  %v9824_v33 = vld [vmem:[%s12617_s5 + $0x2d0] ss:$8 sps:$4 sm:$0xff]   ;;  %v9889_v20 = vld [vmem:[%s12617_s5 + $0x634] ss:$8 sps:$4 sm:$0xff]  }
 0x545   : > { %6908 = vmatprep.subr.bf16.mxu0 %v9775_v0  ;;  %v9827_v32 = vld [vmem:[%s12617_s5 + $0x510] ss:$8 sps:$4 sm:$0xff]   ;;  %v9884_v36 = vld [vmem:[%s12617_s5 + $0x620] ss:$8 sps:$4 sm:$0xff]  }
 0x547   : > { %6815 = vmatpush1.bf16.msra.mxu1 %v9770_v11  ;;  %v9829_v11 = vld [vmem:[%s12617_s5 + $0x514] ss:$8 sps:$4 sm:$0xff]  }
 0x548   : > { %6909 = vmatpush1.bf16.msra.mxu0 %v9773_v22  ;;  %6816 = vmatprep.subr.bf16.mxu1 %v9778_v19  ;;  %v9832_v22 = vld [vmem:[%s12617_s5 + $0x2e4] ss:$8 sps:$4 sm:$0xff]   ;;  %v9838_v19 = vld [vmem:[%s12617_s5 + $0x2f4] ss:$8 sps:$4 sm:$0xff]  }
 0x549   : > { %6910 = vmatprep.subr.bf16.mxu0 %v9781_v60  ;;  %v9844_v60 = vld [vmem:[%s12617_s5 + $0x544] ss:$8 sps:$4 sm:$0xff]  }
 0x54b   : > { %6817 = vmatpush1.bf16.msra.mxu1 %v9776_v49  ;;  %v9842_v49 = vld [vmem:[%s12617_s5 + $0x540] ss:$8 sps:$4 sm:$0xff]  }
 0x54c   : > { %6911 = vmatpush1.bf16.msra.mxu0 %v9779_v42  ;;  %6818 = vmatprep.subr.bf16.mxu1 %v9784_v62  ;;  %v9847_v42 = vld [vmem:[%s12617_s5 + $0x554] ss:$8 sps:$4 sm:$0xff]   ;;  %v9845_v62 = vld [vmem:[%s12617_s5 + $0x550] ss:$8 sps:$4 sm:$0xff]  }
 0x54d   : > { %6912 = vmatprep.subr.bf16.mxu0 %v9787_v57  ;;  %v9850_v57 = vld [vmem:[%s12617_s5 + $0x564] ss:$8 sps:$4 sm:$0xff]  }
 0x54f   : > { %6819 = vmatpush1.bf16.msra.mxu1 %v9782_v45  ;;  %v9848_v45 = vld [vmem:[%s12617_s5 + $0x560] ss:$8 sps:$4 sm:$0xff]  }
 0x550   : > { %6913 = vmatpush1.bf16.msra.mxu0 %v9785_v2  ;;  %6820 = vmatprep.subr.bf16.mxu1 %v9790_v5  ;;  %v12185_v7 = vpop.f32.mrb[200].mxu0  ;;  %v12233_v15 = vpop.f32.mrb[8].mxu1  ;;  %v9854_v2 = vld [vmem:[%s12617_s5 + $0x580] ss:$8 sps:$4 sm:$0xff]   ;;  %v9859_v5 = vld [vmem:[%s12617_s5 + $0x594] ss:$8 sps:$4 sm:$0xff]  }
 0x551   : > { %6914 = vmatprep.subr.bf16.mxu0 %v9793_v53  ;;  %v9150_v6 = vpop.f32.mrb[201].mxu0  ;;  %v9162_v4 = vpop.f32.mrb[9].mxu1  ;;  %v9857_v53 = vld [vmem:[%s12617_s5 + $0x590] ss:$8 sps:$4 sm:$0xff]  }
 0x552   : > { %v12190_v61 = vpop.f32.mrb[202].mxu0  ;;  %v12246_v58 = vpop.f32.mrb[10].mxu1  ;;  %v9868_v6 = vld [vmem:[%s12617_s5 + $0x5c4] ss:$8 sps:$4 sm:$0xff]  }
 0x553   : > { %6821 = vmatpush1.bf16.msra.mxu1 %v9788_v10  ;;  %v5012_v9 = vpack.c.bf16 %v12190_v61, %v12185_v7  ;;  %v9151_v31 = vpop.f32.mrb[203].mxu0  ;;  %v5065_v35 = vpack.c.bf16 %v12246_v58, %v12233_v15  ;;  %v9163_v13 = vpop.f32.mrb[11].mxu1  ;;  %v9862_v10 = vld [vmem:[%s12617_s5 + $0x5a4] ss:$8 sps:$4 sm:$0xff]   ;;  %v9893_v58 = vld [vmem:[%s12617_s5 + $0x650] ss:$8 sps:$4 sm:$0xff]  }
 0x554   : > { %6915 = vmatpush1.bf16.msra.mxu0 %v9791_v44  ;;  %6822 = vmatprep.subr.bf16.mxu1 %v9796_v18  ;;  %v9860_v44 = vld [vmem:[%s12617_s5 + $0x5a0] ss:$8 sps:$4 sm:$0xff]   ;;  %v9865_v18 = vld [vmem:[%s12617_s5 + $0x5b4] ss:$8 sps:$4 sm:$0xff]   ;;  %v9886_v4 = vld [vmem:[%s12617_s5 + $0x624] ss:$8 sps:$4 sm:$0xff]  }
 0x555   : > { %6916 = vmatprep.subr.bf16.mxu0 %v9799_v16  ;;  %v9863_v16 = vld [vmem:[%s12617_s5 + $0x5b0] ss:$8 sps:$4 sm:$0xff]   ;;  %v9871_v31 = vld [vmem:[%s12617_s5 + $0x5d4] ss:$8 sps:$4 sm:$0xff]   ;;  %v9892_v15 = vld [vmem:[%s12617_s5 + $0x644] ss:$8 sps:$4 sm:$0xff]  }
 0x556   : > { %v9896_v13 = vld [vmem:[%s12617_s5 + $0x660] ss:$8 sps:$4 sm:$0xff]   ;;  %v9937_v61 = vld [vmem:[%s12617_s5 + $0x734] ss:$8 sps:$4 sm:$0xff]  }
 0x557   : > { %6823 = vmatpush1.bf16.msra.mxu1 %v9794_v48  ;;  %v9866_v48 = vld [vmem:[%s12617_s5 + $0x5c0] ss:$8 sps:$4 sm:$0xff]  }
 0x558   : > { %6917 = vmatpush1.bf16.msra.mxu0 %v9797_v59  ;;  %6824 = vmatprep.subr.bf16.mxu1 %v9802_v28  ;;  %v9869_v59 = vld [vmem:[%s12617_s5 + $0x5d0] ss:$8 sps:$4 sm:$0xff]   ;;  %v9874_v28 = vld [vmem:[%s12617_s5 + $0x5e4] ss:$8 sps:$4 sm:$0xff]   ;;  %v9932_v7 = vld [vmem:[%s12617_s5 + $0x720] ss:$8 sps:$4 sm:$0xff]  }
 0x559   : > { %6918 = vmatprep.subr.bf16.mxu0 %v9805_v14  ;;  %v9872_v14 = vld [vmem:[%s12617_s5 + $0x5e0] ss:$8 sps:$4 sm:$0xff]  }
 0x55b   : > { %6825 = vmatpush1.bf16.msra.mxu1 %v9800_v34  ;;  %v9877_v34 = vld [vmem:[%s12617_s5 + $0x5f4] ss:$8 sps:$4 sm:$0xff]  }
 0x55c   : > { %6919 = vmatpush1.bf16.msra.mxu0 %v9803_v54  ;;  %6826 = vmatprep.subr.bf16.mxu1 %v9808_v21 }
 0x55d   : > { %6920 = vmatprep.subr.bf16.mxu0 %v9811_v40  ;;  %v9875_v40 = vld [vmem:[%s12617_s5 + $0x5f0] ss:$8 sps:$4 sm:$0xff]  }
 0x55f   : > { %6827 = vmatpush1.bf16.msra.mxu1 %v9806_v46 }
 0x560   : > { %6921 = vmatpush1.bf16.msra.mxu0 %v9809_v26  ;;  %6828 = vmatprep.subr.bf16.mxu1 %v9814_v56  ;;  %v12241_v50 = vpop.f32.mrb[204].mxu0  ;;  %v12374_v54 = vpop.f32.mrb[12].mxu1  ;;  %v9880_v26 = vld [vmem:[%s12617_s5 + $0x604] ss:$8 sps:$4 sm:$0xff]  }
 0x561   : > { %6922 = vmatprep.subr.bf16.mxu0 %v9817_v17  ;;  %v9174_v23 = vpop.f32.mrb[205].mxu0  ;;  %v9186_v21 = vpop.f32.mrb[13].mxu1 }
 0x562   : > { %v12248_v43 = vpop.f32.mrb[206].mxu0  ;;  %v12379_v46 = vpop.f32.mrb[14].mxu1  ;;  %v9895_v23 = vld [vmem:[%s12617_s5 + $0x654] ss:$8 sps:$4 sm:$0xff]   ;;  %v9964_v21 = vld [vmem:[%s12617_s5 + $0x7c4] ss:$8 sps:$4 sm:$0xff]  }
 0x563   : > { %6829 = vmatpush1.bf16.msra.mxu1 %v9812_v27  ;;  %v5118_v39 = vpack.c.bf16 %v12248_v43, %v12241_v50  ;;  %v9175_v0 = vpop.f32.mrb[207].mxu0  ;;  %v5171_v56 = vpack.c.bf16 %v12379_v46, %v12374_v54  ;;  %v9187_v17 = vpop.f32.mrb[15].mxu1  ;;  %v9878_v27 = vld [vmem:[%s12617_s5 + $0x600] ss:$8 sps:$4 sm:$0xff]   ;;  %v9959_v54 = vld [vmem:[%s12617_s5 + $0x7b0] ss:$8 sps:$4 sm:$0xff]  }
 0x564   : > { %6923 = vmatpush1.bf16.msra.mxu0 %v9815_v38  ;;  %6830 = vmatprep.subr.bf16.mxu1 %v9820_v51  ;;  %v9883_v38 = vld [vmem:[%s12617_s5 + $0x614] ss:$8 sps:$4 sm:$0xff]   ;;  %v9881_v51 = vld [vmem:[%s12617_s5 + $0x610] ss:$8 sps:$4 sm:$0xff]   ;;  %v9968_v17 = vld [vmem:[%s12617_s5 + $0x7e0] ss:$8 sps:$4 sm:$0xff]  }
 0x565   : > { %6935 = vmatprep.subr.bf16.mxu0 %v9823_v3  ;;  %v9890_v3 = vld [vmem:[%s12617_s5 + $0x640] ss:$8 sps:$4 sm:$0xff]   ;;  %v9899_v0 = vld [vmem:[%s12617_s5 + $0x670] ss:$8 sps:$4 sm:$0xff]   ;;  %v9967_v46 = vld [vmem:[%s12617_s5 + $0x7d4] ss:$8 sps:$4 sm:$0xff]  }
 0x567   : > { %6831 = vmatpush1.bf16.msra.mxu1 %v9818_v55  ;;  %6925 = vmatmul.mubr.bf16.vlgmr.msra.gmra.mrb[208].mxu0 %v4800_v52  ;;  %v9833_v52 = vld [vmem:[%s12617_s5 + $0x520] ss:$8 sps:$4 sm:$0xff]   ;;  %v9901_v55 = vld [vmem:[%s12617_s5 + $0x674] ss:$8 sps:$4 sm:$0xff]  }
 0x568   : > { %6936 = vmatpush1.bf16.msra.mxu0 %v9821_v25  ;;  %6832 = vmatprep.subr.bf16.mxu1 %v9826_v1  ;;  %v9904_v25 = vld [vmem:[%s12617_s5 + $0x684] ss:$8 sps:$4 sm:$0xff]   ;;  %v9902_v1 = vld [vmem:[%s12617_s5 + $0x680] ss:$8 sps:$4 sm:$0xff]  }
 0x569   : > { %6937 = vmatprep.subr.bf16.mxu0 %v9829_v11  ;;  %6967 = vmatprep.mubr.bf16.mxu0 %v4959_v63  ;;  %v9839_v63 = vld [vmem:[%s12617_s5 + $0x530] ss:$8 sps:$4 sm:$0xff]   ;;  %v9907_v11 = vld [vmem:[%s12617_s5 + $0x694] ss:$8 sps:$4 sm:$0xff]  }
 0x56b   : > { %6833 = vmatpush1.bf16.msra.mxu1 %v9824_v33  ;;  %v9905_v33 = vld [vmem:[%s12617_s5 + $0x690] ss:$8 sps:$4 sm:$0xff]  }
 0x56c   : > { %6938 = vmatpush1.bf16.msra.mxu0 %v9827_v32  ;;  %6834 = vmatprep.subr.bf16.mxu1 %v9832_v22  ;;  %v9910_v32 = vld [vmem:[%s12617_s5 + $0x6a4] ss:$8 sps:$4 sm:$0xff]   ;;  %v9908_v22 = vld [vmem:[%s12617_s5 + $0x6a0] ss:$8 sps:$4 sm:$0xff]  }
 0x56d   : > { %6939 = vmatprep.subr.bf16.mxu0 %v9835_v37  ;;  %v9913_v37 = vld [vmem:[%s12617_s5 + $0x6b4] ss:$8 sps:$4 sm:$0xff]  }
 0x56f   : > { %6835 = vmatpush1.bf16.msra.mxu1 %v9830_v8  ;;  %v9911_v8 = vld [vmem:[%s12617_s5 + $0x6b0] ss:$8 sps:$4 sm:$0xff]  }
 0x570   : > { %6940 = vmatpush1.bf16.msra.mxu0 %v9833_v52  ;;  %6836 = vmatprep.subr.bf16.mxu1 %v9838_v19  ;;  %v9916_v52 = vld [vmem:[%s12617_s5 + $0x6c4] ss:$8 sps:$4 sm:$0xff]   ;;  %v9914_v19 = vld [vmem:[%s12617_s5 + $0x6c0] ss:$8 sps:$4 sm:$0xff]  }
 0x571   : > { %6941 = vmatprep.subr.bf16.mxu0 %v9841_v12  ;;  %v9919_v12 = vld [vmem:[%s12617_s5 + $0x6d4] ss:$8 sps:$4 sm:$0xff]  }
 0x573   : > { %6837 = vmatpush1.bf16.msra.mxu1 %v9836_v30  ;;  %v9917_v30 = vld [vmem:[%s12617_s5 + $0x6d0] ss:$8 sps:$4 sm:$0xff]  }
 0x574   : > { %6942 = vmatpush1.bf16.msra.mxu0 %v9839_v63  ;;  %v9922_v63 = vld [vmem:[%s12617_s5 + $0x6e4] ss:$8 sps:$4 sm:$0xff]  }
 0x575   : > { %6943 = vmatprep.subr.bf16.mxu0 %v9844_v60  ;;  %v9920_v60 = vld [vmem:[%s12617_s5 + $0x6e0] ss:$8 sps:$4 sm:$0xff]  }
 0x576   : > { %6839 = vmatmul.mubr.bf16.vlgmr.msra.gmra.mrb[16].mxu1 %v4588_v47  ;;  %v9856_v47 = vld [vmem:[%s12617_s5 + $0x584] ss:$8 sps:$4 sm:$0xff]  }
 0x578   : > { %6944 = vmatpush1.bf16.msra.mxu0 %v9842_v49  ;;  %v9925_v49 = vld [vmem:[%s12617_s5 + $0x6f4] ss:$8 sps:$4 sm:$0xff]  }
 0x579   : > { %6945 = vmatprep.subr.bf16.mxu0 %v9847_v42  ;;  %v9923_v42 = vld [vmem:[%s12617_s5 + $0x6f0] ss:$8 sps:$4 sm:$0xff]  }
 0x57c   : > { %6946 = vmatpush1.bf16.msra.mxu0 %v9845_v62  ;;  %v9928_v62 = vld [vmem:[%s12617_s5 + $0x704] ss:$8 sps:$4 sm:$0xff]  }
 0x57d   : > { %6947 = vmatprep.subr.bf16.mxu0 %v9850_v57  ;;  %v9926_v57 = vld [vmem:[%s12617_s5 + $0x700] ss:$8 sps:$4 sm:$0xff]  }
 0x580   : > { %6948 = vmatpush1.bf16.msra.mxu0 %v9848_v45  ;;  %v9931_v45 = vld [vmem:[%s12617_s5 + $0x714] ss:$8 sps:$4 sm:$0xff]  }
 0x581   : > { %6949 = vmatprep.subr.bf16.mxu0 %v9853_v29  ;;  %v9929_v29 = vld [vmem:[%s12617_s5 + $0x710] ss:$8 sps:$4 sm:$0xff]  }
 0x584   : > { %6950 = vmatpush1.bf16.msra.mxu0 %v9851_v41  ;;  %v9934_v41 = vld [vmem:[%s12617_s5 + $0x724] ss:$8 sps:$4 sm:$0xff]  }
 0x585   : > { %6951 = vmatprep.subr.bf16.mxu0 %v9856_v47  ;;  %v9940_v47 = vld [vmem:[%s12617_s5 + $0x744] ss:$8 sps:$4 sm:$0xff]  }
 0x588   : > { %6952 = vmatpush1.bf16.msra.mxu0 %v9854_v2  ;;  %v9938_v2 = vld [vmem:[%s12617_s5 + $0x740] ss:$8 sps:$4 sm:$0xff]  }
 0x589   : > { %6953 = vmatprep.subr.bf16.mxu0 %v9859_v5  ;;  %v9943_v5 = vld [vmem:[%s12617_s5 + $0x754] ss:$8 sps:$4 sm:$0xff]  }
 0x58c   : > { %6954 = vmatpush1.bf16.msra.mxu0 %v9857_v53  ;;  %v9941_v53 = vld [vmem:[%s12617_s5 + $0x750] ss:$8 sps:$4 sm:$0xff]  }
 0x58d   : > { %6955 = vmatprep.subr.bf16.mxu0 %v9862_v10  ;;  %v9946_v10 = vld [vmem:[%s12617_s5 + $0x764] ss:$8 sps:$4 sm:$0xff]  }
 0x590   : > { %6956 = vmatpush1.bf16.msra.mxu0 %v9860_v44  ;;  %v9944_v44 = vld [vmem:[%s12617_s5 + $0x760] ss:$8 sps:$4 sm:$0xff]  }
 0x591   : > { %6957 = vmatprep.subr.bf16.mxu0 %v9865_v18  ;;  %v9949_v18 = vld [vmem:[%s12617_s5 + $0x774] ss:$8 sps:$4 sm:$0xff]  }
 0x594   : > { %6958 = vmatpush1.bf16.msra.mxu0 %v9863_v16  ;;  %v9947_v16 = vld [vmem:[%s12617_s5 + $0x770] ss:$8 sps:$4 sm:$0xff]  }
 0x595   : > { %6959 = vmatprep.subr.bf16.mxu0 %v9868_v6  ;;  %v9952_v6 = vld [vmem:[%s12617_s5 + $0x784] ss:$8 sps:$4 sm:$0xff]  }
 0x598   : > { %6960 = vmatpush1.bf16.msra.mxu0 %v9866_v48  ;;  %v9950_v48 = vld [vmem:[%s12617_s5 + $0x780] ss:$8 sps:$4 sm:$0xff]  }
 0x599   : > { %6961 = vmatprep.subr.bf16.mxu0 %v9871_v31  ;;  %v9955_v31 = vld [vmem:[%s12617_s5 + $0x794] ss:$8 sps:$4 sm:$0xff]  }
 0x59c   : > { %6962 = vmatpush1.bf16.msra.mxu0 %v9869_v59  ;;  %v9953_v59 = vld [vmem:[%s12617_s5 + $0x790] ss:$8 sps:$4 sm:$0xff]  }
 0x59d   : > { %6963 = vmatprep.subr.bf16.mxu0 %v9874_v28  ;;  %v9958_v28 = vld [vmem:[%s12617_s5 + $0x7a4] ss:$8 sps:$4 sm:$0xff]  }
 0x5a0   : > { %6964 = vmatpush1.bf16.msra.mxu0 %v9872_v14  ;;  %v9956_v14 = vld [vmem:[%s12617_s5 + $0x7a0] ss:$8 sps:$4 sm:$0xff]  }
 0x5a1   : > { %6965 = vmatprep.subr.bf16.mxu0 %v9877_v34  ;;  %v9961_v34 = vld [vmem:[%s12617_s5 + $0x7b4] ss:$8 sps:$4 sm:$0xff]  }
 0x5a4   : > { %6966 = vmatpush1.bf16.msra.mxu0 %v9875_v40  ;;  %v9962_v40 = vld [vmem:[%s12617_s5 + $0x7c0] ss:$8 sps:$4 sm:$0xff]  }
 0x5a5   : > { %6978 = vmatprep.subr.bf16.mxu0 %v9880_v26  ;;  %v9965_v26 = vld [vmem:[%s12617_s5 + $0x7d0] ss:$8 sps:$4 sm:$0xff]  }
 0x5a7   : > { %6968 = vmatmul.mubr.bf16.vlgmr.msra.gmra.mrb[208].mxu0 %v4906_v24  ;;  %v9887_v24 = vld [vmem:[%s12617_s5 + $0x630] ss:$8 sps:$4 sm:$0xff]  }
 0x5a8   : > { %6979 = vmatpush1.bf16.msra.mxu0 %v9878_v27  ;;  %7010 = vmatprep.mubr.bf16.mxu0 %v5065_v35  ;;  %v9898_v35 = vld [vmem:[%s12617_s5 + $0x664] ss:$8 sps:$4 sm:$0xff]   ;;  %v9973_v27 = vld [vmem:[%s12617_s5 + $0x7f4] ss:$8 sps:$4 sm:$0xff]  }
 0x5a9   : > { %6980 = vmatprep.subr.bf16.mxu0 %v9883_v38  ;;  %v9971_v38 = vld [vmem:[%s12617_s5 + $0x7f0] ss:$8 sps:$4 sm:$0xff]  }
 0x5ac   : > { %6981 = vmatpush1.bf16.msra.mxu0 %v9881_v51 }
 0x5ad   : > { %6982 = vmatprep.subr.bf16.mxu0 %v9886_v4 }
 0x5b0   : > { %6983 = vmatpush1.bf16.msra.mxu0 %v9884_v36 }
 0x5b1   : > { %6984 = vmatprep.subr.bf16.mxu0 %v9889_v20 }
 0x5b4   : > { %6985 = vmatpush1.bf16.msra.mxu0 %v9887_v24  ;;  %v5430_v24 = vlaneseq }
 0x5b5   : > { %6986 = vmatprep.subr.bf16.mxu0 %v9892_v15 }
 0x5b6   : > { %v5431_v15 = vshrl.u32 %v5430_v24, 7 }
 0x5b8   : > { %6987 = vmatpush1.bf16.msra.mxu0 %v9890_v3  ;;  %v5432_v3 = vsub.s32 0, %v5431_v15 }
 0x5b9   : > { %6988 = vmatprep.subr.bf16.mxu0 %v9895_v23  ;;  %v5428_v23 = vld [vmem:[%s12618_s6] sm:$0x3] }
 0x5bc   : > { %6989 = vmatpush1.bf16.msra.mxu0 %v9893_v58  ;;  %v5436_v58 = vsub.s32 1, %v5431_v15 }
 0x5bd   : > { %6990 = vmatprep.subr.bf16.mxu0 %v9898_v35  ;;  %v5433_v35 = vrot.slane %v5428_v23, %v5432_v3 }
 0x5c0   : > { %6991 = vmatpush1.bf16.msra.mxu0 %v9896_v13  ;;  %v5437_v13 = vrot.slane %v5428_v23, %v5436_v58 }
 0x5c1   : > { %6992 = vmatprep.subr.bf16.mxu0 %v9901_v55 }
 0x5c4   : > { %6993 = vmatpush1.bf16.msra.mxu0 %v9899_v0 }
 0x5c5   : > { %6994 = vmatprep.subr.bf16.mxu0 %v9904_v25 }
 0x5c8   : > { %6995 = vmatpush1.bf16.msra.mxu0 %v9902_v1 }
 0x5c9   : > { %6996 = vmatprep.subr.bf16.mxu0 %v9907_v11 }
 0x5cc   : > { %6997 = vmatpush1.bf16.msra.mxu0 %v9905_v33 }
 0x5cd   : > { %6998 = vmatprep.subr.bf16.mxu0 %v9910_v32 }
 0x5d0   : > { %6999 = vmatpush1.bf16.msra.mxu0 %v9908_v22 }
 0x5d1   : > { %7000 = vmatprep.subr.bf16.mxu0 %v9913_v37 }
 0x5d4   : > { %7001 = vmatpush1.bf16.msra.mxu0 %v9911_v8  ;;  %v7076_v8 = vld [vmem:[%s12619_s7] sm:$0xff] }
 0x5d5   : > { %7002 = vmatprep.subr.bf16.mxu0 %v9916_v52 }
 0x5d8   : > { %7003 = vmatpush1.bf16.msra.mxu0 %v9914_v19 }
 0x5d9   : > { %7004 = vmatprep.subr.bf16.mxu0 %v9919_v12  ;;  %v7077_v12 = vld [vmem:[%s12619_s7 + $0x8] sm:$0xff] }
 0x5dc   : > { %7005 = vmatpush1.bf16.msra.mxu0 %v9917_v30 }
 0x5dd   : > { %7006 = vmatprep.subr.bf16.mxu0 %v9922_v63 }
 0x5e0   : > { %7007 = vmatpush1.bf16.msra.mxu0 %v9920_v60  ;;  %v7078_v60 = vld [vmem:[%s12619_s7 + $0x10] sm:$0xff] }
 0x5e1   : > { %7008 = vmatprep.subr.bf16.mxu0 %v9925_v49 }
 0x5e4   : > { %7009 = vmatpush1.bf16.msra.mxu0 %v9923_v42 }
 0x5e5   : > { %7021 = vmatprep.subr.bf16.mxu0 %v9928_v62 }
 0x5e7   : > { %7011 = vmatmul.mubr.bf16.vlgmr.msra.gmra.mrb[208].mxu0 %v5012_v9  ;;  %v9935_v9 = vld [vmem:[%s12617_s5 + $0x730] ss:$8 sps:$4 sm:$0xff]  }
 0x5e8   : > { %7022 = vmatpush1.bf16.msra.mxu0 %v9926_v57  ;;  %7053 = vmatprep.mubr.bf16.mxu0 %v5171_v56  ;;  %v9970_v56 = vld [vmem:[%s12617_s5 + $0x7e4] ss:$8 sps:$4 sm:$0xff]   ;;  %v7079_v57 = vld [vmem:[%s12619_s7 + $0x18] sm:$0xff] }
 0x5e9   : > { %7023 = vmatprep.subr.bf16.mxu0 %v9931_v45 }
 0x5ec   : > { %7024 = vmatpush1.bf16.msra.mxu0 %v9929_v29 }
 0x5ed   : > { %7025 = vmatprep.subr.bf16.mxu0 %v9934_v41 }
 0x5f0   : > { %7026 = vmatpush1.bf16.msra.mxu0 %v9932_v7 }
 0x5f1   : > { %7027 = vmatprep.subr.bf16.mxu0 %v9937_v61 }
 0x5f4   : > { %7028 = vmatpush1.bf16.msra.mxu0 %v9935_v9 }
 0x5f5   : > { %7029 = vmatprep.subr.bf16.mxu0 %v9940_v47 }
 0x5f8   : > { %7030 = vmatpush1.bf16.msra.mxu0 %v9938_v2 }
 0x5f9   : > { %7031 = vmatprep.subr.bf16.mxu0 %v9943_v5 }
 0x5fc   : > { %7032 = vmatpush1.bf16.msra.mxu0 %v9941_v53 }
 0x5fd   : > { %7033 = vmatprep.subr.bf16.mxu0 %v9946_v10 }
 0x600   : > { %7034 = vmatpush1.bf16.msra.mxu0 %v9944_v44 }
 0x601   : > { %7035 = vmatprep.subr.bf16.mxu0 %v9949_v18 }
 0x604   : > { %7036 = vmatpush1.bf16.msra.mxu0 %v9947_v16 }
 0x605   : > { %7037 = vmatprep.subr.bf16.mxu0 %v9952_v6 }
 0x608   : > { %7038 = vmatpush1.bf16.msra.mxu0 %v9950_v48  ;;  %v7097_v48 = vld [vmem:[#allocation2] sm:$0x1] }
 0x609   : > { %7039 = vmatprep.subr.bf16.mxu0 %v9955_v31 }
 0x60c   : > { %7040 = vmatpush1.bf16.msra.mxu0 %v9953_v59 }
 0x60d   : > { %7041 = vmatprep.subr.bf16.mxu0 %v9958_v28 }
 0x610   : > { %7042 = vmatpush1.bf16.msra.mxu0 %v9956_v14 }
 0x611   : > { %7043 = vmatprep.subr.bf16.mxu0 %v9961_v34 }
 0x614   : > { %7044 = vmatpush1.bf16.msra.mxu0 %v9959_v54 }
 0x615   : > { %7045 = vmatprep.subr.bf16.mxu0 %v9964_v21 }
 0x618   : > { %7046 = vmatpush1.bf16.msra.mxu0 %v9962_v40 }
 0x619   : > { %7047 = vmatprep.subr.bf16.mxu0 %v9967_v46 }
 0x61c   : > { %7048 = vmatpush1.bf16.msra.mxu0 %v9965_v26 }
 0x61d   : > { %7049 = vmatprep.subr.bf16.mxu0 %v9970_v56 }
 0x620   : > { %7050 = vmatpush1.bf16.msra.mxu0 %v9968_v17 }
 0x621   : > { %7051 = vmatprep.subr.bf16.mxu0 %v9973_v27 }
 0x624   : > { %7052 = vmatpush1.bf16.msra.mxu0 %v9971_v38 }
 0x627   : > { %7054 = vmatmul.mubr.bf16.vlgmr.msra.gmra.mrb[208].mxu0 %v5118_v39 }
 0x649   : > { %v6840_v51 = vpop.f32.mrb[16].mxu1 }
 0x64a   : > { %v6842_v4 = vpop.f32.mrb[17].mxu1  ;;  %v9188_v55 = vadd.f32 %v6840_v51, %v5433_v35 }
 0x64b   : > { %v6844_v36 = vpop.f32.mrb[18].mxu1  ;;  %v9190_v0 = vadd.f32 %v6842_v4, %v5437_v13 }
 0x64c   : > { %v6846_v20 = vpop.f32.mrb[19].mxu1  ;;  %v9192_v1 = vadd.f32 %v6844_v36, %v5433_v35 }
 0x64d   : > { %v9194_v39 = vadd.f32 %v6846_v20, %v5437_v13 }
 0x6fa   : > { %v7055_v25 = vpop.f32.mrb[208].mxu0 }
 0x6fb   : > { %v9189_v50 = vadd.f32 %v9188_v55, %v7055_v25  ;;  %v7057_v43 = vpop.f32.mrb[209].mxu0 }
 0x6fc   : > { %v9191_v11 = vadd.f32 %v9190_v0, %v7057_v43  ;;  %v7059_v33 = vpop.f32.mrb[210].mxu0 }
 0x6fd   : > { %vm7064_vm10 = vcmp.ge.f32.partialorder %v9189_v50, 0.0  ;;  %v7068_v32 = vmul.f32 0.2, %v9189_v50  ;;  %v9193_v22 = vadd.f32 %v9192_v1, %v7059_v33  ;;  %v7061_v37 = vpop.f32.mrb[211].mxu0 }
 0x6fe   : > { %vm7065_vm11 = vcmp.ge.f32.partialorder %v9191_v11, 0.0  ;;  %v7069_v52 = vmul.f32 0.2, %v9191_v11  ;;  %v9195_v19 = vadd.f32 %v9194_v39, %v7061_v37 }
 0x6ff   : > { %vm7066_vm12 = vcmp.ge.f32.partialorder %v9193_v22, 0.0  ;;  %v7070_v30 = vmul.f32 0.2, %v9193_v22  ;;  %v7072_v63 = vsel %vm7064_vm10, %v9189_v50, %v7068_v32 }
 0x700   : > { %vm7067_vm13 = vcmp.ge.f32.partialorder %v9195_v19, 0.0  ;;  %v7071_v49 = vmul.f32 0.2, %v9195_v19  ;;  %v7073_v42 = vsel %vm7065_vm11, %v9191_v11, %v7069_v52  ;;  %v7080_v62 = vmul.f32 %v7076_v8, %v7072_v63 }
 0x701   : > { %v7081_v45 = vmul.f32 %v7077_v12, %v7073_v42  ;;  %v7074_v29 = vsel %vm7066_vm12, %v9193_v22, %v7070_v30 }
 0x702   : > { %v7075_v41 = vsel %vm7067_vm13, %v9195_v19, %v7071_v49  ;;  %v7082_v7 = vmul.f32 %v7078_v60, %v7074_v29 }
 0x703   : > { %v7084_v61 = vadd.f32 %v7081_v45, %v7080_v62  ;;  %v7083_v9 = vmul.f32 %v7079_v57, %v7075_v41 }
 0x705   : > { %7085 = vadd.xlane.f32.xlu0 %v7084_v61  ;;  %v7087_v47 = vadd.f32 %v7083_v9, %v7082_v7 }
 0x709   : > { %7088 = vadd.xlane.f32.xlu0 %v7087_v47 }
 0x792   : > { %v7086_v2 = vpop.xlane.xlu0 %7085 }
 0x796   : > { %v7089_v5 = vpop.xlane.xlu0 %7088 }
 0x797   : > { %v7090_v53 = vadd.f32 %v7089_v5, %v7086_v2 }
 0x799   : > { %v7091_v10 = vrot.slane %v7090_v53, 4 }
 0x79b   : > { %v7092_v44 = vadd.f32 %v7091_v10, %v7090_v53 }
 0x79d   : > { %v7093_v18 = vrot.slane %v7092_v44, 2 }
 0x79f   : > { %v7094_v16 = vadd.f32 %v7093_v18, %v7092_v44 }
 0x7a1   : > { %v7095_v6 = vrot.slane %v7094_v16, 1 }
 0x7a3   : > { %v7096_v31 = vadd.f32 %v7095_v6, %v7094_v16 }
 0x7a5   : > { %v7098_v59 = vadd.f32 %v7097_v48, %v7096_v31 }
 0x7a7   : > { %v7099_v28 = vsub.f32 0.0, %v7098_v59 }
 0x7a9   : > { %v7100_v14 = vmul.f32 1.442695, %v7099_v28 }
 0x7ab   : > { %9974 = vpow2.f32 %v7100_v14 }
 0x7b5   : > { %v9975_v34 = vpop.eup %9974 }
 0x7b6   : > { %v7102_v54 = vadd.f32 1.0, %v9975_v34 }
 0x7b8   : > { %9976 = vrcp.f32 %v7102_v54 }
 0x7c2   : > { %v9977_v21 = vpop.eup %9976 }
 0x7c3   : > { %7106 = vst.msk [vmem:[%s384_s13] sm:$0x1] %vm7105_vm14, %v9977_v21 }
 0x7c4 PF: > { %s23_s19 = sadd.s32 1, %s9984_s19  }
 0x7c5   : > { %p20_p4 = scmp.ge.s32.totalorder %s23_s19, 4  }
 0x7c7   :  { %22 = sbr.rel (!%p20_p4) target bundleno = 3 (0x3), region = 124 }

</bundles_post_ra>
